<compile_context>
chip_gen: v5e
topology: v5e:2x2
jax: 0.10.0
libtpu: 0.0.40
codegen_flags: <defaults>
</compile_context>

<pallas_src>
import functools
import math

import jax
import jax.numpy as jnp
from jax.experimental import pallas as pl
from jax.experimental.pallas import tpu as pltpu

# ---------------- config (small stand-in for bert-base-uncased) ----------------
HIDDEN = 128
NUM_LAYERS = 2
NUM_HEADS = 4
HEAD_DIM = HIDDEN // NUM_HEADS
FFN = 512
SEQ = 16
BATCH = 2
VOCAB = 64
MAX_POS = SEQ
TYPE_VOCAB = 2
NUM_CLASSES = 2
CITATION_DIM = 64          # stands in for the 256-d citation_fc output
LN_EPS = 1e-12


# ---------------- small helpers ----------------

def _const_spec(shape):
    """Full-extent block with a constant (revisited) block index across the layer grid."""
    zero = (0,) * len(shape)
    return pl.BlockSpec(shape, lambda l: zero)


def _layer_spec(full_shape):
    """Per-layer block: leading layer axis indexed by the grid step."""
    block = (1,) + tuple(full_shape[1:])
    trail = (0,) * (len(full_shape) - 1)
    return pl.BlockSpec(block, lambda l: (l,) + trail)


def _ln_rows(x, gamma, beta, eps):
    mean = jnp.mean(x, axis=-1, keepdims=True)
    xc = x - mean
    var = jnp.mean(xc * xc, axis=-1, keepdims=True)
    return xc * jax.lax.rsqrt(var + eps) * gamma + beta


def _gelu(y):
    # TODO(synk): HF bert-base uses exact erf-GELU; tanh approximation is used here.
    return 0.5 * y * (1.0 + jnp.tanh(0.7978845608028654 * (y + 0.044715 * y * y * y)))


# ---------------- the single fused kernel ----------------

def _specter_fused_kernel(emb_ref, mask_ref, sel_ref, eg_ref, eb_ref,
                          wqkv_ref, bqkv_ref, wo_ref, bo_ref, g1_ref, b1_ref,
                          wi_ref, bi_ref, wo2_ref, bo2_ref, g2_ref, b2_ref,
                          pw_ref, pb_ref, cw_ref, cb_ref, w1_ref, w2_ref, clb_ref,
                          out_ref, x_scr,
                          *, num_heads, head_dim, eps, batch, use_citation):
    l = pl.program_id(0)

    # ---- step 0: embedding LayerNorm into the persistent VMEM activation slab ----
    @pl.when(l == 0)
    def _():
        x_scr[...] = _ln_rows(emb_ref[...].astype(jnp.float32),
                              eg_ref[...], eb_ref[...], eps)

    x = x_scr[...]                                    # (M, H) f32, VMEM-resident
    H = x.shape[1]

    # ---- fused QKV projection: one (M, H) @ (H, 3H) bf16 MXU pass ----
    qkv = jnp.dot(x.astype(jnp.bfloat16), wqkv_ref[0],
                  preferred_element_type=jnp.float32) + bqkv_ref[0]
    q, k, v = qkv[:, :H], qkv[:, H:2 * H], qkv[:, 2 * H:]

    mask = mask_ref[...]                              # (M, M) block-diag + key-pad additive
    ctx_heads = []
    for h in range(num_heads):                        # static unroll; whole batch per matmul
        sl = slice(h * head_dim, (h + 1) * head_dim)
        qh = q[:, sl].astype(jnp.bfloat16)
        kh = k[:, sl].astype(jnp.bfloat16)
        vh = v[:, sl].astype(jnp.bfloat16)
        # 1/sqrt(head_dim) already folded into the Q projection weights.
        s = jax.lax.dot_general(qh, kh, (((1,), (1,)), ((), ())),
                                preferred_element_type=jnp.float32) + mask
        s = s - jnp.max(s, axis=-1, keepdims=True)
        p = jnp.exp(s)
        p = p * pl.reciprocal(jnp.sum(p, axis=-1, keepdims=True), approx=True)
        ctx_heads.append(jnp.dot(p.astype(jnp.bfloat16), vh,
                                 preferred_element_type=jnp.float32))
    ctx = jnp.concatenate(ctx_heads, axis=-1)         # (M, H), lane-dense

    attn = jnp.dot(ctx.astype(jnp.bfloat16), wo_ref[0],
                   preferred_element_type=jnp.float32) + bo_ref[0]
    x1 = _ln_rows(attn + x, g1_ref[0], b1_ref[0], eps)

    inter = _gelu(jnp.dot(x1.astype(jnp.bfloat16), wi_ref[0],
                          preferred_element_type=jnp.float32) + bi_ref[0])
    ffn = jnp.dot(inter.astype(jnp.bfloat16), wo2_ref[0],
                  preferred_element_type=jnp.float32) + bo2_ref[0]
    x2 = _ln_rows(ffn + x1, g2_ref[0], b2_ref[0], eps)
    x_scr[...] = x2                                   # feed the next layer

    # ---- last step: pooler(tanh) + citation_fc + classifier tail ----
    @pl.when(l == pl.num_programs(0) - 1)
    def _():
        # CLS-row extraction via a tiny one-hot selection matmul (no strided gather).
        cls = jnp.dot(sel_ref[...], x2, preferred_element_type=jnp.float32)   # (n_seq, H)
        pooled = jnp.tanh(jnp.dot(cls.astype(jnp.bfloat16), pw_ref[...],
                                  preferred_element_type=jnp.float32) + pb_ref[...])
        # nn.Dropout(0.1) is identity at inference.
        if use_citation:
            doc, cit = pooled[:batch], pooled[batch:]
            cit_rep = jnp.dot(cit.astype(jnp.bfloat16), cw_ref[...],
                              preferred_element_type=jnp.float32) + cb_ref[...]
            # classifier on concat(doc, cit_rep) expressed as a split matmul (no lane concat)
            logits = (jnp.dot(doc.astype(jnp.bfloat16), w1_ref[...],
                              preferred_element_type=jnp.float32)
                      + jnp.dot(cit_rep.astype(jnp.bfloat16), w2_ref[...],
                                preferred_element_type=jnp.float32)
                      + clb_ref[...])
        else:
            logits = jnp.dot(pooled.astype(jnp.bfloat16), w1_ref[...],
                             preferred_element_type=jnp.float32) + clb_ref[...]
        out_ref[...] = logits.astype(out_ref.dtype)


# ---------------- forward (embedding gathers in XLA, everything else in one kernel) ----------------

def specter_forward(params, input_ids, attention_mask,
                    citation_ids=None, citation_mask=None, use_citation=True):
    bert = params["bert"]
    B, S = input_ids.shape
    if use_citation:
        # Batch the document pass and the citation pass into ONE encoder run (doubles M).
        ids = jnp.concatenate([input_ids, citation_ids], axis=0)
        am = jnp.concatenate([attention_mask, citation_mask], axis=0)
    else:
        ids, am = input_ids, attention_mask
    n_seq = ids.shape[0]
    M = n_seq * S
    H = HIDDEN

    # Embeddings (token gather + position + type) computed in XLA; LN happens in the kernel.
    emb = (jnp.take(bert["word_emb"], ids, axis=0)
           + bert["pos_emb"][None, :S, :]
           + bert["type_emb"][0][None, None, :]).reshape(M, H)   # token_type_ids == 0

    # Lane-dense (M, M) additive attention mask: block-diagonal over sequences + key padding.
    # (Padded *query* rows produce unused garbage; only CLS rows are consumed downstream.)
    seq_id = jnp.arange(M, dtype=jnp.int32) // S
    same_seq = seq_id[:, None] == seq_id[None, :]
    key_ok = am.reshape(M) > 0
    add_mask = jnp.where(same_seq & key_ok[None, :], 0.0, -1e9).astype(jnp.float32)

    # One-hot selection matrix picking token 0 (CLS) of each sequence.
    cls_sel = jax.nn.one_hot(jnp.arange(n_seq) * S, M, dtype=jnp.float32)

    Lw = bert["layers"]
    args = [emb, add_mask, cls_sel, bert["emb_ln_g"], bert["emb_ln_b"],
            Lw["wqkv"], Lw["bqkv"], Lw["wo"], Lw["bo"], Lw["ln1_g"], Lw["ln1_b"],
            Lw["wi"], Lw["bi"], Lw["wo2"], Lw["bo2"], Lw["ln2_g"], Lw["ln2_b"],
            bert["pooler_w"], bert["pooler_b"],
            params["citation_w"], params["citation_b"],
            params["classifier_w1"], params["classifier_w2"], params["classifier_b"]]

    in_specs = ([_const_spec(a.shape) for a in args[:5]]          # emb / mask / sel / emb-LN
                + [_layer_spec(a.shape) for a in args[5:17]]      # layer-stacked weights
                + [_const_spec(a.shape) for a in args[17:]])      # tail weights

    kernel = functools.partial(
        _specter_fused_kernel,
        num_heads=NUM_HEADS, head_dim=HEAD_DIM, eps=LN_EPS,
        batch=B, use_citation=use_citation)

    # TODO(synk): the reference module declares classifier = Linear(768, 2), which cannot
    # consume the 1024-d concat when use_citation=True (a bug in the reference); here the
    # classifier takes the concatenated width (HIDDEN + CITATION_DIM).
    return pl.pallas_call(
        kernel,
        out_shape=jax.ShapeDtypeStruct((B, NUM_CLASSES), jnp.float32),
        grid=(NUM_LAYERS,),
        in_specs=in_specs,
        out_specs=_const_spec((B, NUM_CLASSES)),
        scratch_shapes=[pltpu.VMEM((M, H), jnp.float32)],   # persistent activation slab
        compiler_params=pltpu.CompilerParams(dimension_semantics=("arbitrary",)),
    )(*args)


# ---------------- deterministic synthetic parameters (stacked, bf16 matmul weights) ----------------

def init_params(key):
    std = 0.02
    keys = iter(jax.random.split(key, 64))

    def nrm(shape):
        return jax.random.normal(next(keys), shape, jnp.float32) * std

    L, H, F = NUM_LAYERS, HIDDEN, FFN
    q_scale = 1.0 / math.sqrt(HEAD_DIM)

    # wq | wk | wv fused into a single (H, 3H) projection; softmax scale folded into the
    # Q columns (the Q bias is zero, so it needs no scaling).
    wqkv = nrm((L, H, 3 * H)).at[:, :, :H].multiply(q_scale)

    layers = {
        "wqkv": wqkv.astype(jnp.bfloat16),
        "bqkv": jnp.zeros((L, 1, 3 * H), jnp.float32),
        "wo": nrm((L, H, H)).astype(jnp.bfloat16),
        "bo": jnp.zeros((L, 1, H), jnp.float32),
        "ln1_g": jnp.ones((L, 1, H), jnp.float32),
        "ln1_b": jnp.zeros((L, 1, H), jnp.float32),
        "wi": nrm((L, H, F)).astype(jnp.bfloat16),
        "bi": jnp.zeros((L, 1, F), jnp.float32),
        "wo2": nrm((L, F, H)).astype(jnp.bfloat16),
        "bo2": jnp.zeros((L, 1, H), jnp.float32),
        "ln2_g": jnp.ones((L, 1, H), jnp.float32),
        "ln2_b": jnp.zeros((L, 1, H), jnp.float32),
    }
    bert = {
        "word_emb": nrm((VOCAB, H)),
        "pos_emb": nrm((MAX_POS, H)),
        "type_emb": nrm((TYPE_VOCAB, H)),
        "emb_ln_g": jnp.ones((1, H), jnp.float32),
        "emb_ln_b": jnp.zeros((1, H), jnp.float32),
        "pooler_w": nrm((H, H)).astype(jnp.bfloat16),
        "pooler_b": jnp.zeros((1, H), jnp.float32),
        "layers": layers,
    }
    cls_w = nrm((H + CITATION_DIM, NUM_CLASSES))
    return {
        "bert": bert,
        "citation_w": nrm((H, CITATION_DIM)).astype(jnp.bfloat16),
        "citation_b": jnp.zeros((1, CITATION_DIM), jnp.float32),
        "classifier_w1": cls_w[:H].astype(jnp.bfloat16),
        "classifier_w2": cls_w[H:].astype(jnp.bfloat16),
        "classifier_b": jnp.zeros((1, NUM_CLASSES), jnp.float32),
    }


if __name__ == "__main__":
    key = jax.random.PRNGKey(0)
    pkey, dkey = jax.random.split(key)
    params = init_params(pkey)

    k1, k2 = jax.random.split(dkey)
    input_ids = jax.random.randint(k1, (BATCH, SEQ), 0, VOCAB)
    attention_mask = jnp.ones((BATCH, SEQ), jnp.int32).at[:, SEQ - 3:].set(0)  # some padding
    citation_ids = jax.random.randint(k2, (BATCH, SEQ), 0, VOCAB)
    citation_mask = jnp.ones((BATCH, SEQ), jnp.int32)

    fwd = jax.jit(specter_forward, static_argnames=("use_citation",))
    logits = fwd(params, input_ids, attention_mask,
                 citation_ids, citation_mask, use_citation=True)
    jax.block_until_ready(logits)
    assert logits.shape == (BATCH, NUM_CLASSES)
    print("KERNEL_OK")
</pallas_src>

<mosaic_0001>
module attributes {stable_mosaic.version = 11 : i64} {
  func.func @_specter_fused_kernel(%arg0: i32, %arg1: memref<64x128xf32, #tpu.memory_space<vmem>>, %arg2: memref<64x64xf32, #tpu.memory_space<vmem>>, %arg3: memref<4x64xf32, #tpu.memory_space<vmem>>, %arg4: memref<1x128xf32, #tpu.memory_space<vmem>>, %arg5: memref<1x128xf32, #tpu.memory_space<vmem>>, %arg6: memref<1x128x384xbf16, #tpu.memory_space<vmem>>, %arg7: memref<1x1x384xf32, #tpu.memory_space<vmem>>, %arg8: memref<1x128x128xbf16, #tpu.memory_space<vmem>>, %arg9: memref<1x1x128xf32, #tpu.memory_space<vmem>>, %arg10: memref<1x1x128xf32, #tpu.memory_space<vmem>>, %arg11: memref<1x1x128xf32, #tpu.memory_space<vmem>>, %arg12: memref<1x128x512xbf16, #tpu.memory_space<vmem>>, %arg13: memref<1x1x512xf32, #tpu.memory_space<vmem>>, %arg14: memref<1x512x128xbf16, #tpu.memory_space<vmem>>, %arg15: memref<1x1x128xf32, #tpu.memory_space<vmem>>, %arg16: memref<1x1x128xf32, #tpu.memory_space<vmem>>, %arg17: memref<1x1x128xf32, #tpu.memory_space<vmem>>, %arg18: memref<128x128xbf16, #tpu.memory_space<vmem>>, %arg19: memref<1x128xf32, #tpu.memory_space<vmem>>, %arg20: memref<128x64xbf16, #tpu.memory_space<vmem>>, %arg21: memref<1x64xf32, #tpu.memory_space<vmem>>, %arg22: memref<128x2xbf16, #tpu.memory_space<vmem>>, %arg23: memref<64x2xbf16, #tpu.memory_space<vmem>>, %arg24: memref<1x2xf32, #tpu.memory_space<vmem>>, %arg25: memref<2x2xf32, #tpu.memory_space<vmem>>, %arg26: memref<64x128xf32, #tpu.memory_space<vmem>>) attributes {dimension_semantics = [#tpu.dimension_semantics<arbitrary>], iteration_bounds = array<i64: 2>, scalar_prefetch = 0 : i64, scratch_operands = 1 : i64, tpu.core_type = #tpu.core_type<tc>, window_params = [{pipeline_mode = #tpu.pipeline_mode<synchronous>, transform_indices = @transform_0, window_bounds = array<i64: 64, 128>}, {pipeline_mode = #tpu.pipeline_mode<synchronous>, transform_indices = @transform_1, window_bounds = array<i64: 64, 64>}, {pipeline_mode = #tpu.pipeline_mode<synchronous>, transform_indices = @transform_2, window_bounds = array<i64: 4, 64>}, {pipeline_mode = #tpu.pipeline_mode<synchronous>, transform_indices = @transform_3, window_bounds = array<i64: 1, 128>}, {pipeline_mode = #tpu.pipeline_mode<synchronous>, transform_indices = @transform_4, window_bounds = array<i64: 1, 128>}, {transform_indices = @transform_5, window_bounds = array<i64: 1, 128, 384>}, {transform_indices = @transform_6, window_bounds = array<i64: 1, 1, 384>}, {transform_indices = @transform_7, window_bounds = array<i64: 1, 128, 128>}, {transform_indices = @transform_8, window_bounds = array<i64: 1, 1, 128>}, {transform_indices = @transform_9, window_bounds = array<i64: 1, 1, 128>}, {transform_indices = @transform_10, window_bounds = array<i64: 1, 1, 128>}, {transform_indices = @transform_11, window_bounds = array<i64: 1, 128, 512>}, {transform_indices = @transform_12, window_bounds = array<i64: 1, 1, 512>}, {transform_indices = @transform_13, window_bounds = array<i64: 1, 512, 128>}, {transform_indices = @transform_14, window_bounds = array<i64: 1, 1, 128>}, {transform_indices = @transform_15, window_bounds = array<i64: 1, 1, 128>}, {transform_indices = @transform_16, window_bounds = array<i64: 1, 1, 128>}, {pipeline_mode = #tpu.pipeline_mode<synchronous>, transform_indices = @transform_17, window_bounds = array<i64: 128, 128>}, {pipeline_mode = #tpu.pipeline_mode<synchronous>, transform_indices = @transform_18, window_bounds = array<i64: 1, 128>}, {pipeline_mode = #tpu.pipeline_mode<synchronous>, transform_indices = @transform_19, window_bounds = array<i64: 128, 64>}, {pipeline_mode = #tpu.pipeline_mode<synchronous>, transform_indices = @transform_20, window_bounds = array<i64: 1, 64>}, {pipeline_mode = #tpu.pipeline_mode<synchronous>, transform_indices = @transform_21, window_bounds = array<i64: 128, 2>}, {pipeline_mode = #tpu.pipeline_mode<synchronous>, transform_indices = @transform_22, window_bounds = array<i64: 64, 2>}, {pipeline_mode = #tpu.pipeline_mode<synchronous>, transform_indices = @transform_23, window_bounds = array<i64: 1, 2>}, {pipeline_mode = #tpu.pipeline_mode<synchronous>, transform_indices = @transform_24, window_bounds = array<i64: 2, 2>}]} {
    %c0_i32 = arith.constant 0 : i32
    %0 = arith.cmpi eq, %arg0, %c0_i32 : i32
    %1 = arith.extui %0 : i1 to i32
    %c0_i32_0 = arith.constant 0 : i32
    %2 = arith.cmpi ne, %1, %c0_i32_0 : i32
    scf.if %2 {
      %c0_76 = arith.constant 0 : index
      %c0_77 = arith.constant 0 : index
      %188 = vector.load %arg1[%c0_76, %c0_77] : memref<64x128xf32, #tpu.memory_space<vmem>>, vector<64x128xf32>
      %c0_78 = arith.constant 0 : index
      %c0_79 = arith.constant 0 : index
      %189 = vector.load %arg4[%c0_78, %c0_79] : memref<1x128xf32, #tpu.memory_space<vmem>>, vector<1x128xf32>
      %c0_80 = arith.constant 0 : index
      %c0_81 = arith.constant 0 : index
      %190 = vector.load %arg5[%c0_80, %c0_81] : memref<1x128xf32, #tpu.memory_space<vmem>>, vector<1x128xf32>
      %cst_82 = arith.constant dense<0.000000e+00> : vector<64xf32>
      %191 = vector.multi_reduction <add>, %188, %cst_82 [1] : vector<64x128xf32> to vector<64xf32>
      %192 = vector.shape_cast %191 : vector<64xf32> to vector<64x1xf32>
      %cst_83 = arith.constant 1.280000e+02 : f32
      %193 = vector.broadcast %cst_83 : f32 to vector<64x1xf32>
      %194 = arith.divf %192, %193 : vector<64x1xf32>
      %195 = vector.broadcast %194 : vector<64x1xf32> to vector<64x128xf32>
      %196 = arith.subf %188, %195 : vector<64x128xf32>
      %197 = arith.mulf %196, %196 : vector<64x128xf32>
      %cst_84 = arith.constant dense<0.000000e+00> : vector<64xf32>
      %198 = vector.multi_reduction <add>, %197, %cst_84 [1] : vector<64x128xf32> to vector<64xf32>
      %199 = vector.shape_cast %198 : vector<64xf32> to vector<64x1xf32>
      %cst_85 = arith.constant 1.280000e+02 : f32
      %200 = vector.broadcast %cst_85 : f32 to vector<64x1xf32>
      %201 = arith.divf %199, %200 : vector<64x1xf32>
      %cst_86 = arith.constant 9.99999996E-13 : f32
      %202 = vector.broadcast %cst_86 : f32 to vector<64x1xf32>
      %203 = arith.addf %201, %202 : vector<64x1xf32>
      %204 = math.rsqrt %203 : vector<64x1xf32>
      %205 = vector.broadcast %204 : vector<64x1xf32> to vector<64x128xf32>
      %206 = arith.mulf %196, %205 : vector<64x128xf32>
      %207 = vector.broadcast %189 : vector<1x128xf32> to vector<64x128xf32>
      %208 = arith.mulf %206, %207 : vector<64x128xf32>
      %209 = vector.broadcast %190 : vector<1x128xf32> to vector<64x128xf32>
      %210 = arith.addf %208, %209 : vector<64x128xf32>
      %c0_87 = arith.constant 0 : index
      %c0_88 = arith.constant 0 : index
      %211 = vector.load %arg26[%c0_87, %c0_88] : memref<64x128xf32, #tpu.memory_space<vmem>>, vector<64x128xf32>
      tpu.vector_store %arg26[%c0_87, %c0_88], %210 {strides = array<i32>} : memref<64x128xf32, #tpu.memory_space<vmem>>, vector<64x128xf32>,
    } else {
    }
    %c0 = arith.constant 0 : index
    %c0_1 = arith.constant 0 : index
    %3 = vector.load %arg26[%c0, %c0_1] : memref<64x128xf32, #tpu.memory_space<vmem>>, vector<64x128xf32>
    %4 = arith.truncf %3 : vector<64x128xf32> to vector<64x128xbf16>
    %c0_2 = arith.constant 0 : index
    %c0_3 = arith.constant 0 : index
    %c0_4 = arith.constant 0 : index
    %5 = vector.load %arg6[%c0_2, %c0_3, %c0_4] : memref<1x128x384xbf16, #tpu.memory_space<vmem>>, vector<1x128x384xbf16>
    %6 = vector.shape_cast %5 : vector<1x128x384xbf16> to vector<128x384xbf16>
    %cst = arith.constant dense<0.000000e+00> : vector<64x384xf32>
    %7 = tpu.matmul %4, %6, %cst {dimension_numbers = #tpu.dot_dimension_numbers<[1], [0], [0], [1], [0, 0, 1, 1], [], []>} : vector<64x128xbf16>, vector<128x384xbf16>, vector<64x384xf32> -> vector<64x384xf32>
    %c0_5 = arith.constant 0 : index
    %c0_6 = arith.constant 0 : index
    %c0_7 = arith.constant 0 : index
    %8 = vector.load %arg7[%c0_5, %c0_6, %c0_7] : memref<1x1x384xf32, #tpu.memory_space<vmem>>, vector<1x1x384xf32>
    %9 = vector.shape_cast %8 : vector<1x1x384xf32> to vector<1x384xf32>
    %10 = vector.broadcast %9 : vector<1x384xf32> to vector<64x384xf32>
    %11 = arith.addf %7, %10 : vector<64x384xf32>
    %12 = vector.extract_strided_slice %11 {offsets = [0, 0], sizes = [64, 128], strides = [1, 1]} : vector<64x384xf32> to vector<64x128xf32>
    %13 = vector.extract_strided_slice %11 {offsets = [0, 128], sizes = [64, 128], strides = [1, 1]} : vector<64x384xf32> to vector<64x128xf32>
    %14 = vector.extract_strided_slice %11 {offsets = [0, 256], sizes = [64, 128], strides = [1, 1]} : vector<64x384xf32> to vector<64x128xf32>
    %c0_8 = arith.constant 0 : index
    %c0_9 = arith.constant 0 : index
    %15 = vector.load %arg2[%c0_8, %c0_9] : memref<64x64xf32, #tpu.memory_space<vmem>>, vector<64x64xf32>
    %16 = vector.extract_strided_slice %12 {offsets = [0, 0], sizes = [64, 32], strides = [1, 1]} : vector<64x128xf32> to vector<64x32xf32>
    %17 = arith.truncf %16 : vector<64x32xf32> to vector<64x32xbf16>
    %18 = vector.extract_strided_slice %13 {offsets = [0, 0], sizes = [64, 32], strides = [1, 1]} : vector<64x128xf32> to vector<64x32xf32>
    %19 = arith.truncf %18 : vector<64x32xf32> to vector<64x32xbf16>
    %20 = vector.extract_strided_slice %14 {offsets = [0, 0], sizes = [64, 32], strides = [1, 1]} : vector<64x128xf32> to vector<64x32xf32>
    %21 = arith.truncf %20 : vector<64x32xf32> to vector<64x32xbf16>
    %cst_10 = arith.constant dense<0.000000e+00> : vector<64x64xf32>
    %22 = tpu.matmul %17, %19, %cst_10 {dimension_numbers = #tpu.dot_dimension_numbers<[1], [1], [0], [0], [0, 0, 1, 0], [], []>} : vector<64x32xbf16>, vector<64x32xbf16>, vector<64x64xf32> -> vector<64x64xf32>
    %23 = arith.addf %22, %15 : vector<64x64xf32>
    %cst_11 = arith.constant dense<0xFF800000> : vector<64xf32>
    %24 = vector.multi_reduction <maximumf>, %23, %cst_11 [1] : vector<64x64xf32> to vector<64xf32>
    %25 = vector.shape_cast %24 : vector<64xf32> to vector<64x1xf32>
    %26 = vector.broadcast %25 : vector<64x1xf32> to vector<64x64xf32>
    %27 = arith.subf %23, %26 : vector<64x64xf32>
    %28 = math.exp %27 : vector<64x64xf32>
    %cst_12 = arith.constant dense<0.000000e+00> : vector<64xf32>
    %29 = vector.multi_reduction <add>, %28, %cst_12 [1] : vector<64x64xf32> to vector<64xf32>
    %30 = vector.shape_cast %29 : vector<64xf32> to vector<64x1xf32>
    %31 = tpu.reciprocal %30 {approx = true} : vector<64x1xf32> -> vector<64x1xf32>
    %32 = vector.broadcast %31 : vector<64x1xf32> to vector<64x64xf32>
    %33 = arith.mulf %28, %32 : vector<64x64xf32>
    %34 = arith.truncf %33 : vector<64x64xf32> to vector<64x64xbf16>
    %cst_13 = arith.constant dense<0.000000e+00> : vector<64x32xf32>
    %35 = tpu.matmul %34, %21, %cst_13 {dimension_numbers = #tpu.dot_dimension_numbers<[1], [0], [0], [1], [0, 0, 1, 1], [], []>} : vector<64x64xbf16>, vector<64x32xbf16>, vector<64x32xf32> -> vector<64x32xf32>
    %36 = vector.extract_strided_slice %12 {offsets = [0, 32], sizes = [64, 32], strides = [1, 1]} : vector<64x128xf32> to vector<64x32xf32>
    %37 = arith.truncf %36 : vector<64x32xf32> to vector<64x32xbf16>
    %38 = vector.extract_strided_slice %13 {offsets = [0, 32], sizes = [64, 32], strides = [1, 1]} : vector<64x128xf32> to vector<64x32xf32>
    %39 = arith.truncf %38 : vector<64x32xf32> to vector<64x32xbf16>
    %40 = vector.extract_strided_slice %14 {offsets = [0, 32], sizes = [64, 32], strides = [1, 1]} : vector<64x128xf32> to vector<64x32xf32>
    %41 = arith.truncf %40 : vector<64x32xf32> to vector<64x32xbf16>
    %cst_14 = arith.constant dense<0.000000e+00> : vector<64x64xf32>
    %42 = tpu.matmul %37, %39, %cst_14 {dimension_numbers = #tpu.dot_dimension_numbers<[1], [1], [0], [0], [0, 0, 1, 0], [], []>} : vector<64x32xbf16>, vector<64x32xbf16>, vector<64x64xf32> -> vector<64x64xf32>
    %43 = arith.addf %42, %15 : vector<64x64xf32>
    %cst_15 = arith.constant dense<0xFF800000> : vector<64xf32>
    %44 = vector.multi_reduction <maximumf>, %43, %cst_15 [1] : vector<64x64xf32> to vector<64xf32>
    %45 = vector.shape_cast %44 : vector<64xf32> to vector<64x1xf32>
    %46 = vector.broadcast %45 : vector<64x1xf32> to vector<64x64xf32>
    %47 = arith.subf %43, %46 : vector<64x64xf32>
    %48 = math.exp %47 : vector<64x64xf32>
    %cst_16 = arith.constant dense<0.000000e+00> : vector<64xf32>
    %49 = vector.multi_reduction <add>, %48, %cst_16 [1] : vector<64x64xf32> to vector<64xf32>
    %50 = vector.shape_cast %49 : vector<64xf32> to vector<64x1xf32>
    %51 = tpu.reciprocal %50 {approx = true} : vector<64x1xf32> -> vector<64x1xf32>
    %52 = vector.broadcast %51 : vector<64x1xf32> to vector<64x64xf32>
    %53 = arith.mulf %48, %52 : vector<64x64xf32>
    %54 = arith.truncf %53 : vector<64x64xf32> to vector<64x64xbf16>
    %cst_17 = arith.constant dense<0.000000e+00> : vector<64x32xf32>
    %55 = tpu.matmul %54, %41, %cst_17 {dimension_numbers = #tpu.dot_dimension_numbers<[1], [0], [0], [1], [0, 0, 1, 1], [], []>} : vector<64x64xbf16>, vector<64x32xbf16>, vector<64x32xf32> -> vector<64x32xf32>
    %56 = vector.extract_strided_slice %12 {offsets = [0, 64], sizes = [64, 32], strides = [1, 1]} : vector<64x128xf32> to vector<64x32xf32>
    %57 = arith.truncf %56 : vector<64x32xf32> to vector<64x32xbf16>
    %58 = vector.extract_strided_slice %13 {offsets = [0, 64], sizes = [64, 32], strides = [1, 1]} : vector<64x128xf32> to vector<64x32xf32>
    %59 = arith.truncf %58 : vector<64x32xf32> to vector<64x32xbf16>
    %60 = vector.extract_strided_slice %14 {offsets = [0, 64], sizes = [64, 32], strides = [1, 1]} : vector<64x128xf32> to vector<64x32xf32>
    %61 = arith.truncf %60 : vector<64x32xf32> to vector<64x32xbf16>
    %cst_18 = arith.constant dense<0.000000e+00> : vector<64x64xf32>
    %62 = tpu.matmul %57, %59, %cst_18 {dimension_numbers = #tpu.dot_dimension_numbers<[1], [1], [0], [0], [0, 0, 1, 0], [], []>} : vector<64x32xbf16>, vector<64x32xbf16>, vector<64x64xf32> -> vector<64x64xf32>
    %63 = arith.addf %62, %15 : vector<64x64xf32>
    %cst_19 = arith.constant dense<0xFF800000> : vector<64xf32>
    %64 = vector.multi_reduction <maximumf>, %63, %cst_19 [1] : vector<64x64xf32> to vector<64xf32>
    %65 = vector.shape_cast %64 : vector<64xf32> to vector<64x1xf32>
    %66 = vector.broadcast %65 : vector<64x1xf32> to vector<64x64xf32>
    %67 = arith.subf %63, %66 : vector<64x64xf32>
    %68 = math.exp %67 : vector<64x64xf32>
    %cst_20 = arith.constant dense<0.000000e+00> : vector<64xf32>
    %69 = vector.multi_reduction <add>, %68, %cst_20 [1] : vector<64x64xf32> to vector<64xf32>
    %70 = vector.shape_cast %69 : vector<64xf32> to vector<64x1xf32>
    %71 = tpu.reciprocal %70 {approx = true} : vector<64x1xf32> -> vector<64x1xf32>
    %72 = vector.broadcast %71 : vector<64x1xf32> to vector<64x64xf32>
    %73 = arith.mulf %68, %72 : vector<64x64xf32>
    %74 = arith.truncf %73 : vector<64x64xf32> to vector<64x64xbf16>
    %cst_21 = arith.constant dense<0.000000e+00> : vector<64x32xf32>
    %75 = tpu.matmul %74, %61, %cst_21 {dimension_numbers = #tpu.dot_dimension_numbers<[1], [0], [0], [1], [0, 0, 1, 1], [], []>} : vector<64x64xbf16>, vector<64x32xbf16>, vector<64x32xf32> -> vector<64x32xf32>
    %76 = vector.extract_strided_slice %12 {offsets = [0, 96], sizes = [64, 32], strides = [1, 1]} : vector<64x128xf32> to vector<64x32xf32>
    %77 = arith.truncf %76 : vector<64x32xf32> to vector<64x32xbf16>
    %78 = vector.extract_strided_slice %13 {offsets = [0, 96], sizes = [64, 32], strides = [1, 1]} : vector<64x128xf32> to vector<64x32xf32>
    %79 = arith.truncf %78 : vector<64x32xf32> to vector<64x32xbf16>
    %80 = vector.extract_strided_slice %14 {offsets = [0, 96], sizes = [64, 32], strides = [1, 1]} : vector<64x128xf32> to vector<64x32xf32>
    %81 = arith.truncf %80 : vector<64x32xf32> to vector<64x32xbf16>
    %cst_22 = arith.constant dense<0.000000e+00> : vector<64x64xf32>
    %82 = tpu.matmul %77, %79, %cst_22 {dimension_numbers = #tpu.dot_dimension_numbers<[1], [1], [0], [0], [0, 0, 1, 0], [], []>} : vector<64x32xbf16>, vector<64x32xbf16>, vector<64x64xf32> -> vector<64x64xf32>
    %83 = arith.addf %82, %15 : vector<64x64xf32>
    %cst_23 = arith.constant dense<0xFF800000> : vector<64xf32>
    %84 = vector.multi_reduction <maximumf>, %83, %cst_23 [1] : vector<64x64xf32> to vector<64xf32>
    %85 = vector.shape_cast %84 : vector<64xf32> to vector<64x1xf32>
    %86 = vector.broadcast %85 : vector<64x1xf32> to vector<64x64xf32>
    %87 = arith.subf %83, %86 : vector<64x64xf32>
    %88 = math.exp %87 : vector<64x64xf32>
    %cst_24 = arith.constant dense<0.000000e+00> : vector<64xf32>
    %89 = vector.multi_reduction <add>, %88, %cst_24 [1] : vector<64x64xf32> to vector<64xf32>
    %90 = vector.shape_cast %89 : vector<64xf32> to vector<64x1xf32>
    %91 = tpu.reciprocal %90 {approx = true} : vector<64x1xf32> -> vector<64x1xf32>
    %92 = vector.broadcast %91 : vector<64x1xf32> to vector<64x64xf32>
    %93 = arith.mulf %88, %92 : vector<64x64xf32>
    %94 = arith.truncf %93 : vector<64x64xf32> to vector<64x64xbf16>
    %cst_25 = arith.constant dense<0.000000e+00> : vector<64x32xf32>
    %95 = tpu.matmul %94, %81, %cst_25 {dimension_numbers = #tpu.dot_dimension_numbers<[1], [0], [0], [1], [0, 0, 1, 1], [], []>} : vector<64x64xbf16>, vector<64x32xbf16>, vector<64x32xf32> -> vector<64x32xf32>
    %96 = tpu.concatenate %35, %55, %75, %95 in 1 : vector<64x32xf32>, vector<64x32xf32>, vector<64x32xf32>, vector<64x32xf32> -> vector<64x128xf32>
    %97 = arith.truncf %96 : vector<64x128xf32> to vector<64x128xbf16>
    %c0_26 = arith.constant 0 : index
    %c0_27 = arith.constant 0 : index
    %c0_28 = arith.constant 0 : index
    %98 = vector.load %arg8[%c0_26, %c0_27, %c0_28] : memref<1x128x128xbf16, #tpu.memory_space<vmem>>, vector<1x128x128xbf16>
    %99 = vector.shape_cast %98 : vector<1x128x128xbf16> to vector<128x128xbf16>
    %cst_29 = arith.constant dense<0.000000e+00> : vector<64x128xf32>
    %100 = tpu.matmul %97, %99, %cst_29 {dimension_numbers = #tpu.dot_dimension_numbers<[1], [0], [0], [1], [0, 0, 1, 1], [], []>} : vector<64x128xbf16>, vector<128x128xbf16>, vector<64x128xf32> -> vector<64x128xf32>
    %c0_30 = arith.constant 0 : index
    %c0_31 = arith.constant 0 : index
    %c0_32 = arith.constant 0 : index
    %101 = vector.load %arg9[%c0_30, %c0_31, %c0_32] : memref<1x1x128xf32, #tpu.memory_space<vmem>>, vector<1x1x128xf32>
    %102 = vector.shape_cast %101 : vector<1x1x128xf32> to vector<1x128xf32>
    %103 = vector.broadcast %102 : vector<1x128xf32> to vector<64x128xf32>
    %104 = arith.addf %100, %103 : vector<64x128xf32>
    %105 = arith.addf %104, %3 : vector<64x128xf32>
    %c0_33 = arith.constant 0 : index
    %c0_34 = arith.constant 0 : index
    %c0_35 = arith.constant 0 : index
    %106 = vector.load %arg10[%c0_33, %c0_34, %c0_35] : memref<1x1x128xf32, #tpu.memory_space<vmem>>, vector<1x1x128xf32>
    %107 = vector.shape_cast %106 : vector<1x1x128xf32> to vector<1x128xf32>
    %c0_36 = arith.constant 0 : index
    %c0_37 = arith.constant 0 : index
    %c0_38 = arith.constant 0 : index
    %108 = vector.load %arg11[%c0_36, %c0_37, %c0_38] : memref<1x1x128xf32, #tpu.memory_space<vmem>>, vector<1x1x128xf32>
    %109 = vector.shape_cast %108 : vector<1x1x128xf32> to vector<1x128xf32>
    %cst_39 = arith.constant dense<0.000000e+00> : vector<64xf32>
    %110 = vector.multi_reduction <add>, %105, %cst_39 [1] : vector<64x128xf32> to vector<64xf32>
    %111 = vector.shape_cast %110 : vector<64xf32> to vector<64x1xf32>
    %cst_40 = arith.constant 1.280000e+02 : f32
    %112 = vector.broadcast %cst_40 : f32 to vector<64x1xf32>
    %113 = arith.divf %111, %112 : vector<64x1xf32>
    %114 = vector.broadcast %113 : vector<64x1xf32> to vector<64x128xf32>
    %115 = arith.subf %105, %114 : vector<64x128xf32>
    %116 = arith.mulf %115, %115 : vector<64x128xf32>
    %cst_41 = arith.constant dense<0.000000e+00> : vector<64xf32>
    %117 = vector.multi_reduction <add>, %116, %cst_41 [1] : vector<64x128xf32> to vector<64xf32>
    %118 = vector.shape_cast %117 : vector<64xf32> to vector<64x1xf32>
    %cst_42 = arith.constant 1.280000e+02 : f32
    %119 = vector.broadcast %cst_42 : f32 to vector<64x1xf32>
    %120 = arith.divf %118, %119 : vector<64x1xf32>
    %cst_43 = arith.constant 9.99999996E-13 : f32
    %121 = vector.broadcast %cst_43 : f32 to vector<64x1xf32>
    %122 = arith.addf %120, %121 : vector<64x1xf32>
    %123 = math.rsqrt %122 : vector<64x1xf32>
    %124 = vector.broadcast %123 : vector<64x1xf32> to vector<64x128xf32>
    %125 = arith.mulf %115, %124 : vector<64x128xf32>
    %126 = vector.broadcast %107 : vector<1x128xf32> to vector<64x128xf32>
    %127 = arith.mulf %125, %126 : vector<64x128xf32>
    %128 = vector.broadcast %109 : vector<1x128xf32> to vector<64x128xf32>
    %129 = arith.addf %127, %128 : vector<64x128xf32>
    %130 = arith.truncf %129 : vector<64x128xf32> to vector<64x128xbf16>
    %c0_44 = arith.constant 0 : index
    %c0_45 = arith.constant 0 : index
    %c0_46 = arith.constant 0 : index
    %131 = vector.load %arg12[%c0_44, %c0_45, %c0_46] : memref<1x128x512xbf16, #tpu.memory_space<vmem>>, vector<1x128x512xbf16>
    %132 = vector.shape_cast %131 : vector<1x128x512xbf16> to vector<128x512xbf16>
    %cst_47 = arith.constant dense<0.000000e+00> : vector<64x512xf32>
    %133 = tpu.matmul %130, %132, %cst_47 {dimension_numbers = #tpu.dot_dimension_numbers<[1], [0], [0], [1], [0, 0, 1, 1], [], []>} : vector<64x128xbf16>, vector<128x512xbf16>, vector<64x512xf32> -> vector<64x512xf32>
    %c0_48 = arith.constant 0 : index
    %c0_49 = arith.constant 0 : index
    %c0_50 = arith.constant 0 : index
    %134 = vector.load %arg13[%c0_48, %c0_49, %c0_50] : memref<1x1x512xf32, #tpu.memory_space<vmem>>, vector<1x1x512xf32>
    %135 = vector.shape_cast %134 : vector<1x1x512xf32> to vector<1x512xf32>
    %136 = vector.broadcast %135 : vector<1x512xf32> to vector<64x512xf32>
    %137 = arith.addf %133, %136 : vector<64x512xf32>
    %cst_51 = arith.constant 5.000000e-01 : f32
    %138 = vector.broadcast %cst_51 : f32 to vector<64x512xf32>
    %139 = arith.mulf %138, %137 : vector<64x512xf32>
    %cst_52 = arith.constant 4.471500e-02 : f32
    %140 = vector.broadcast %cst_52 : f32 to vector<64x512xf32>
    %141 = arith.mulf %140, %137 : vector<64x512xf32>
    %142 = arith.mulf %141, %137 : vector<64x512xf32>
    %143 = arith.mulf %142, %137 : vector<64x512xf32>
    %144 = arith.addf %137, %143 : vector<64x512xf32>
    %cst_53 = arith.constant 0.797884583 : f32
    %145 = vector.broadcast %cst_53 : f32 to vector<64x512xf32>
    %146 = arith.mulf %145, %144 : vector<64x512xf32>
    %147 = math.tanh %146 : vector<64x512xf32>
    %cst_54 = arith.constant 1.000000e+00 : f32
    %148 = vector.broadcast %cst_54 : f32 to vector<64x512xf32>
    %149 = arith.addf %148, %147 : vector<64x512xf32>
    %150 = arith.mulf %139, %149 : vector<64x512xf32>
    %151 = arith.truncf %150 : vector<64x512xf32> to vector<64x512xbf16>
    %c0_55 = arith.constant 0 : index
    %c0_56 = arith.constant 0 : index
    %c0_57 = arith.constant 0 : index
    %152 = vector.load %arg14[%c0_55, %c0_56, %c0_57] : memref<1x512x128xbf16, #tpu.memory_space<vmem>>, vector<1x512x128xbf16>
    %153 = vector.shape_cast %152 : vector<1x512x128xbf16> to vector<512x128xbf16>
    %cst_58 = arith.constant dense<0.000000e+00> : vector<64x128xf32>
    %154 = tpu.matmul %151, %153, %cst_58 {dimension_numbers = #tpu.dot_dimension_numbers<[1], [0], [0], [1], [0, 0, 1, 1], [], []>} : vector<64x512xbf16>, vector<512x128xbf16>, vector<64x128xf32> -> vector<64x128xf32>
    %c0_59 = arith.constant 0 : index
    %c0_60 = arith.constant 0 : index
    %c0_61 = arith.constant 0 : index
    %155 = vector.load %arg15[%c0_59, %c0_60, %c0_61] : memref<1x1x128xf32, #tpu.memory_space<vmem>>, vector<1x1x128xf32>
    %156 = vector.shape_cast %155 : vector<1x1x128xf32> to vector<1x128xf32>
    %157 = vector.broadcast %156 : vector<1x128xf32> to vector<64x128xf32>
    %158 = arith.addf %154, %157 : vector<64x128xf32>
    %159 = arith.addf %158, %129 : vector<64x128xf32>
    %c0_62 = arith.constant 0 : index
    %c0_63 = arith.constant 0 : index
    %c0_64 = arith.constant 0 : index
    %160 = vector.load %arg16[%c0_62, %c0_63, %c0_64] : memref<1x1x128xf32, #tpu.memory_space<vmem>>, vector<1x1x128xf32>
    %161 = vector.shape_cast %160 : vector<1x1x128xf32> to vector<1x128xf32>
    %c0_65 = arith.constant 0 : index
    %c0_66 = arith.constant 0 : index
    %c0_67 = arith.constant 0 : index
    %162 = vector.load %arg17[%c0_65, %c0_66, %c0_67] : memref<1x1x128xf32, #tpu.memory_space<vmem>>, vector<1x1x128xf32>
    %163 = vector.shape_cast %162 : vector<1x1x128xf32> to vector<1x128xf32>
    %cst_68 = arith.constant dense<0.000000e+00> : vector<64xf32>
    %164 = vector.multi_reduction <add>, %159, %cst_68 [1] : vector<64x128xf32> to vector<64xf32>
    %165 = vector.shape_cast %164 : vector<64xf32> to vector<64x1xf32>
    %cst_69 = arith.constant 1.280000e+02 : f32
    %166 = vector.broadcast %cst_69 : f32 to vector<64x1xf32>
    %167 = arith.divf %165, %166 : vector<64x1xf32>
    %168 = vector.broadcast %167 : vector<64x1xf32> to vector<64x128xf32>
    %169 = arith.subf %159, %168 : vector<64x128xf32>
    %170 = arith.mulf %169, %169 : vector<64x128xf32>
    %cst_70 = arith.constant dense<0.000000e+00> : vector<64xf32>
    %171 = vector.multi_reduction <add>, %170, %cst_70 [1] : vector<64x128xf32> to vector<64xf32>
    %172 = vector.shape_cast %171 : vector<64xf32> to vector<64x1xf32>
    %cst_71 = arith.constant 1.280000e+02 : f32
    %173 = vector.broadcast %cst_71 : f32 to vector<64x1xf32>
    %174 = arith.divf %172, %173 : vector<64x1xf32>
    %cst_72 = arith.constant 9.99999996E-13 : f32
    %175 = vector.broadcast %cst_72 : f32 to vector<64x1xf32>
    %176 = arith.addf %174, %175 : vector<64x1xf32>
    %177 = math.rsqrt %176 : vector<64x1xf32>
    %178 = vector.broadcast %177 : vector<64x1xf32> to vector<64x128xf32>
    %179 = arith.mulf %169, %178 : vector<64x128xf32>
    %180 = vector.broadcast %161 : vector<1x128xf32> to vector<64x128xf32>
    %181 = arith.mulf %179, %180 : vector<64x128xf32>
    %182 = vector.broadcast %163 : vector<1x128xf32> to vector<64x128xf32>
    %183 = arith.addf %181, %182 : vector<64x128xf32>
    %c0_73 = arith.constant 0 : index
    %c0_74 = arith.constant 0 : index
    %184 = vector.load %arg26[%c0_73, %c0_74] : memref<64x128xf32, #tpu.memory_space<vmem>>, vector<64x128xf32>
    tpu.vector_store %arg26[%c0_73, %c0_74], %183 {strides = array<i32>} : memref<64x128xf32, #tpu.memory_space<vmem>>, vector<64x128xf32>,
    %c1_i32 = arith.constant 1 : i32
    %185 = arith.cmpi eq, %arg0, %c1_i32 : i32
    %186 = arith.extui %185 : i1 to i32
    %c0_i32_75 = arith.constant 0 : i32
    %187 = arith.cmpi ne, %186, %c0_i32_75 : i32
    scf.if %187 {
      %c0_76 = arith.constant 0 : index
      %c0_77 = arith.constant 0 : index
      %188 = vector.load %arg3[%c0_76, %c0_77] : memref<4x64xf32, #tpu.memory_space<vmem>>, vector<4x64xf32>
      %cst_78 = arith.constant dense<0.000000e+00> : vector<4x128xf32>
      %189 = tpu.matmul %188, %183, %cst_78 {dimension_numbers = #tpu.dot_dimension_numbers<[1], [0], [0], [1], [0, 0, 1, 1], [], []>} : vector<4x64xf32>, vector<64x128xf32>, vector<4x128xf32> -> vector<4x128xf32>
      %190 = arith.truncf %189 : vector<4x128xf32> to vector<4x128xbf16>
      %c0_79 = arith.constant 0 : index
      %c0_80 = arith.constant 0 : index
      %191 = vector.load %arg18[%c0_79, %c0_80] : memref<128x128xbf16, #tpu.memory_space<vmem>>, vector<128x128xbf16>
      %cst_81 = arith.constant dense<0.000000e+00> : vector<4x128xf32>
      %192 = tpu.matmul %190, %191, %cst_81 {dimension_numbers = #tpu.dot_dimension_numbers<[1], [0], [0], [1], [0, 0, 1, 1], [], []>} : vector<4x128xbf16>, vector<128x128xbf16>, vector<4x128xf32> -> vector<4x128xf32>
      %c0_82 = arith.constant 0 : index
      %c0_83 = arith.constant 0 : index
      %193 = vector.load %arg19[%c0_82, %c0_83] : memref<1x128xf32, #tpu.memory_space<vmem>>, vector<1x128xf32>
      %194 = vector.broadcast %193 : vector<1x128xf32> to vector<4x128xf32>
      %195 = arith.addf %192, %194 : vector<4x128xf32>
      %196 = math.tanh %195 : vector<4x128xf32>
      %197 = vector.extract_strided_slice %196 {offsets = [0, 0], sizes = [2, 128], strides = [1, 1]} : vector<4x128xf32> to vector<2x128xf32>
      %198 = vector.extract_strided_slice %196 {offsets = [2, 0], sizes = [2, 128], strides = [1, 1]} : vector<4x128xf32> to vector<2x128xf32>
      %199 = arith.truncf %198 : vector<2x128xf32> to vector<2x128xbf16>
      %c0_84 = arith.constant 0 : index
      %c0_85 = arith.constant 0 : index
      %200 = vector.load %arg20[%c0_84, %c0_85] : memref<128x64xbf16, #tpu.memory_space<vmem>>, vector<128x64xbf16>
      %cst_86 = arith.constant dense<0.000000e+00> : vector<2x64xf32>
      %201 = tpu.matmul %199, %200, %cst_86 {dimension_numbers = #tpu.dot_dimension_numbers<[1], [0], [0], [1], [0, 0, 1, 1], [], []>} : vector<2x128xbf16>, vector<128x64xbf16>, vector<2x64xf32> -> vector<2x64xf32>
      %c0_87 = arith.constant 0 : index
      %c0_88 = arith.constant 0 : index
      %202 = vector.load %arg21[%c0_87, %c0_88] : memref<1x64xf32, #tpu.memory_space<vmem>>, vector<1x64xf32>
      %203 = vector.broadcast %202 : vector<1x64xf32> to vector<2x64xf32>
      %204 = arith.addf %201, %203 : vector<2x64xf32>
      %205 = arith.truncf %197 : vector<2x128xf32> to vector<2x128xbf16>
      %c0_89 = arith.constant 0 : index
      %c0_90 = arith.constant 0 : index
      %206 = vector.load %arg22[%c0_89, %c0_90] : memref<128x2xbf16, #tpu.memory_space<vmem>>, vector<128x2xbf16>
      %cst_91 = arith.constant dense<0.000000e+00> : vector<2x2xf32>
      %207 = tpu.matmul %205, %206, %cst_91 {dimension_numbers = #tpu.dot_dimension_numbers<[1], [0], [0], [1], [0, 0, 1, 1], [], []>} : vector<2x128xbf16>, vector<128x2xbf16>, vector<2x2xf32> -> vector<2x2xf32>
      %208 = arith.truncf %204 : vector<2x64xf32> to vector<2x64xbf16>
      %c0_92 = arith.constant 0 : index
      %c0_93 = arith.constant 0 : index
      %209 = vector.load %arg23[%c0_92, %c0_93] : memref<64x2xbf16, #tpu.memory_space<vmem>>, vector<64x2xbf16>
      %cst_94 = arith.constant dense<0.000000e+00> : vector<2x2xf32>
      %210 = tpu.matmul %208, %209, %cst_94 {dimension_numbers = #tpu.dot_dimension_numbers<[1], [0], [0], [1], [0, 0, 1, 1], [], []>} : vector<2x64xbf16>, vector<64x2xbf16>, vector<2x2xf32> -> vector<2x2xf32>
      %211 = arith.addf %207, %210 : vector<2x2xf32>
      %c0_95 = arith.constant 0 : index
      %c0_96 = arith.constant 0 : index
      %212 = vector.load %arg24[%c0_95, %c0_96] : memref<1x2xf32, #tpu.memory_space<vmem>>, vector<1x2xf32>
      %213 = vector.broadcast %212 : vector<1x2xf32> to vector<2x2xf32>
      %214 = arith.addf %211, %213 : vector<2x2xf32>
      %c0_97 = arith.constant 0 : index
      %c0_98 = arith.constant 0 : index
      %215 = vector.load %arg25[%c0_97, %c0_98] : memref<2x2xf32, #tpu.memory_space<vmem>>, vector<2x2xf32>
      tpu.vector_store %arg25[%c0_97, %c0_98], %214 {strides = array<i32>} : memref<2x2xf32, #tpu.memory_space<vmem>>, vector<2x2xf32>,
    } else {
    }
    return
  }
  func.func @transform_0(%arg0: i32) -> (i32, i32) {
    %c0_i32 = arith.constant 0 : i32
    %c0_i32_0 = arith.constant 0 : i32
    %c0_i32_1 = arith.constant 0 : i32
    return %c0_i32, %c0_i32_0 : i32, i32
  }
  func.func @transform_1(%arg0: i32) -> (i32, i32) {
    %c0_i32 = arith.constant 0 : i32
    %c0_i32_0 = arith.constant 0 : i32
    %c0_i32_1 = arith.constant 0 : i32
    return %c0_i32, %c0_i32_0 : i32, i32
  }
  func.func @transform_2(%arg0: i32) -> (i32, i32) {
    %c0_i32 = arith.constant 0 : i32
    %c0_i32_0 = arith.constant 0 : i32
    %c0_i32_1 = arith.constant 0 : i32
    return %c0_i32, %c0_i32_0 : i32, i32
  }
  func.func @transform_3(%arg0: i32) -> (i32, i32) {
    %c0_i32 = arith.constant 0 : i32
    %c0_i32_0 = arith.constant 0 : i32
    %c0_i32_1 = arith.constant 0 : i32
    return %c0_i32, %c0_i32_0 : i32, i32
  }
  func.func @transform_4(%arg0: i32) -> (i32, i32) {
    %c0_i32 = arith.constant 0 : i32
    %c0_i32_0 = arith.constant 0 : i32
    %c0_i32_1 = arith.constant 0 : i32
    return %c0_i32, %c0_i32_0 : i32, i32
  }
  func.func @transform_5(%arg0: i32) -> (i32, i32, i32) {
    %c0_i32 = arith.constant 0 : i32
    %c0_i32_0 = arith.constant 0 : i32
    %c0_i32_1 = arith.constant 0 : i32
    return %arg0, %c0_i32, %c0_i32_0 : i32, i32, i32
  }
  func.func @transform_6(%arg0: i32) -> (i32, i32, i32) {
    %c0_i32 = arith.constant 0 : i32
    %c0_i32_0 = arith.constant 0 : i32
    %c0_i32_1 = arith.constant 0 : i32
    return %arg0, %c0_i32, %c0_i32_0 : i32, i32, i32
  }
  func.func @transform_7(%arg0: i32) -> (i32, i32, i32) {
    %c0_i32 = arith.constant 0 : i32
    %c0_i32_0 = arith.constant 0 : i32
    %c0_i32_1 = arith.constant 0 : i32
    return %arg0, %c0_i32, %c0_i32_0 : i32, i32, i32
  }
  func.func @transform_8(%arg0: i32) -> (i32, i32, i32) {
    %c0_i32 = arith.constant 0 : i32
    %c0_i32_0 = arith.constant 0 : i32
    %c0_i32_1 = arith.constant 0 : i32
    return %arg0, %c0_i32, %c0_i32_0 : i32, i32, i32
  }
  func.func @transform_9(%arg0: i32) -> (i32, i32, i32) {
    %c0_i32 = arith.constant 0 : i32
    %c0_i32_0 = arith.constant 0 : i32
    %c0_i32_1 = arith.constant 0 : i32
    return %arg0, %c0_i32, %c0_i32_0 : i32, i32, i32
  }
  func.func @transform_10(%arg0: i32) -> (i32, i32, i32) {
    %c0_i32 = arith.constant 0 : i32
    %c0_i32_0 = arith.constant 0 : i32
    %c0_i32_1 = arith.constant 0 : i32
    return %arg0, %c0_i32, %c0_i32_0 : i32, i32, i32
  }
  func.func @transform_11(%arg0: i32) -> (i32, i32, i32) {
    %c0_i32 = arith.constant 0 : i32
    %c0_i32_0 = arith.constant 0 : i32
    %c0_i32_1 = arith.constant 0 : i32
    return %arg0, %c0_i32, %c0_i32_0 : i32, i32, i32
  }
  func.func @transform_12(%arg0: i32) -> (i32, i32, i32) {
    %c0_i32 = arith.constant 0 : i32
    %c0_i32_0 = arith.constant 0 : i32
    %c0_i32_1 = arith.constant 0 : i32
    return %arg0, %c0_i32, %c0_i32_0 : i32, i32, i32
  }
  func.func @transform_13(%arg0: i32) -> (i32, i32, i32) {
    %c0_i32 = arith.constant 0 : i32
    %c0_i32_0 = arith.constant 0 : i32
    %c0_i32_1 = arith.constant 0 : i32
    return %arg0, %c0_i32, %c0_i32_0 : i32, i32, i32
  }
  func.func @transform_14(%arg0: i32) -> (i32, i32, i32) {
    %c0_i32 = arith.constant 0 : i32
    %c0_i32_0 = arith.constant 0 : i32
    %c0_i32_1 = arith.constant 0 : i32
    return %arg0, %c0_i32, %c0_i32_0 : i32, i32, i32
  }
  func.func @transform_15(%arg0: i32) -> (i32, i32, i32) {
    %c0_i32 = arith.constant 0 : i32
    %c0_i32_0 = arith.constant 0 : i32
    %c0_i32_1 = arith.constant 0 : i32
    return %arg0, %c0_i32, %c0_i32_0 : i32, i32, i32
  }
  func.func @transform_16(%arg0: i32) -> (i32, i32, i32) {
    %c0_i32 = arith.constant 0 : i32
    %c0_i32_0 = arith.constant 0 : i32
    %c0_i32_1 = arith.constant 0 : i32
    return %arg0, %c0_i32, %c0_i32_0 : i32, i32, i32
  }
  func.func @transform_17(%arg0: i32) -> (i32, i32) {
    %c0_i32 = arith.constant 0 : i32
    %c0_i32_0 = arith.constant 0 : i32
    %c0_i32_1 = arith.constant 0 : i32
    return %c0_i32, %c0_i32_0 : i32, i32
  }
  func.func @transform_18(%arg0: i32) -> (i32, i32) {
    %c0_i32 = arith.constant 0 : i32
    %c0_i32_0 = arith.constant 0 : i32
    %c0_i32_1 = arith.constant 0 : i32
    return %c0_i32, %c0_i32_0 : i32, i32
  }
  func.func @transform_19(%arg0: i32) -> (i32, i32) {
    %c0_i32 = arith.constant 0 : i32
    %c0_i32_0 = arith.constant 0 : i32
    %c0_i32_1 = arith.constant 0 : i32
    return %c0_i32, %c0_i32_0 : i32, i32
  }
  func.func @transform_20(%arg0: i32) -> (i32, i32) {
    %c0_i32 = arith.constant 0 : i32
    %c0_i32_0 = arith.constant 0 : i32
    %c0_i32_1 = arith.constant 0 : i32
    return %c0_i32, %c0_i32_0 : i32, i32
  }
  func.func @transform_21(%arg0: i32) -> (i32, i32) {
    %c0_i32 = arith.constant 0 : i32
    %c0_i32_0 = arith.constant 0 : i32
    %c0_i32_1 = arith.constant 0 : i32
    return %c0_i32, %c0_i32_0 : i32, i32
  }
  func.func @transform_22(%arg0: i32) -> (i32, i32) {
    %c0_i32 = arith.constant 0 : i32
    %c0_i32_0 = arith.constant 0 : i32
    %c0_i32_1 = arith.constant 0 : i32
    return %c0_i32, %c0_i32_0 : i32, i32
  }
  func.func @transform_23(%arg0: i32) -> (i32, i32) {
    %c0_i32 = arith.constant 0 : i32
    %c0_i32_0 = arith.constant 0 : i32
    %c0_i32_1 = arith.constant 0 : i32
    return %c0_i32, %c0_i32_0 : i32, i32
  }
  func.func @transform_24(%arg0: i32) -> (i32, i32) {
    %c0_i32 = arith.constant 0 : i32
    %c0_i32_0 = arith.constant 0 : i32
    %c0_i32_1 = arith.constant 0 : i32
    return %c0_i32, %c0_i32_0 : i32, i32
  }
}

</mosaic_0001>

<bundles_post_ra>
// kernel: specter_forward.1
= control target key start
LH: loop header
LB: loop body
LE: loop exit
PB: predicated region body
PF: predicated region fallthrough
CT: control target
= control target key end

     0   :  { %s7374_s0 = inlined_call_operand.vmem [shape: f32[64,128], index: 0, kind: input, shape index: {}]   ;;  %s7375_s1 = inlined_call_operand.vmem [shape: f32[64,64], index: 1, kind: input, shape index: {}]   ;;  %s7376_s2 = inlined_call_operand.vmem [shape: f32[4,64], index: 2, kind: input, shape index: {}]   ;;  %s7377_s3 = inlined_call_operand.vmem [shape: f32[1,128], index: 3, kind: input, shape index: {}]   ;;  %s7378_s4 = inlined_call_operand.vmem [shape: f32[1,128], index: 4, kind: input, shape index: {}]   ;;  %s7379_s5 = inlined_call_operand.hbm [shape: bf16[2,128,384], index: 5, kind: input, shape index: {}]   ;;  %s7380_s6 = inlined_call_operand.vmem [shape: f32[2,1,384], index: 6, kind: input, shape index: {}]   ;;  %s7381_s7 = inlined_call_operand.vmem [shape: bf16[2,128,128], index: 7, kind: input, shape index: {}]   ;;  %s7382_s8 = inlined_call_operand.vmem [shape: f32[2,1,128], index: 8, kind: input, shape index: {}]   ;;  %s7383_s9 = inlined_call_operand.vmem [shape: f32[2,1,128], index: 9, kind: input, shape index: {}]   ;;  %s7384_s10 = inlined_call_operand.vmem [shape: f32[2,1,128], index: 10, kind: input, shape index: {}]   ;;  %s7385_s11 = inlined_call_operand.vmem [shape: bf16[2,128,512], index: 11, kind: input, shape index: {}]   ;;  %s7386_s12 = inlined_call_operand.vmem [shape: f32[2,1,512], index: 12, kind: input, shape index: {}]   ;;  %s7387_s13 = inlined_call_operand.hbm [shape: bf16[2,512,128], index: 13, kind: input, shape index: {}]   ;;  %s7388_s14 = inlined_call_operand.vmem [shape: f32[2,1,128], index: 14, kind: input, shape index: {}]   ;;  %s7389_s15 = inlined_call_operand.vmem [shape: f32[2,1,128], index: 15, kind: input, shape index: {}]   ;;  %s7390_s16 = inlined_call_operand.vmem [shape: f32[2,1,128], index: 16, kind: input, shape index: {}]   ;;  %s7391_s17 = inlined_call_operand.vmem [shape: bf16[128,128], index: 17, kind: input, shape index: {}]   ;;  %s7392_s18 = inlined_call_operand.vmem [shape: f32[1,128], index: 18, kind: input, shape index: {}]   ;;  %s7393_s19 = inlined_call_operand.vmem [shape: bf16[128,64], index: 19, kind: input, shape index: {}]   ;;  %s7394_s20 = inlined_call_operand.vmem [shape: f32[1,64], index: 20, kind: input, shape index: {}]   ;;  %s7395_s21 = inlined_call_operand.vmem [shape: bf16[128,2], index: 21, kind: input, shape index: {}]   ;;  %s7396_s22 = inlined_call_operand.vmem [shape: bf16[64,2], index: 22, kind: input, shape index: {}]   ;;  %s7397_s23 = inlined_call_operand.vmem [shape: f32[1,2], index: 23, kind: input, shape index: {}]   ;;  %s7398_s24 = inlined_call_operand.hbm [shape: f32[2,2], index: 24, kind: output, shape index: {}]  }
   0x1   :  { %7411 = sst [smem:[#allocation16_spill]] %s7374_s0 }
   0x2   :  { %7412 = sst [smem:[#allocation17_spill]] %s7375_s1 }
   0x3   :  { %7413 = sst [smem:[#allocation18_spill]] %s7376_s2 }
   0x4   :  { %7414 = sst [smem:[#allocation19_spill]] %s7377_s3 }
   0x5   :  { %7415 = sst [smem:[#allocation20_spill]] %s7378_s4 }
   0x6   :  { %7416 = sst [smem:[#allocation21_spill]] %s7379_s5 }
   0x7   :  { %7417 = sst [smem:[#allocation22_spill]] %s7380_s6 }
   0x8   :  { %7418 = sst [smem:[#allocation23_spill]] %s7381_s7 }
   0x9   :  { %7419 = sst [smem:[#allocation24_spill]] %s7382_s8 }
   0xa   :  { %7420 = sst [smem:[#allocation25_spill]] %s7387_s13 }
   0xb   :  { %7421 = sst [smem:[#allocation26_spill]] %s7391_s17 }
   0xc   :  { %7422 = sst [smem:[#allocation27_spill]] %s7392_s18 }
   0xd   :  { %7423 = sst [smem:[#allocation28_spill]] %s7393_s19 }
   0xe   :  { %7424 = sst [smem:[#allocation29_spill]] %s7394_s20 }
   0xf   :  { %7425 = sst [smem:[#allocation30_spill]] %s7395_s21 }
  0x10   :  { %7426 = sst [smem:[#allocation31_spill]] %s7396_s22 }
  0x11   :  { %7427 = sst [smem:[#allocation32_spill]] %s7397_s23 }
  0x12   :  { %7428 = sst [smem:[#allocation33_spill]] %s7398_s24 }
  0x13   :  { %29 = vsyncpa [#allocation4], 0 }
  0x14   :  { %31 = vsyncpa [#allocation4 + $0x1], 0 }
  0x15   :  { %32 = vsyncpa [#allocation7], 0 }
  0x16   :  { %34 = vsyncpa [#allocation7 + $0x1], 0 }
  0x17   :  { %35 = vsyncpa [#allocation5], 0  ;;  %s5756_s5 = smov 0   ;;  %s5758_s26 = smov 0  }
  0x18   :  { %s5760_s27 = smov 0   ;;  %s5762_s28 = smov 0  }
  0x19 LB: > { %7429 = sst [smem:[#allocation12_spill]] %s5611_s26  ;;  %s5775_s6 = sadd.s32 4294967295, %s5619_s28   ;;  %s5619_s28 = sphi %s5762_s28, %s7458_s28   ;;  %s5615_s27 = sphi %s5760_s27, %s7461_s27   ;;  %s5611_s26 = sphi %s5758_s26, %s7460_s26   ;;  %s5607_s5 = sphi %s5756_s5, %s7459_s5  }
  0x1a   : > { %7430 = sst [smem:[#allocation13_spill]] %s5615_s27  ;;  %s5778_s2 = sadd.s32 1, %s5619_s28  }
  0x1b   : > { %7431 = sst [smem:[#allocation14_spill]] %s5778_s2  ;;  %s150_s29 = ssub.s32 %s5619_s28, %s5778_s2 }
  0x1c   : > { %s153_s0 = sadd.s32 1, %s5615_s27  ;;  %p151_p0 = scmp.eq.s32.totalorder %s150_s29, 0 }
  0x1d   : > { %p160_p1 = scmp.ne.s32.totalorder %s5615_s27, %s5611_s26  ;;  %p161_p2 = scmp.eq.s32.totalorder %s5619_s28, 0 }
  0x1e   : > { %p166_p3 = scmp.ne.s32.totalorder %s5611_s26, %s5607_s5  ;;  %p167_p5 = scmp.eq.s32.totalorder %s5775_s6, 0 }
  0x1f   : > { %s5788_s7 = scalar_select %p151_p0, %s5615_s27, %s153_s0  }
  0x20   : > { %p162_p4 = por %p161_p2, %p160_p1  ;;  %p5119_p6 = scmp.lt.s32.totalorder %s5619_s28, 2 }
  0x21   : > { %7432 = sst [smem:[#allocation15_spill]] %s5788_s7  ;;  %p5792_p7 = por %p167_p5, %p166_p3 }
  0x22   : > { %s5797_s3 = sand.u32 1, %s5615_s27   ;;  %s5101_s8 = smul.u32 192, %s5619_s28 }
  0x23   : > { %s5100_s25 = smul.u32 192, %s5797_s3  ;;  %p5801_p8 = pnand %p5119_p6, %p162_p4 }
  0x24   : > { %s7435_s29 = sld [smem:[#allocation21_spill]]  ;;  %p4430_p9 = scmp.ge.s32.totalorder %s5619_s28, 1 }
  0x25   : > { %s684_s7 = scalar_lea.vmem [#allocation3], %s5100_s25  ;;  %s681_s27 = scalar_lea.sflag [#allocation4], %s5797_s3 }
  0x26   : > { %s692_s2 = sshll.u32 %s684_s7, 4  ;;  %p5493_p11 = pneg %p5801_p8  ;;  %s693_s2 = int_to_ptr.vmem [resolvable:$true] %s692_s2 }
  0x2a   : > { %s689_s0 = scalar_lea.hbm %s7435_s29, %s5101_s8  ;;  %s5496_s25 = scalar_lea.hbm %s7435_s29, 384 }
  0x2b   : > { %s690_s24 = sshll.u32 %s689_s0, 4  ;;  %s691_s24 = int_to_ptr.hbm [resolvable:$true] %s690_s24 }
  0x2c   : > { %s5489_s23 = sshra.s32 %s691_s24, 4  ;;  %s5490_s23 = int_to_ptr.hbm [resolvable:$true] %s5489_s23 }
  0x2d   : > { %s5491_s20 = scalar_lea.hbm %s5490_s23, 192  ;;  %p5497_p0 = scmp.lt.s32.totalorder %s5490_s23, %s7435_s29 }
  0x2e   : > { %p5492_p10 = scmp.ne.s32.totalorder %s5490_s23, %s5491_s20  ;;  %p5498_p1 = scmp.lt.s32.totalorder %s5496_s25, %s5491_s20 }
  0x30   : > { %p5494_p12 = pnand %p5493_p11, %p5492_p10  ;;  %p5499_p2 = por %p5498_p1, %p5497_p0 }
  0x32   : > { %p5495_p13 = pneg %p5494_p12 }
  0x34   : > { %p5500_p3 = pnand %p5499_p2, %p5495_p13 }
  0x36   : > { %5503 = shalt.err (!%p5500_p3)
}
  0x37   : > { %s5621_s0 = smov 192   ;;  %s5622_s18 = smov 12  }
  0x38   : > { %5115 = dma.hbm_to_vmem [thread:$0]  (!%p5801_p8), %s691_s24, 3072, %s693_s2, %s681_s27, %s5621_s0, %s5621_s0, %s5622_s18  }
  0x39   : > { %p788_p4 = scmp.lt.s32.totalorder %s5619_s28, 3  ;;  %s4427_s1 = sshll.u32 %s5797_s3, 8 }
  0x3a   : > { %s4973_s5 = sshll.u32 %s5619_s28, 8  ;;  %s7437_s13 = sld [smem:[#allocation25_spill]] }
  0x3b   : > { %p5828_p5 = pnand %p4430_p9, %p788_p4  ;;  %s754_s8 = scalar_lea.vmem [#allocation6], %s4427_s1 }
  0x3c   : > { %s762_s29 = sshll.u32 %s754_s8, 4  ;;  %s751_s19 = scalar_lea.sflag [#allocation7], %s5797_s3  ;;  %s763_s29 = int_to_ptr.vmem [resolvable:$true] %s762_s29 }
  0x40   : > { %s759_s7 = scalar_lea.hbm %s7437_s13, %s4973_s5  ;;  %s5526_s2 = scalar_lea.hbm %s7437_s13, 512 }
  0x41   : > { %s760_s22 = sshll.u32 %s759_s7, 4  ;;  %s761_s22 = int_to_ptr.hbm [resolvable:$true] %s760_s22 }
  0x42   : > { %s5519_s18 = sshra.s32 %s761_s22, 4  ;;  %s5520_s18 = int_to_ptr.hbm [resolvable:$true] %s5519_s18 }
  0x43   : > { %s5521_s24 = scalar_lea.hbm %s5520_s18, 256  ;;  %p5527_p12 = scmp.lt.s32.totalorder %s5520_s18, %s7437_s13 }
  0x44   : > { %p5522_p6 = scmp.ne.s32.totalorder %s5520_s18, %s5521_s24  ;;  %p5528_p13 = scmp.lt.s32.totalorder %s5526_s2, %s5521_s24 }
  0x46   : > { %p5524_p9 = pnand %p5522_p6, %p5493_p11  ;;  %p5529_p0 = por %p5528_p13, %p5527_p12 }
  0x48   : > { %p5525_p10 = pneg %p5524_p9 }
  0x4a   : > { %p5530_p1 = pnand %p5529_p0, %p5525_p10 }
  0x4c   : > { %5533 = shalt.err (!%p5530_p1)
}
  0x4d   : > { %s5623_s3 = smov 64   ;;  %s5624_s1 = smov 4  }
  0x4e   : > { %5118 = dma.hbm_to_vmem [thread:$0]  (!%p5801_p8), %s761_s22, 4096, %s763_s29, %s751_s19, %s5623_s3, %s5623_s3, %s5624_s1  }
  0x4f   : > { %792 = sbr.rel (%p5828_p5) target bundleno = 3267 (0xcc3), region = 116  ;;  %s794_s23 = sand.u32 (!%p5828_p5), 1, %s5611_s26  }
  0x50   : > { %s5102_s25 = smul.u32 (!%p5828_p5), 192, %s794_s23  ;;  %s795_s7 = scalar_lea.sflag (!%p5828_p5), [#allocation4], %s794_s23 }
  0x52   : > { %s5850_s8 = scalar_lea.vmem (!%p5828_p5), [#allocation3], %s5102_s25 }
  0x54   : > { %5594 = dma.done.wait (%p5792_p7), %s795_s7, 3072  }
  0x55   : > { %5596 = vsyncadd (%p5792_p7), %s795_s7, 4294964224  ;;  %s4431_s18 = sshll.u32 %s794_s23, 8  ;;  %s805_s24 = scalar_lea.sflag [#allocation7], %s794_s23 }
  0x56   : > { %s5856_s4 = scalar_lea.vmem [#allocation6], %s4431_s18 }
  0x57   : > { %5598 = dma.done.wait (%p5792_p7), %s805_s24, 4096  }
  0x58   : > { %5600 = vsyncadd (%p5792_p7), %s805_s24, 4294963200  ;;  %p910_p8 = scmp.lt.s32.totalorder %s5775_s6, 1  ;;  %s7438_s27 = sld [smem:[#allocation23_spill]] }
  0x59   : > { %s7439_s5 = sld [smem:[#allocation24_spill]]  ;;  %p4437_p7 = scmp.ne.s32.totalorder %s5775_s6, 0 }
  0x5a   : > { %s5864_s19 = scalar_select %p910_p8, %s5775_s6, 1 }
  0x5b   : > { %s7440_s25 = sld [smem:[#allocation22_spill]] }
  0x5c   : > { %s5103_s22 = smul.u32 3, %s5864_s19  ;;  %s4974_s29 = sshll.u32 %s5864_s19, 6 }
  0x5d   : > { %s924_s13 = scalar_lea.vmem %s7383_s9, %s5864_s19  ;;  %s4975_s20 = sshll.u32 %s5864_s19, 8 }
  0x5e   : > { %s5871_s28 = scalar_lea.vmem %s7438_s27, %s4974_s29  ;;  %s5894_s27 = scalar_lea.vmem %s7385_s11, %s4975_s20 }
  0x5f   : > { %s921_s3 = scalar_lea.vmem %s7439_s5, %s5864_s19  ;;  %s4436_s2 = sshll.u32 %s5864_s19, 2 }
  0x60   : > { %s942_s21 = scalar_lea.vmem %s7389_s15, %s5864_s19  ;;  %s945_s29 = scalar_lea.vmem %s7390_s16, %s5864_s19 }
  0x61   : > { %s5880_s7 = scalar_lea.vmem %s7440_s25, %s5103_s22  ;;  %s5900_s22 = scalar_lea.vmem %s7386_s12, %s4436_s2 }
  0x62   : > { %s939_s25 = scalar_lea.vmem %s7388_s14, %s5864_s19  ;;  %950 = sbr.rel (%p4437_p7) target bundleno = 398 (0x18e), region = 128 }
  0x63   : > { %s7441_s0 = sld [smem:[#allocation16_spill]] (!%p4437_p7) }
  0x64   : > { %s7442_s24 = sld [smem:[#allocation19_spill]] (!%p4437_p7) }
  0x65   : > { %s7443_s30 = sld [smem:[#allocation20_spill]] (!%p4437_p7) }
  0x67   : > { %v5625_v8 = vmov 128.0  }
  0x68   : > { %5166 = vrcp.f32 %v5625_v8 }
  0x69   : > { %v955_v0 = vld [vmem:[%s7441_s0 + $0x20] sm:$0xff]  ;;  %v953_v1 = vld [vmem:[%s7441_s0 + $0x10] sm:$0xff]  ;;  %v956_v3 = vld [vmem:[%s7441_s0 + $0x28] sm:$0xff] }
  0x6a   : > { %v951_v2 = vld [vmem:[%s7441_s0] sm:$0xff]  ;;  %969 = vadd.xlane.f32.xlu2 %v955_v0  ;;  %965 = vadd.xlane.f32.xlu1 %v953_v1  ;;  %v954_v4 = vld [vmem:[%s7441_s0 + $0x18] sm:$0xff]  ;;  %v952_v5 = vld [vmem:[%s7441_s0 + $0x8] sm:$0xff] }
  0x6b   : > { %961 = vadd.xlane.f32.xlu0 %v951_v2  ;;  %v958_v6 = vld [vmem:[%s7441_s0 + $0x38] sm:$0xff]  ;;  %v957_v7 = vld [vmem:[%s7441_s0 + $0x30] sm:$0xff] }
  0x6e   : > { %v5167_v9 = vpop.eup %5166 }
  0x6f   : > { %v978_v10 = vmul.f32 128.0, %v5167_v9  ;;  %vm982_vm0 = vweird.f32 %v5167_v9 }
  0x71   : > { %v979_v11 = vsub.f32 1.0, %v978_v10 }
  0x72   : > { %971 = vadd.xlane.f32.xlu2 %v956_v3  ;;  %967 = vadd.xlane.f32.xlu1 %v954_v4 }
  0x73   : > { %963 = vadd.xlane.f32.xlu0 %v952_v5  ;;  %v980_v12 = vmul.f32 %v5167_v9, %v979_v11 }
  0x75   : > { %v981_v13 = vadd.f32 %v5167_v9, %v980_v12 }
  0x77   : > { %v5939_v14 = vsel %vm982_vm0, %v5167_v9, %v981_v13 }
  0x7a   : > { %975 = vadd.xlane.f32.xlu1 %v958_v6 }
  0x7b   : > { %973 = vadd.xlane.f32.xlu0 %v957_v7 }
  0xdd   : > { %v970_v15 = vpop.xlane.xlu2 %969  ;;  %v966_v16 = vpop.xlane.xlu1 %965 }
  0xde   : > { %v986_v17 = vmul.f32 %v5939_v14, %v966_v16  ;;  %v962_v18 = vpop.xlane.xlu0 %961  ;;  %v988_v32 = vmul.f32 %v5939_v14, %v970_v15 }
  0xdf   : > { %v984_v19 = vmul.f32 %v5939_v14, %v962_v18 }
  0xe0   : > { %v5943_v20 = vsub.f32 %v953_v1, %v986_v17  ;;  %v5967_v37 = vsub.f32 %v955_v0, %v988_v32 }
  0xe1   : > { %v5945_v21 = vsub.f32 %v951_v2, %v984_v19  ;;  %v5999_v19 = vld [vmem:[%s7442_s24] ss:$0 sm:$0xff] }
  0xe2   : > { %v1002_v22 = vmul.f32 %v5943_v20, %v5943_v20  ;;  %v1004_v42 = vmul.f32 %v5967_v37, %v5967_v37 }
  0xe3   : > { %v1000_v23 = vmul.f32 %v5945_v21, %v5945_v21 }
  0xe4   : > { %1012 = vadd.xlane.f32.xlu1 %v1002_v22 }
  0xe5   : > { %1008 = vadd.xlane.f32.xlu2 %v1000_v23  ;;  %v972_v24 = vpop.xlane.xlu2 %971  ;;  %v968_v25 = vpop.xlane.xlu1 %967 }
  0xe6   : > { %v989_v26 = vmul.f32 %v5939_v14, %v972_v24  ;;  %v987_v27 = vmul.f32 %v5939_v14, %v968_v25  ;;  %v964_v28 = vpop.xlane.xlu0 %963 }
  0xe7   : > { %v985_v29 = vmul.f32 %v5939_v14, %v964_v28  ;;  %v6009_v28 = vld [vmem:[%s7443_s30] ss:$0 sm:$0xff] }
  0xe8   : > { %v5954_v30 = vsub.f32 %v956_v3, %v989_v26  ;;  %v5956_v31 = vsub.f32 %v954_v4, %v987_v27 }
  0xe9   : > { %v5959_v33 = vsub.f32 %v952_v5, %v985_v29 }
  0xea   : > { %v1005_v34 = vmul.f32 %v5954_v30, %v5954_v30  ;;  %v1003_v35 = vmul.f32 %v5956_v31, %v5956_v31 }
  0xeb   : > { %v1001_v36 = vmul.f32 %v5959_v33, %v5959_v33 }
  0xec   : > { %1018 = vadd.xlane.f32.xlu1 %v1005_v34 }
  0xed   : > { %1014 = vadd.xlane.f32.xlu2 %v1003_v35  ;;  %1010 = vadd.xlane.f32.xlu0 %v1001_v36  ;;  %v976_v39 = vpop.xlane.xlu1 %975 }
  0xee   : > { %v974_v38 = vpop.xlane.xlu0 %973  ;;  %v991_v43 = vmul.f32 %v5939_v14, %v976_v39 }
  0xef   : > { %v990_v40 = vmul.f32 %v5939_v14, %v974_v38 }
  0xf0   : > { %v5977_v45 = vsub.f32 %v958_v6, %v991_v43 }
  0xf1   : > { %v5970_v41 = vsub.f32 %v957_v7, %v990_v40 }
  0xf2   : > { %v1007_v46 = vmul.f32 %v5977_v45, %v5977_v45 }
  0xf3   : > { %v1006_v44 = vmul.f32 %v5970_v41, %v5970_v41 }
  0xf5   : > { %1016 = vadd.xlane.f32.xlu0 %v1004_v42  ;;  %1020 = vadd.xlane.f32.xlu2 %v1006_v44 }
  0xfd   : > { %1022 = vadd.xlane.f32.xlu0 %v1007_v46 }
 0x157   : > { %v1013_v47 = vpop.xlane.xlu1 %1012 }
 0x158   : > { %v1026_v48 = vmul.f32 %v1013_v47, %v5939_v14  ;;  %v1009_v49 = vpop.xlane.xlu2 %1008 }
 0x159   : > { %v1024_v50 = vmul.f32 %v1009_v49, %v5939_v14 }
 0x15a   : > { %v1034_v51 = vadd.f32 1e-12, %v1026_v48 }
 0x15b   : > { %v1032_v52 = vadd.f32 1e-12, %v1024_v50 }
 0x15c   : > { %5168 = vrsqrt.f32 %v1034_v51  ;;  %vm1066_vm1 = vweird.f32 %v1034_v51 }
 0x15d   : > { %5170 = vrsqrt.f32 %v1032_v52  ;;  %vm1046_vm5 = vweird.f32 %v1032_v52 }
 0x15f   : > { %v1019_v53 = vpop.xlane.xlu1 %1018 }
 0x160   : > { %v1029_v54 = vmul.f32 %v1019_v53, %v5939_v14  ;;  %v1015_v55 = vpop.xlane.xlu2 %1014  ;;  %v1011_v56 = vpop.xlane.xlu0 %1010 }
 0x161   : > { %v1027_v57 = vmul.f32 %v1015_v55, %v5939_v14  ;;  %v1025_v58 = vmul.f32 %v1011_v56, %v5939_v14 }
 0x162   : > { %v5169_v59 = vpop.eup %5168  ;;  %v1037_v60 = vadd.f32 1e-12, %v1029_v54 }
 0x163   : > { %v5171_v61 = vpop.eup %5170  ;;  %v1061_v62 = vmul.f32 %v5169_v59, %v1034_v51  ;;  %v5986_v63 = vadd.f32 1e-12, %v1027_v57  ;;  %v5988_v0 = vadd.f32 1e-12, %v1025_v58  ;;  %vm1067_vm2 = vweird.f32 %v5169_v59 }
 0x164   : > { %v1041_v1 = vmul.f32 %v5171_v61, %v1032_v52  ;;  %5172 = vrsqrt.f32 %v1037_v60  ;;  %vm1047_vm3 = vweird.f32 %v5171_v61  ;;  %vm1068_vm4 = vmor %vm1066_vm1, %vm1067_vm2  ;;  %vm1096_vm7 = vweird.f32 %v1037_v60 }
 0x165   : > { %v1062_v2 = vmul.f32 %v5169_v59, %v1061_v62  ;;  %5174 = vrsqrt.f32 %v5986_v63  ;;  %vm1048_vm6 = vmor %vm1046_vm5, %vm1047_vm3  ;;  %vm1076_vm9 = vweird.f32 %v5986_v63  ;;  %vm1056_vm14 = vweird.f32 %v5988_v0 }
 0x166   : > { %v1042_v3 = vmul.f32 %v5171_v61, %v1041_v1  ;;  %5176 = vrsqrt.f32 %v5988_v0 }
 0x167   : > { %v1063_v4 = vmul.f32 0.5, %v1062_v2 }
 0x168   : > { %v1043_v5 = vmul.f32 0.5, %v1042_v3  ;;  %v1021_v6 = vpop.xlane.xlu2 %1020  ;;  %v1017_v7 = vpop.xlane.xlu0 %1016 }
 0x169   : > { %v1064_v8 = vsub.f32 1.5, %v1063_v4  ;;  %v1030_v9 = vmul.f32 %v1021_v6, %v5939_v14  ;;  %v1028_v10 = vmul.f32 %v1017_v7, %v5939_v14 }
 0x16a   : > { %v5173_v11 = vpop.eup %5172  ;;  %v1044_v12 = vsub.f32 1.5, %v1043_v5 }
 0x16b   : > { %v5175_v13 = vpop.eup %5174  ;;  %v1065_v15 = vmul.f32 %v5169_v59, %v1064_v8  ;;  %v1091_v16 = vmul.f32 %v5173_v11, %v1037_v60  ;;  %v5994_v17 = vadd.f32 1e-12, %v1030_v9  ;;  %v6003_v24 = vadd.f32 1e-12, %v1028_v10 }
 0x16c   : > { %v5177_v18 = vpop.eup %5176  ;;  %v1045_v22 = vmul.f32 %v5171_v61, %v1044_v12  ;;  %v1071_v23 = vmul.f32 %v5175_v13, %v5986_v63  ;;  %vm1097_vm8 = vweird.f32 %v5173_v11  ;;  %vm1077_vm11 = vweird.f32 %v5175_v13 }
 0x16d   : > { %v1069_v25 = vsel %vm1068_vm4, %v5169_v59, %v1065_v15  ;;  %v1092_v26 = vmul.f32 %v5173_v11, %v1091_v16  ;;  %v1051_v27 = vmul.f32 %v5177_v18, %v5988_v0  ;;  %5178 = vrsqrt.f32 %v5994_v17  ;;  %vm6021_vm10 = vmor %vm1096_vm7, %vm1097_vm8 }
 0x16e   : > { %v1122_v29 = vmul.f32 %v1069_v25, %v5943_v20  ;;  %v1049_v32 = vsel %vm1048_vm6, %v5171_v61, %v1045_v22  ;;  %v1072_v34 = vmul.f32 %v5175_v13, %v1071_v23  ;;  %5180 = vrsqrt.f32 %v6003_v24  ;;  %vm1078_vm13 = vmor %vm1076_vm9, %vm1077_vm11 }
 0x16f   : > { %v1120_v35 = vmul.f32 %v1049_v32, %v5945_v21  ;;  %v1093_v36 = vmul.f32 0.5, %v1092_v26  ;;  %v1052_v38 = vmul.f32 %v5177_v18, %v1051_v27  ;;  %vm1057_vm12 = vweird.f32 %v5177_v18 }
 0x170   : > { %v1133_v39 = vmul.f32 %v5999_v19, %v1122_v29  ;;  %v1073_v40 = vmul.f32 0.5, %v1072_v34  ;;  %v1023_v42 = vpop.xlane.xlu0 %1022  ;;  %vm1058_vm15 = vmor %vm1056_vm14, %vm1057_vm12  ;;  %vm1106_vm0 = vweird.f32 %v5994_v17  ;;  %vm1086_vm4 = vweird.f32 %v6003_v24 }
 0x171   : > { %v1131_v43 = vmul.f32 %v5999_v19, %v1120_v35  ;;  %v1094_v20 = vsub.f32 1.5, %v1093_v36  ;;  %v1053_v44 = vmul.f32 0.5, %v1052_v38  ;;  %v1031_v46 = vmul.f32 %v1023_v42, %v5939_v14 }
 0x172   : > { %v1144_v47 = vadd.f32 %v6009_v28, %v1133_v39  ;;  %v1074_v48 = vsub.f32 1.5, %v1073_v40 }
 0x173   : > { %v1142_v49 = vadd.f32 %v6009_v28, %v1131_v43  ;;  %v1095_v50 = vmul.f32 %v5173_v11, %v1094_v20  ;;  %v1054_v51 = vsub.f32 1.5, %v1053_v44  ;;  %v1039_v52 = vadd.f32 1e-12, %v1031_v46  ;;  %v5179_v53 = vpop.eup %5178 }
 0x174   : > { %1152 = vst [vmem:[#allocation2 + $0x18] sm:$0xff] %v1144_v47  ;;  %v1075_v54 = vmul.f32 %v5175_v13, %v1074_v48  ;;  %v1101_v56 = vmul.f32 %v5179_v53, %v5994_v17  ;;  %v5181_v57 = vpop.eup %5180  ;;  %vm1107_vm1 = vweird.f32 %v5179_v53 }
 0x175   : > { %1150 = vst [vmem:[#allocation2 + $0x30] sm:$0xff] %v1142_v49  ;;  %v1099_v14 = vsel %vm6021_vm10, %v5173_v11, %v1095_v50  ;;  %v1055_v55 = vmul.f32 %v5177_v18, %v1054_v51  ;;  %5182 = vrsqrt.f32 %v1039_v52  ;;  %v1081_v1 = vmul.f32 %v5181_v57, %v6003_v24  ;;  %vm1108_vm3 = vmor %vm1106_vm0, %vm1107_vm1 }
 0x176   : > { %v1125_v58 = vmul.f32 %v1099_v14, %v5954_v30  ;;  %v1079_v59 = vsel %vm1078_vm13, %v5175_v13, %v1075_v54  ;;  %v1102_v62 = vmul.f32 %v5179_v53, %v1101_v56  ;;  %vm1087_vm2 = vweird.f32 %v5181_v57 }
 0x177   : > { %v1123_v60 = vmul.f32 %v1079_v59, %v5956_v31  ;;  %v1059_v61 = vsel %vm1058_vm15, %v5177_v18, %v1055_v55  ;;  %v1082_v4 = vmul.f32 %v5181_v57, %v1081_v1  ;;  %vm1088_vm5 = vmor %vm1086_vm4, %vm1087_vm2  ;;  %vm1116_vm7 = vweird.f32 %v1039_v52 }
 0x178   : > { %v1136_v63 = vmul.f32 %v5999_v19, %v1125_v58  ;;  %v1121_v2 = vmul.f32 %v1059_v61, %v5959_v33  ;;  %v1103_v3 = vmul.f32 0.5, %v1102_v62 }
 0x179   : > { %v1134_v0 = vmul.f32 %v5999_v19, %v1123_v60  ;;  %v1083_v7 = vmul.f32 0.5, %v1082_v4 }
 0x17a   : > { %v1147_v30 = vadd.f32 %v6009_v28, %v1136_v63  ;;  %v1132_v5 = vmul.f32 %v5999_v19, %v1121_v2  ;;  %v1104_v6 = vsub.f32 1.5, %v1103_v3 }
 0x17b   : > { %v1145_v31 = vadd.f32 %v6009_v28, %v1134_v0  ;;  %v5183_v8 = vpop.eup %5182  ;;  %v1084_v10 = vsub.f32 1.5, %v1083_v7 }
 0x17c   : > { %1155 = vst [vmem:[#allocation2 + $0x20] sm:$0xff] %v1147_v30  ;;  %v1143_v9 = vadd.f32 %v6009_v28, %v1132_v5  ;;  %v1105_v33 = vmul.f32 %v5179_v53, %v1104_v6  ;;  %v1111_v11 = vmul.f32 %v5183_v8, %v1039_v52  ;;  %vm1117_vm6 = vweird.f32 %v5183_v8 }
 0x17d   : > { %1153 = vst [vmem:[#allocation2 + $0x10] sm:$0xff] %v1145_v31  ;;  %v1085_v13 = vmul.f32 %v5181_v57, %v1084_v10  ;;  %vm1118_vm8 = vmor %vm1116_vm7, %vm1117_vm6 }
 0x17e   : > { %1151 = vst [vmem:[#allocation2] sm:$0xff] %v1143_v9  ;;  %v1109_v12 = vsel %vm1108_vm3, %v5179_v53, %v1105_v33  ;;  %v1112_v15 = vmul.f32 %v5183_v8, %v1111_v11 }
 0x17f   : > { %v1126_v16 = vmul.f32 %v1109_v12, %v5970_v41  ;;  %v1089_v17 = vsel %vm1088_vm5, %v5181_v57, %v1085_v13 }
 0x180   : > { %v1113_v18 = vmul.f32 0.5, %v1112_v15  ;;  %v1124_v23 = vmul.f32 %v1089_v17, %v5967_v37 }
 0x181   : > { %v1137_v22 = vmul.f32 %v5999_v19, %v1126_v16 }
 0x182   : > { %v1114_v25 = vsub.f32 1.5, %v1113_v18  ;;  %v1135_v27 = vmul.f32 %v5999_v19, %v1124_v23 }
 0x183   : > { %v1148_v26 = vadd.f32 %v6009_v28, %v1137_v22 }
 0x184   : > { %v1115_v29 = vmul.f32 %v5183_v8, %v1114_v25  ;;  %v1146_v24 = vadd.f32 %v6009_v28, %v1135_v27 }
 0x185   : > { %1156 = vst [vmem:[#allocation2 + $0x28] sm:$0xff] %v1148_v26 }
 0x186   : > { %v1119_v41 = vsel %vm1118_vm8, %v5183_v8, %v1115_v29  ;;  %1154 = vst [vmem:[#allocation2 + $0x8] sm:$0xff] %v1146_v24 }
 0x187   : > { %v1127_v32 = vmul.f32 %v1119_v41, %v5977_v45 }
 0x189   : > { %v1138_v34 = vmul.f32 %v5999_v19, %v1127_v32 }
 0x18b   : > { %v1149_v37 = vadd.f32 %v6009_v28, %v1138_v34 }
 0x18d   : > { %1157 = vst [vmem:[#allocation2 + $0x38] sm:$0xff] %v1149_v37 }
 0x18e PF: > { %v4524_v35 = vld [vmem:[%s5850_s8 + $0xa8] sm:$0xf]  ;;  %v4998_v36 = vld [vmem:[%s5850_s8 + $0xb0] sm:$0xf0]  ;;  %v4997_v45 = vld [vmem:[%s5850_s8 + $0xac] sm:$0xf]  ;;  %s7448_s1 = scalar_lea.vmem %s7384_s10, %s5864_s19 }
 0x18f   : > { %v4525_v19 = vor.u32 %v4998_v36, %v4524_v35  ;;  %v4526_v38 = vld [vmem:[%s5850_s8 + $0xb4] sm:$0xf0]  ;;  %v4512_v28 = vld [vmem:[%s5850_s8 + $0x90] sm:$0xf]  ;;  %v4995_v39 = vld [vmem:[%s5850_s8 + $0x98] sm:$0xf0] }
 0x190   : > { %v4529_v40 = vor.u32 %v4997_v45, %v4526_v38  ;;  %v4994_v42 = vld [vmem:[%s5850_s8 + $0x94] sm:$0xf]  ;;  %v4514_v43 = vld [vmem:[%s5850_s8 + $0x9c] sm:$0xf0]  ;;  %v4513_v20 = vor.u32 %v4995_v39, %v4512_v28  ;;  %v4500_v46 = vld [vmem:[%s5850_s8 + $0x78] sm:$0xf] }
 0x191   : > { %1338 = vmatpush.bf16.msra.mxu0 %v4525_v19  ;;  %v4517_v44 = vor.u32 %v4994_v42, %v4514_v43  ;;  %v4992_v47 = vld [vmem:[%s5850_s8 + $0x80] sm:$0xf0]  ;;  %v4991_v21 = vld [vmem:[%s5850_s8 + $0x7c] sm:$0xf]  ;;  %v4502_v48 = vld [vmem:[%s5850_s8 + $0x84] sm:$0xf0] }
 0x192   : > { %1367 = vmatpush.bf16.msra.mxu1 %v4529_v40  ;;  %v4501_v49 = vor.u32 %v4992_v47, %v4500_v46  ;;  %v4505_v50 = vor.u32 %v4991_v21, %v4502_v48  ;;  %v4488_v51 = vld [vmem:[%s5850_s8 + $0x60] sm:$0xf]  ;;  %v4989_v52 = vld [vmem:[%s5850_s8 + $0x68] sm:$0xf0]  ;;  %v4988_v53 = vld [vmem:[%s5850_s8 + $0x64] sm:$0xf] }
 0x193   : > { %v4490_v54 = vld [vmem:[%s5850_s8 + $0x6c] sm:$0xf0]  ;;  %v4476_v14 = vld [vmem:[%s5850_s8 + $0x48] sm:$0xf]  ;;  %v4489_v55 = vor.u32 %v4989_v52, %v4488_v51  ;;  %v4986_v56 = vld [vmem:[%s5850_s8 + $0x50] sm:$0xf0] }
 0x194   : > { %v4985_v57 = vld [vmem:[%s5850_s8 + $0x4c] sm:$0xf]  ;;  %v4478_v58 = vld [vmem:[%s5850_s8 + $0x54] sm:$0xf0]  ;;  %v4493_v59 = vor.u32 %v4988_v53, %v4490_v54  ;;  %v4477_v60 = vor.u32 %v4986_v56, %v4476_v14  ;;  %v4464_v62 = vld [vmem:[%s5850_s8 + $0x30] sm:$0xf] }
 0x195   : > { %1339 = vmatpush.bf16.msra.mxu0 %v4513_v20  ;;  %v4481_v61 = vor.u32 %v4985_v57, %v4478_v58  ;;  %v4983_v1 = vld [vmem:[%s5850_s8 + $0x38] sm:$0xf0]  ;;  %v4982_v63 = vld [vmem:[%s5850_s8 + $0x34] sm:$0xf]  ;;  %v4466_v2 = vld [vmem:[%s5850_s8 + $0x3c] sm:$0xf0] }
 0x196   : > { %1368 = vmatpush.bf16.msra.mxu1 %v4517_v44  ;;  %v4465_v0 = vor.u32 %v4983_v1, %v4464_v62  ;;  %v4469_v3 = vor.u32 %v4982_v63, %v4466_v2  ;;  %v4452_v4 = vld [vmem:[%s5850_s8 + $0x18] sm:$0xf]  ;;  %v4980_v30 = vld [vmem:[%s5850_s8 + $0x20] sm:$0xf0]  ;;  %v4979_v5 = vld [vmem:[%s5850_s8 + $0x1c] sm:$0xf] }
 0x197   : > { %v4454_v31 = vld [vmem:[%s5850_s8 + $0x24] sm:$0xf0]  ;;  %v4453_v6 = vor.u32 %v4980_v30, %v4452_v4  ;;  %v4440_v8 = vld [vmem:[%s5850_s8] sm:$0xf]  ;;  %v4977_v9 = vld [vmem:[%s5850_s8 + $0x8] sm:$0xf0] }
 0x198   : > { %v4457_v7 = vor.u32 %v4979_v5, %v4454_v31  ;;  %v4976_v33 = vld [vmem:[%s5850_s8 + $0x4] sm:$0xf]  ;;  %v4442_v10 = vld [vmem:[%s5850_s8 + $0xc] sm:$0xf0]  ;;  %v4999_v12 = vld [vmem:[%s5850_s8 + $0xb8] sm:$0xf0]  ;;  %v4441_v13 = vor.u32 %v4977_v9, %v4440_v8 }
 0x199   : > { %1340 = vmatpush.bf16.msra.mxu0 %v4501_v49  ;;  %v4532_v11 = vld [vmem:[%s5850_s8 + $0xb0] sm:$0xf]  ;;  %v1159_v16 = vld [vmem:[#allocation2] sm:$0xff]  ;;  %v4445_v18 = vor.u32 %v4976_v33, %v4442_v10  ;;  %v4520_v23 = vld [vmem:[%s5850_s8 + $0x98] sm:$0xf]  ;;  %s5628_s2 = smov 32  }
 0x19a   : > { %1369 = vmatpush.bf16.msra.mxu1 %v4505_v50  ;;  %v1158_v15 = vld [vmem:[#allocation2 + $0x30] sm:$0xff]  ;;  %v4533_v17 = vor.u32 %v4999_v12, %v4532_v11  ;;  %v4996_v25 = vld [vmem:[%s5850_s8 + $0xa0] sm:$0xf0]  ;;  %v4508_v27 = vld [vmem:[%s5850_s8 + $0x80] sm:$0xf]  ;;  %vm1445_vm9 = vcmask 261120  }
 0x19b   : > { %v1166_v22 = vpack.c.bf16 %v1159_v16, %v1158_v15  ;;  %v4521_v26 = vor.u32 %v4996_v25, %v4520_v23  ;;  %v4993_v29 = vld [vmem:[%s5850_s8 + $0x88] sm:$0xf0]  ;;  %v4496_v41 = vld [vmem:[%s5850_s8 + $0x68] sm:$0xf]  ;;  %v4990_v32 = vld [vmem:[%s5850_s8 + $0x70] sm:$0xf0] }
 0x19c   : > { %1396 = vmatpush.bf16.msra.mxu2 %v4533_v17  ;;  %v4509_v24 = vor.u32 %v4993_v29, %v4508_v27  ;;  %v4497_v34 = vor.u32 %v4990_v32, %v4496_v41  ;;  %v4484_v37 = vld [vmem:[%s5850_s8 + $0x50] sm:$0xf]  ;;  %v4987_v35 = vld [vmem:[%s5850_s8 + $0x58] sm:$0xf0]  ;;  %v4472_v28 = vld [vmem:[%s5850_s8 + $0x38] sm:$0xf] }
 0x19d   : > { %1341 = vmatpush.bf16.msra.mxu0 %v4489_v55  ;;  %v1160_v36 = vld [vmem:[#allocation2 + $0x18] sm:$0xff]  ;;  %v1161_v45 = vld [vmem:[#allocation2 + $0x10] sm:$0xff]  ;;  %v4485_v19 = vor.u32 %v4987_v35, %v4484_v37  ;;  %v4984_v39 = vld [vmem:[%s5850_s8 + $0x40] sm:$0xf0]  ;;  %s7446_s23 = sld [smem:[#allocation17_spill]]  ;;  %vm1499_vm10 = vcmask 523264  }
 0x19e   : > { %1370 = vmatpush.bf16.msra.mxu1 %v4493_v59  ;;  %v1167_v38 = vpack.c.bf16 %v1161_v45, %v1160_v36  ;;  %v4473_v40 = vor.u32 %v4984_v39, %v4472_v28  ;;  %v4460_v42 = vld [vmem:[%s5850_s8 + $0x20] sm:$0xf]  ;;  %v4981_v43 = vld [vmem:[%s5850_s8 + $0x28] sm:$0xf0]  ;;  %v4448_v44 = vld [vmem:[%s5850_s8 + $0x8] sm:$0xf] }
 0x19f   : > { %v4461_v20 = vor.u32 %v4981_v43, %v4460_v42  ;;  %v4978_v46 = vld [vmem:[%s5850_s8 + $0x10] sm:$0xf0]  ;;  %v1162_v21 = vld [vmem:[#allocation2 + $0x8] sm:$0xff]  ;;  %v1163_v48 = vld [vmem:[#allocation2 + $0x20] sm:$0xff]  ;;  %s5626_s8 = smov 96   ;;  %vm2399_vm11 = vcmask 785408  }
 0x1a0   : > { %1397 = vmatpush.bf16.msra.mxu2 %v4521_v26  ;;  %v4449_v47 = vor.u32 %v4978_v46, %v4448_v44  ;;  %v1168_v49 = vpack.c.bf16 %v1163_v48, %v1162_v21  ;;  %v1164_v50 = vld [vmem:[#allocation2 + $0x28] sm:$0xff]  ;;  %v1165_v51 = vld [vmem:[#allocation2 + $0x38] sm:$0xff]  ;;  %v1202_v14 = vld [vmem:[%s5880_s7] sm:$0x7]  ;;  %s5627_s7 = smov 64   ;;  %p4854_p11 = scmp.ne.s32.totalorder %s5775_s6, 1 }
 0x1a1   : > { %1342 = vmatpush.bf16.msra.mxu0 %v4477_v60  ;;  %v1169_v52 = vpack.c.bf16 %v1165_v51, %v1164_v50  ;;  %v6103_v55 = vperm.slane %v1202_v14, 0  ;;  %v1205_v63 = vperm.slane %v1202_v14, 1  ;;  %v1206_v45 = vperm.slane %v1202_v14, 2  ;;  %s7452_s20 = sld [smem:[#allocation28_spill]] (!%p4854_p11) }
 0x1a2   : > { %1371 = vmatpush.bf16.msra.mxu1 %v4481_v61  ;;  %s7454_s19 = sld [smem:[#allocation27_spill]] (!%p4854_p11) }
 0x1a4   : > { %1398 = vmatpush.bf16.msra.mxu2 %v4509_v24 }
 0x1a5   : > { %1343 = vmatpush.bf16.msra.mxu0 %v4465_v0 }
 0x1a6   : > { %1372 = vmatpush.bf16.msra.mxu1 %v4469_v3 }
 0x1a8   : > { %1399 = vmatpush.bf16.msra.mxu2 %v4497_v34 }
 0x1a9   : > { %1344 = vmatpush.bf16.msra.mxu0 %v4453_v6 }
 0x1aa   : > { %1373 = vmatpush.bf16.msra.mxu1 %v4457_v7 }
 0x1ac   : > { %1400 = vmatpush.bf16.msra.mxu2 %v4485_v19 }
 0x1ad   : > { %1345 = vmatpush.bf16.msra.mxu0 %v4441_v13 }
 0x1ae   : > { %1374 = vmatpush.bf16.msra.mxu1 %v4445_v18 }
 0x1b0   : > { %1346 = vmatmul.bf16.vlgmr.msra.gmra.mxu0 %v1166_v22  ;;  %1401 = vmatpush.bf16.msra.mxu2 %v4473_v40 }
 0x1b1   : > { %1375 = vmatmul.bf16.vlgmr.msra.gmra.mxu1 %v1166_v22 }
 0x1b4   : > { %1402 = vmatpush.bf16.msra.mxu2 %v4461_v20 }
 0x1b8   : > { %1403 = vmatpush.bf16.msra.mxu2 %v4449_v47 }
 0x1bb   : > { %1404 = vmatmul.bf16.vlgmr.msra.gmra.mxu2 %v1166_v22 }
 0x1c0   : > { %1351 = vmatmul.bf16.gmra.mxu0 %v1167_v38 }
 0x1c1   : > { %1380 = vmatmul.bf16.gmra.mxu1 %v1167_v38 }
 0x1cb   : > { %1409 = vmatmul.bf16.gmra.mxu2 %v1167_v38 }
 0x1d0   : > { %1356 = vmatmul.bf16.gmra.mxu0 %v1168_v49 }
 0x1d1   : > { %1385 = vmatmul.bf16.gmra.mxu1 %v1168_v49 }
 0x1db   : > { %1414 = vmatmul.bf16.gmra.mxu2 %v1168_v49 }
 0x1e0   : > { %1361 = vmatmul.bf16.gmra.mxu0 %v1169_v52 }
 0x1e1   : > { %1390 = vmatmul.bf16.gmra.mxu1 %v1169_v52 }
 0x1eb   : > { %1419 = vmatmul.bf16.gmra.mxu2 %v1169_v52 }
 0x22d   : > { %v1347_v53 = vpop.f32.mrf.mxu0 }
 0x22e   : > { %v1376_v54 = vpop.f32.mrf.mxu1  ;;  %v1348_v56 = vadd.f32 %v1347_v53, %v6103_v55 }
 0x22f   : > { %v1377_v33 = vadd.f32 %v1376_v54, %v1205_v63 }
 0x235   : > { %v1349_v57 = vpop.f32.mrf.mxu0 }
 0x236   : > { %v1350_v58 = vadd.f32 %v1349_v57, %v6103_v55  ;;  %v1378_v59 = vpop.f32.mrf.mxu1 }
 0x237   : > { %v1379_v6 = vadd.f32 %v1378_v59, %v1205_v63 }
 0x238   : > { %v6107_v60 = vpack.c.bf16 %v1350_v58, %v1348_v56 }
 0x239   : > { %v1437_v10 = vpack.c.bf16 %v1379_v6, %v1377_v33 }
 0x23a   : > { %1637 = vrot.lane.b32.xlu2 %v6107_v60, %s5626_s8 }
 0x23b   : > { %v1459_v48 = vsel %vm1445_vm9, %v1437_v10, 0 }
 0x23d   : > { %v1352_v61 = vpop.f32.mrf.mxu0 }
 0x23e   : > { %v1381_v62 = vpop.f32.mrf.mxu1  ;;  %v1353_v1 = vadd.f32 %v1352_v61, %v6103_v55  ;;  %v1405_v9 = vpop.f32.mrf.mxu2 }
 0x23f   : > { %v1382_v4 = vadd.f32 %v1381_v62, %v1205_v63  ;;  %v1406_v43 = vadd.f32 %v1405_v9, %v1206_v45 }
 0x245   : > { %v1354_v2 = vpop.f32.mrf.mxu0 }
 0x246   : > { %v1355_v0 = vadd.f32 %v1354_v2, %v6103_v55  ;;  %v1383_v3 = vpop.f32.mrf.mxu1  ;;  %v1407_v16 = vpop.f32.mrf.mxu2 }
 0x247   : > { %v1384_v30 = vadd.f32 %v1383_v3, %v1205_v63  ;;  %v1408_v20 = vadd.f32 %v1407_v16, %v1206_v45 }
 0x248   : > { %v6113_v5 = vpack.c.bf16 %v1355_v0, %v1353_v1 }
 0x249   : > { %v1438_v31 = vpack.c.bf16 %v1384_v30, %v1382_v4  ;;  %v6150_v47 = vpack.c.bf16 %v1408_v20, %v1406_v43 }
 0x24a   : > { %1639 = vrot.lane.b32.xlu2 %v6113_v5, %s5626_s8 }
 0x24b   : > { %1651 = vrot.lane.b32.xlu1 %v1438_v31, %s5626_s8  ;;  %v1462_v42 = vsel %vm1445_vm9, %v1438_v31, 0 }
 0x24d   : > { %v1357_v7 = vpop.f32.mrf.mxu0 }
 0x24e   : > { %v1386_v8 = vpop.f32.mrf.mxu1  ;;  %v1358_v11 = vadd.f32 %v1357_v7, %v6103_v55  ;;  %v1410_v23 = vpop.f32.mrf.mxu2 }
 0x24f   : > { %v1387_v25 = vadd.f32 %v1386_v8, %v1205_v63  ;;  %v1411_v54 = vadd.f32 %v1410_v23, %v1206_v45 }
 0x252   : > { %1869 = vrot.lane.b32.xlu2 %v1438_v31, %s5627_s7 }
 0x253   : > { %1649 = vrot.lane.b32.xlu1 %v1437_v10, %s5626_s8 }
 0x255   : > { %v1359_v12 = vpop.f32.mrf.mxu0 }
 0x256   : > { %v1360_v13 = vadd.f32 %v1359_v12, %v6103_v55  ;;  %v1388_v15 = vpop.f32.mrf.mxu1  ;;  %v1412_v29 = vpop.f32.mrf.mxu2 }
 0x257   : > { %v1389_v18 = vadd.f32 %v1388_v15, %v1205_v63  ;;  %v1413_v14 = vadd.f32 %v1412_v29, %v1206_v45 }
 0x258   : > { %v6122_v17 = vpack.c.bf16 %v1360_v13, %v1358_v11 }
 0x259   : > { %v1439_v26 = vpack.c.bf16 %v1389_v18, %v1387_v25 }
 0x25a   : > { %1867 = vrot.lane.b32.xlu2 %v1437_v10, %s5627_s7 }
 0x25b   : > { %1641 = vrot.lane.b32.xlu1 %v6122_v17, %s5626_s8  ;;  %v1465_v36 = vsel %vm1445_vm9, %v1439_v26, 0 }
 0x25d   : > { %v1362_v35 = vpop.f32.mrf.mxu0 }
 0x25e   : > { %v1391_v22 = vpop.f32.mrf.mxu1  ;;  %v1415_v37 = vpop.f32.mrf.mxu2  ;;  %v1363_v44 = vadd.f32 %v1362_v35, %v6103_v55  ;;  %v6220_v35 = vld [vmem:[%s7446_s23 + $0x8] sm:$0xff] }
 0x25f   : > { %v1392_v24 = vadd.f32 %v1391_v22, %v1205_v63  ;;  %v1416_v38 = vadd.f32 %v1415_v37, %v1206_v45 }
 0x262   : > { %2073 = vrot.lane.b32.xlu2 %v6107_v60, %s5628_s2 }
 0x263   : > { %2085 = vrot.lane.b32.xlu1 %v1439_v26, %s5628_s2 }
 0x265   : > { %v1364_v40 = vpop.f32.mrf.mxu0 }
 0x266   : > { %v1393_v27 = vpop.f32.mrf.mxu1  ;;  %v1417_v19 = vpop.f32.mrf.mxu2  ;;  %v1365_v46 = vadd.f32 %v1364_v40, %v6103_v55  ;;  %v6168_v55 = vpack.c.bf16 %v1413_v14, %v1411_v54  ;;  %v6265_v14 = vld [vmem:[%s7446_s23 + $0x28] sm:$0xff] }
 0x267   : > { %v1394_v41 = vadd.f32 %v1393_v27, %v1205_v63  ;;  %v1418_v28 = vadd.f32 %v1417_v19, %v1206_v45  ;;  %v6207_v27 = vld [vmem:[%s7446_s23] sm:$0xff] }
 0x268   : > { %v1436_v21 = vpack.c.bf16 %v1365_v46, %v1363_v44  ;;  %v6243_v46 = vld [vmem:[%s7446_s23 + $0x18] sm:$0xff] }
 0x269   : > { %v1440_v32 = vpack.c.bf16 %v1394_v41, %v1392_v24  ;;  %v6140_v39 = vpack.c.bf16 %v1418_v28, %v1416_v38  ;;  %v6231_v28 = vld [vmem:[%s7446_s23 + $0x10] sm:$0xff] }
 0x26b   : > { %1655 = vrot.lane.b32.xlu0 %v1440_v32, %s5626_s8  ;;  %2083 = vrot.lane.b32.xlu1 %v1438_v31, %s5628_s2  ;;  %v1468_v34 = vsel %vm1445_vm9, %v1440_v32, 0 }
 0x26c   : > { %2087 = vrot.lane.b32.xlu2 %v1440_v32, %s5628_s2  ;;  %1474 = vmatpush.bf16.xpose.msra.mxu3 %v1468_v34 }
 0x26e   : > { %v1420_v49 = vpop.f32.mrf.mxu2 }
 0x26f   : > { %v1421_v51 = vadd.f32 %v1420_v49, %v1206_v45 }
 0x273   : > { %1653 = vrot.lane.b32.xlu0 %v1439_v26, %s5626_s8  ;;  %1859 = vrot.lane.b32.xlu1 %v6107_v60, %s5627_s7 }
 0x274   : > { %1475 = vmatpush.bf16.xpose.msra.mxu3 %v1465_v36  ;;  %1863 = vrot.lane.b32.xlu2 %v6122_v17, %s5627_s7 }
 0x276   : > { %v1422_v50 = vpop.f32.mrf.mxu2 }
 0x277   : > { %v1423_v52 = vadd.f32 %v1422_v50, %v1206_v45  ;;  %v6254_v50 = vld [vmem:[%s7446_s23 + $0x20] sm:$0xff] }
 0x279   : > { %v6161_v53 = vpack.c.bf16 %v1423_v52, %v1421_v51 }
 0x27b   : > { %1871 = vrot.lane.b32.xlu0 %v1439_v26, %s5627_s7  ;;  %2075 = vrot.lane.b32.xlu1 %v6113_v5, %s5628_s2 }
 0x27c   : > { %1476 = vmatpush.bf16.xpose.msra.mxu3 %v1462_v42  ;;  %1810 = vrot.lane.b32.xlu2 %v6140_v39, %s5626_s8 }
 0x27d   : > { %1608 = vmatpush.bf16.msrb.mxu0 %v6161_v53 }
 0x281   : > { %1609 = vmatpush.bf16.msrb.mxu0 %v6140_v39 }
 0x283   : > { %1873 = vrot.lane.b32.xlu0 %v1440_v32, %s5627_s7  ;;  %1865 = vrot.lane.b32.xlu1 %v1436_v21, %s5627_s7 }
 0x284   : > { %1477 = vmatpush.bf16.xpose.msra.mxu3 %v1459_v48  ;;  %1806 = vrot.lane.b32.xlu2 %v6150_v47, %s5626_s8 }
 0x285   : > { %1610 = vmatpush.bf16.msrb.mxu0 %v6168_v55 }
 0x289   : > { %1611 = vmatpush.bf16.msrb.mxu0 %v6150_v47 }
 0x28b   : > { %2081 = vrot.lane.b32.xlu0 %v1437_v10, %s5628_s2  ;;  %4534 = vmatmul.msk.bf16.vlgmr.msra.gmra.mxu3 %vm1445_vm9, %v6107_v60 }
 0x28c   : > { %2079 = vrot.lane.b32.xlu2 %v1436_v21, %s5628_s2  ;;  %1812 = vrot.lane.b32.xlu1 %v6161_v53, %s5626_s8 }
 0x293   : > { %1643 = vrot.lane.b32.xlu0 %v1436_v21, %s5626_s8 }
 0x294   : > { %2240 = vrot.lane.b32.xlu1 %v6161_v53, %s5628_s2  ;;  %v1638_v57 = vpop.permute.xlu2 %1637 }
 0x29b   : > { %1861 = vrot.lane.b32.xlu0 %v6113_v5, %s5627_s7  ;;  %4535 = vmatmul.msk.bf16.gmra.mxu3 %vm1445_vm9, %v6113_v5 }
 0x2a3   : > { %2077 = vrot.lane.b32.xlu0 %v6122_v17, %s5628_s2 }
 0x2a4   : > { %v1640_v59 = vpop.permute.xlu2 %1639 }
 0x2ab   : > { %4536 = vmatmul.msk.bf16.gmra.mxu3 %vm1445_vm9, %v6122_v17  ;;  %1808 = vrot.lane.b32.xlu0 %v6168_v55, %s5626_s8 }
 0x2ac   : > { %v1870_v62 = vpop.permute.xlu2 %1869 }
 0x2ad   : > { %v1891_v23 = vsel %vm1445_vm9, %v1870_v62, 0 }
 0x2b4   : > { %v1868_v0 = vpop.permute.xlu2 %1867 }
 0x2b5   : > { %v1888_v41 = vsel %vm1445_vm9, %v1868_v0, 0 }
 0x2bb   : > { %4537 = vmatmul.msk.bf16.gmra.mxu3 %vm1445_vm9, %v1436_v21 }
 0x2bc   : > { %v6189_v5 = vpop.permute.xlu2 %2073 }
 0x2bd   : > { %v1652_v56 = vpop.permute.xlu1 %1651 }
 0x2be   : > { %v1673_v6 = vsel %vm1445_vm9, %v1652_v56, 0 }
 0x2c5   : > { %v1650_v58 = vpop.permute.xlu1 %1649 }
 0x2c6   : > { %v2088_v8 = vpop.permute.xlu2 %2087  ;;  %v1670_v33 = vsel %vm1445_vm9, %v1650_v58, 0 }
 0x2c7   : > { %v2111_v11 = vsel %vm1445_vm9, %v2088_v8, 0 }
 0x2cd   : > { %v6185_v60 = vpop.permute.xlu1 %1641 }
 0x2ce   : > { %v1864_v17 = vpop.permute.xlu2 %1863 }
 0x2d5   : > { %v2086_v61 = vpop.permute.xlu1 %2085 }
 0x2d6   : > { %v2108_v16 = vsel %vm1445_vm9, %v2086_v61, 0  ;;  %v1811_v26 = vpop.permute.xlu2 %1810 }
 0x2dd   : > { %v1656_v1 = vpop.permute.xlu0 %1655  ;;  %v2084_v2 = vpop.permute.xlu1 %2083 }
 0x2de   : > { %v1679_v63 = vsel %vm1445_vm9, %v1656_v1, 0  ;;  %v2105_v25 = vsel %vm1445_vm9, %v2084_v2, 0  ;;  %v1807_v20 = vpop.permute.xlu2 %1806  ;;  %v6288_v1 = vld [vmem:[%s7446_s23 + $0x38] sm:$0xff] }
 0x2df   : > { %1685 = vmatpush.bf16.xpose.msrb.mxu1 %v1679_v63 }
 0x2e5   : > { %v1654_v3 = vpop.permute.xlu0 %1653  ;;  %v1860_v30 = vpop.permute.xlu1 %1859 }
 0x2e6   : > { %v1676_v4 = vsel %vm1445_vm9, %v1654_v3, 0  ;;  %v2080_v3 = vpop.permute.xlu2 %2079 }
 0x2e7   : > { %1686 = vmatpush.bf16.xpose.msrb.mxu1 %v1676_v4 }
 0x2ed   : > { %v1872_v31 = vpop.permute.xlu0 %1871  ;;  %v6192_v7 = vpop.permute.xlu1 %2075 }
 0x2ee   : > { %v1894_v15 = vsel %vm1445_vm9, %v1872_v31, 0 }
 0x2ef   : > { %1687 = vmatpush.bf16.xpose.msrb.mxu1 %v1673_v6 }
 0x2f5   : > { %v1874_v9 = vpop.permute.xlu0 %1873  ;;  %v6197_v12 = vpop.permute.xlu1 %1865 }
 0x2f6   : > { %v1897_v10 = vsel %vm1445_vm9, %v1874_v9, 0 }
 0x2f7   : > { %1688 = vmatpush.bf16.xpose.msrb.mxu1 %v1670_v33  ;;  %1903 = vmatpush.bf16.xpose.msrb.mxu3 %v1897_v10 }
 0x2fd   : > { %v2082_v13 = vpop.permute.xlu0 %2081 }
 0x2fe   : > { %4542 = vmatmul.msk.bf16.vlgmr.msrb.gmra.mxu1 %vm1445_vm9, %v1638_v57  ;;  %v1813_v18 = vpop.permute.xlu1 %1812  ;;  %v2102_v32 = vsel %vm1445_vm9, %v2082_v13, 0 }
 0x2ff   : > { %2117 = vmatpush.bf16.xpose.msra.mxu1 %v2111_v11  ;;  %1904 = vmatpush.bf16.xpose.msrb.mxu3 %v1894_v15 }
 0x300   : > { %1834 = vmatpush.bf16.msrb.mxu2 %v1813_v18 }
 0x304   : > { %1835 = vmatpush.bf16.msrb.mxu2 %v1811_v26 }
 0x305   : > { %v1644_v22 = vpop.permute.xlu0 %1643 }
 0x306   : > { %v2241_v6 = vpop.permute.xlu1 %2240 }
 0x307   : > { %2118 = vmatpush.bf16.xpose.msra.mxu1 %v2108_v16  ;;  %1905 = vmatpush.bf16.xpose.msrb.mxu3 %v1891_v23 }
 0x30d   : > { %v1862_v29 = vpop.permute.xlu0 %1861 }
 0x30e   : > { %v1479_v24 = vpop.f32.mrf.mxu3  ;;  %4543 = vmatmul.msk.bf16.gmra.mxu1 %vm1445_vm9, %v1640_v59  ;;  %v6276_v59 = vld [vmem:[%s7446_s23 + $0x30] sm:$0xff] }
 0x30f   : > { %2119 = vmatpush.bf16.xpose.msra.mxu1 %v2105_v25  ;;  %v6213_v34 = vadd.f32 %v1479_v24, %v6207_v27  ;;  %1906 = vmatpush.bf16.xpose.msrb.mxu3 %v1888_v41 }
 0x311   : > { %v1500_v37 = vsel %vm1499_vm10, %v6213_v34, -inf }
 0x312   : > { %1501 = vmax.xlane.f32.xlu2 %v1500_v37 }
 0x315   : > { %v2078_v36 = vpop.permute.xlu0 %2077 }
 0x316   : > { %v1481_v45 = vpop.f32.mrf.mxu3  ;;  %4550 = vmatmul.msk.bf16.vlgmr.msrb.gmra.mxu3 %vm1445_vm9, %v1860_v30 }
 0x317   : > { %2120 = vmatpush.bf16.xpose.msra.mxu1 %v2102_v32  ;;  %v6224_v19 = vadd.f32 %v1481_v45, %v6220_v35 }
 0x319   : > { %v1503_v38 = vsel %vm1499_vm10, %v6224_v19, -inf }
 0x31a   : > { %1504 = vmax.xlane.f32.xlu2 %v1503_v38 }
 0x31d   : > { %v1809_v40 = vpop.permute.xlu0 %1808 }
 0x31e   : > { %v1484_v42 = vpop.f32.mrf.mxu3  ;;  %4544 = vmatmul.msk.bf16.gmra.mxu1 %vm1445_vm9, %v6185_v60  ;;  %1836 = vmatpush.bf16.msrb.mxu2 %v1809_v40 }
 0x31f   : > { %v6236_v43 = vadd.f32 %v1484_v42, %v6231_v28 }
 0x321   : > { %v1506_v44 = vsel %vm1499_vm10, %v6236_v43, -inf }
 0x322   : > { %1507 = vmax.xlane.f32.xlu2 %v1506_v44  ;;  %1837 = vmatpush.bf16.msrb.mxu2 %v1807_v20 }
 0x326   : > { %v1486_v21 = vpop.f32.mrf.mxu3  ;;  %4551 = vmatmul.msk.bf16.gmra.mxu3 %vm1445_vm9, %v1862_v29  ;;  %2262 = vmatpush.bf16.msra.mxu2 %v2241_v6 }
 0x327   : > { %v6247_v48 = vadd.f32 %v1486_v21, %v6243_v46 }
 0x329   : > { %v1509_v49 = vsel %vm1499_vm10, %v6247_v48, -inf }
 0x32a   : > { %1510 = vmax.xlane.f32.xlu0 %v1509_v49 }
 0x32e   : > { %v1489_v51 = vpop.f32.mrf.mxu3  ;;  %4545 = vmatmul.msk.bf16.gmra.mxu1 %vm1445_vm9, %v1644_v22 }
 0x32f   : > { %v6258_v52 = vadd.f32 %v1489_v51, %v6254_v50 }
 0x331   : > { %v1512_v54 = vsel %vm1499_vm10, %v6258_v52, -inf }
 0x332   : > { %1513 = vmax.xlane.f32.xlu0 %v1512_v54 }
 0x336   : > { %v1491_v56 = vpop.f32.mrf.mxu3  ;;  %4552 = vmatmul.msk.bf16.gmra.mxu3 %vm1445_vm9, %v1864_v17 }
 0x337   : > { %v6269_v57 = vadd.f32 %v1491_v56, %v6265_v14 }
 0x339   : > { %v1515_v58 = vsel %vm1499_vm10, %v6269_v57, -inf }
 0x33a   : > { %1516 = vmax.xlane.f32.xlu1 %v1515_v58 }
 0x33e   : > { %v1494_v60 = vpop.f32.mrf.mxu3  ;;  %4558 = vmatmul.msk.bf16.vlgmr.msra.gmra.mxu1 %vm1445_vm9, %v6189_v5 }
 0x33f   : > { %v6281_v61 = vadd.f32 %v1494_v60, %v6276_v59 }
 0x341   : > { %v1518_v62 = vsel %vm1499_vm10, %v6281_v61, -inf }
 0x342   : > { %1519 = vmax.xlane.f32.xlu2 %v1518_v62 }
 0x346   : > { %v1496_v63 = vpop.f32.mrf.mxu3  ;;  %4553 = vmatmul.msk.bf16.gmra.mxu3 %vm1445_vm9, %v6197_v12 }
 0x347   : > { %v6293_v2 = vadd.f32 %v1496_v63, %v6288_v1 }
 0x349   : > { %v1521_v0 = vsel %vm1499_vm10, %v6293_v2, -inf }
 0x34a   : > { %1522 = vmax.xlane.f32.xlu0 %v1521_v0 }
 0x34e   : > { %4559 = vmatmul.msk.bf16.gmra.mxu1 %vm1445_vm9, %v6192_v7 }
 0x35e   : > { %4560 = vmatmul.msk.bf16.gmra.mxu1 %vm1445_vm9, %v2078_v36 }
 0x36e   : > { %4561 = vmatmul.msk.bf16.gmra.mxu1 %vm1445_vm9, %v2080_v3 }
 0x37b   : > { %v1690_v4 = vpop.f32.mrf.mxu1 }
 0x37c   : > { %v6302_v30 = vadd.f32 %v1690_v4, %v6207_v27 }
 0x37e   : > { %v1710_v5 = vsel %vm1499_vm10, %v6302_v30, -inf }
 0x37f   : > { %1711 = vmax.xlane.f32.xlu0 %v1710_v5 }
 0x383   : > { %v1692_v31 = vpop.f32.mrf.mxu1 }
 0x384   : > { %v6322_v25 = vadd.f32 %v1692_v31, %v6220_v35 }
 0x385   : > { %v1502_v8 = vpop.xlane.xlu2 %1501 }
 0x386   : > { %v1524_v9 = vsub.f32 %v6213_v34, %v1502_v8  ;;  %v1713_v32 = vsel %vm1499_vm10, %v6322_v25, -inf }
 0x388   : > { %v1532_v7 = vmul.f32 1.442695, %v1524_v9 }
 0x38a   : > { %5250 = vpow2.f32 %v1532_v7 }
 0x38b   : > { %v1695_v33 = vpop.f32.mrf.mxu1 }
 0x38c   : > { %v6308_v10 = vadd.f32 %v1695_v33, %v6231_v28 }
 0x38d   : > { %v1505_v16 = vpop.xlane.xlu2 %1504 }
 0x38e   : > { %v1716_v11 = vsel %vm1499_vm10, %v6308_v10, -inf  ;;  %v1525_v38 = vsub.f32 %v6224_v19, %v1505_v16 }
 0x38f   : > { %1717 = vmax.xlane.f32.xlu0 %v1716_v11 }
 0x390   : > { %v6312_v12 = vpop.eup %5250  ;;  %v1534_v20 = vmul.f32 1.442695, %v1525_v38 }
 0x391   : > { %v1548_v15 = vsel %vm1499_vm10, %v6312_v12, 0.0 }
 0x393   : > { %v1697_v13 = vpop.f32.mrf.mxu1 }
 0x394   : > { %v6339_v44 = vadd.f32 %v1697_v13, %v6243_v46 }
 0x395   : > { %v1508_v26 = vpop.xlane.xlu2 %1507 }
 0x396   : > { %v1526_v41 = vsub.f32 %v6236_v43, %v1508_v26  ;;  %v1719_v58 = vsel %vm1499_vm10, %v6339_v44, -inf }
 0x397   : > { %1549 = vadd.xlane.f32.xlu0 %v1548_v15 }
 0x398   : > { %v1536_v34 = vmul.f32 1.442695, %v1526_v41 }
 0x399   : > { %v1908_v17 = vpop.f32.mrf.mxu3 }
 0x39a   : > { %v6317_v18 = vadd.f32 %v1908_v17, %v6207_v27  ;;  %5252 = vpow2.f32 %v1536_v34 }
 0x39b   : > { %v1700_v22 = vpop.f32.mrf.mxu1  ;;  %5254 = vpow2.f32 %v1534_v20 }
 0x39c   : > { %v1928_v23 = vsel %vm1499_vm10, %v6317_v18, -inf  ;;  %v6365_v6 = vadd.f32 %v1700_v22, %v6254_v50 }
 0x39d   : > { %1929 = vmax.xlane.f32.xlu1 %v1928_v23  ;;  %v1511_v21 = vpop.xlane.xlu0 %1510 }
 0x39e   : > { %v1527_v54 = vsub.f32 %v6247_v48, %v1511_v21  ;;  %v1722_v16 = vsel %vm1499_vm10, %v6365_v6, -inf }
 0x3a0   : > { %v6341_v51 = vpop.eup %5252  ;;  %v1538_v63 = vmul.f32 1.442695, %v1527_v54 }
 0x3a1   : > { %v1910_v29 = vpop.f32.mrf.mxu3  ;;  %v1554_v62 = vsel %vm1499_vm10, %v6341_v51, 0.0  ;;  %v6356_v3 = vpop.eup %5254 }
 0x3a2   : > { %v6328_v37 = vadd.f32 %v1910_v29, %v6220_v35  ;;  %5256 = vpow2.f32 %v1538_v63  ;;  %v1551_v31 = vsel %vm1499_vm10, %v6356_v3, 0.0 }
 0x3a3   : > { %v1702_v24 = vpop.f32.mrf.mxu1 }
 0x3a4   : > { %v1931_v42 = vsel %vm1499_vm10, %v6328_v37, -inf  ;;  %v6354_v0 = vadd.f32 %v1702_v24, %v6265_v14 }
 0x3a5   : > { %1714 = vmax.xlane.f32.xlu1 %v1713_v32  ;;  %v1514_v8 = vpop.xlane.xlu0 %1513 }
 0x3a6   : > { %v1725_v5 = vsel %vm1499_vm10, %v6354_v0, -inf  ;;  %v1528_v11 = vsub.f32 %v6258_v52, %v1514_v8 }
 0x3a8   : > { %v6367_v9 = vpop.eup %5256  ;;  %v1540_v22 = vmul.f32 1.442695, %v1528_v11 }
 0x3a9   : > { %v1913_v36 = vpop.f32.mrf.mxu3  ;;  %v1557_v15 = vsel %vm1499_vm10, %v6367_v9, 0.0 }
 0x3aa   : > { %v6331_v45 = vadd.f32 %v1913_v36, %v6231_v28  ;;  %5258 = vpow2.f32 %v1540_v22 }
 0x3ab   : > { %v1705_v40 = vpop.f32.mrf.mxu1 }
 0x3ac   : > { %v1934_v43 = vsel %vm1499_vm10, %v6331_v45, -inf  ;;  %v6380_v26 = vadd.f32 %v1705_v40, %v6276_v59 }
 0x3ad   : > { %1932 = vmax.xlane.f32.xlu1 %v1931_v42  ;;  %1935 = vmax.xlane.f32.xlu0 %v1934_v43  ;;  %v1517_v24 = vpop.xlane.xlu1 %1516 }
 0x3ae   : > { %v1529_v42 = vsub.f32 %v6269_v57, %v1517_v24  ;;  %v1728_v40 = vsel %vm1499_vm10, %v6380_v26, -inf }
 0x3b0   : > { %v6397_v54 = vpop.eup %5258 }
 0x3b1   : > { %v1915_v49 = vpop.f32.mrf.mxu3  ;;  %v1560_v63 = vsel %vm1499_vm10, %v6397_v54, 0.0 }
 0x3b2   : > { %v6344_v19 = vadd.f32 %v1915_v49, %v6243_v46  ;;  %v1542_v49 = vmul.f32 1.442695, %v1529_v42 }
 0x3b3   : > { %v1707_v56 = vpop.f32.mrf.mxu1 }
 0x3b4   : > { %v1937_v60 = vsel %vm1499_vm10, %v6344_v19, -inf }
 0x3b5   : > { %1720 = vmax.xlane.f32.xlu1 %v1719_v58  ;;  %1938 = vmax.xlane.f32.xlu2 %v1937_v60  ;;  %v1520_v23 = vpop.xlane.xlu2 %1519 }
 0x3b6   : > { %1555 = vadd.xlane.f32.xlu0 %v1554_v62  ;;  %v1530_v32 = vsub.f32 %v6281_v61, %v1520_v23 }
 0x3b8   : > { %v1544_v61 = vmul.f32 1.442695, %v1530_v32 }
 0x3b9   : > { %v1918_v48 = vpop.f32.mrf.mxu3 }
 0x3ba   : > { %v6383_v52 = vadd.f32 %v1918_v48, %v6254_v50  ;;  %5260 = vpow2.f32 %v1544_v61 }
 0x3bb   : > { %v6358_v4 = vpop.f32.mrf.mxu1 }
 0x3bc   : > { %v1940_v43 = vsel %vm1499_vm10, %v6383_v52, -inf  ;;  %v6431_v22 = vadd.f32 %v6358_v4, %v6207_v27 }
 0x3bd   : > { %1726 = vmax.xlane.f32.xlu2 %v1725_v5  ;;  %1552 = vadd.xlane.f32.xlu1 %v1551_v31  ;;  %v1523_v29 = vpop.xlane.xlu0 %1522 }
 0x3be   : > { %v1531_v36 = vsub.f32 %v6293_v2, %v1523_v29  ;;  %v6400_v2 = vadd.f32 %v1707_v56, %v6288_v1 }
 0x3c0   : > { %v1546_v21 = vmul.f32 1.442695, %v1531_v36  ;;  %v1731_v56 = vsel %vm1499_vm10, %v6400_v2, -inf  ;;  %v6411_v48 = vpop.eup %5260 }
 0x3c1   : > { %v1920_v7 = vpop.f32.mrf.mxu3  ;;  %v1566_v11 = vsel %vm1499_vm10, %v6411_v48, 0.0 }
 0x3c2   : > { %v6370_v33 = vadd.f32 %v1920_v7, %v6265_v14  ;;  %5262 = vpow2.f32 %v1546_v21 }
 0x3c3   : > { %v2124_v13 = vpop.f32.mrf.mxu1  ;;  %5264 = vpow2.f32 %v1542_v49 }
 0x3c4   : > { %v1943_v17 = vsel %vm1499_vm10, %v6370_v33, -inf }
 0x3c5   : > { %1558 = vadd.xlane.f32.xlu2 %v1557_v15  ;;  %1723 = vmax.xlane.f32.xlu1 %v1722_v16  ;;  %v6424_v16 = vadd.f32 %v2124_v13, %v6220_v35 }
 0x3c6   : > { %1944 = vmax.xlane.f32.xlu0 %v1943_v17 }
 0x3c7   : > { %v2145_v24 = vsel %vm1499_vm10, %v6424_v16, -inf }
 0x3c8   : > { %v6413_v5 = vpop.eup %5262 }
 0x3c9   : > { %v1923_v41 = vpop.f32.mrf.mxu3  ;;  %v6415_v31 = vpop.eup %5264  ;;  %v1569_v7 = vsel %vm1499_vm10, %v6413_v5, 0.0 }
 0x3ca   : > { %v6387_v34 = vadd.f32 %v1923_v41, %v6276_v59  ;;  %v1563_v15 = vsel %vm1499_vm10, %v6415_v31, 0.0  ;;  %v2142_v41 = vsel %vm1499_vm10, %v6431_v22, -inf }
 0x3cb   : > { %v2127_v38 = vpop.f32.mrf.mxu1 }
 0x3cc   : > { %v1946_v20 = vsel %vm1499_vm10, %v6387_v34, -inf  ;;  %v6427_v17 = vadd.f32 %v2127_v38, %v6231_v28 }
 0x3cd   : > { %1729 = vmax.xlane.f32.xlu2 %v1728_v40  ;;  %1941 = vmax.xlane.f32.xlu1 %v1940_v43 }
 0x3ce   : > { %1947 = vmax.xlane.f32.xlu0 %v1946_v20  ;;  %v2148_v29 = vsel %vm1499_vm10, %v6427_v17, -inf }
 0x3d1   : > { %v1925_v57 = vpop.f32.mrf.mxu3 }
 0x3d2   : > { %v6403_v58 = vadd.f32 %v1925_v57, %v6288_v1 }
 0x3d3   : > { %v2129_v60 = vpop.f32.mrf.mxu1 }
 0x3d4   : > { %v1949_v62 = vsel %vm1499_vm10, %v6403_v58, -inf  ;;  %v6446_v27 = vadd.f32 %v2129_v60, %v6243_v46 }
 0x3d5   : > { %1950 = vmax.xlane.f32.xlu2 %v1949_v62  ;;  %1561 = vadd.xlane.f32.xlu1 %v1560_v63 }
 0x3d6   : > { %1732 = vmax.xlane.f32.xlu0 %v1731_v56  ;;  %v2151_v36 = vsel %vm1499_vm10, %v6446_v27, -inf }
 0x3db   : > { %v2132_v8 = vpop.f32.mrf.mxu1 }
 0x3dc   : > { %v6440_v35 = vadd.f32 %v2132_v8, %v6254_v50 }
 0x3dd   : > { %1570 = vadd.xlane.f32.xlu1 %v1569_v7  ;;  %1567 = vadd.xlane.f32.xlu2 %v1566_v11 }
 0x3de   : > { %1564 = vadd.xlane.f32.xlu0 %v1563_v15  ;;  %v2154_v32 = vsel %vm1499_vm10, %v6440_v35, -inf }
 0x3e3   : > { %v2134_v23 = vpop.f32.mrf.mxu1 }
 0x3e4   : > { %v6443_v28 = vadd.f32 %v2134_v23, %v6265_v14 }
 0x3e5   : > { %2149 = vmax.xlane.f32.xlu1 %v2148_v29  ;;  %2146 = vmax.xlane.f32.xlu2 %v2145_v24 }
 0x3e6   : > { %2143 = vmax.xlane.f32.xlu0 %v2142_v41  ;;  %v2157_v13 = vsel %vm1499_vm10, %v6443_v28, -inf }
 0x3eb   : > { %v2137_v4 = vpop.f32.mrf.mxu1 }
 0x3ec   : > { %v6455_v50 = vadd.f32 %v2137_v4, %v6276_v59 }
 0x3ed   : > { %2158 = vmax.xlane.f32.xlu1 %v2157_v13  ;;  %2155 = vmax.xlane.f32.xlu2 %v2154_v32 }
 0x3ee   : > { %2152 = vmax.xlane.f32.xlu0 %v2151_v36  ;;  %v2160_v43 = vsel %vm1499_vm10, %v6455_v50, -inf }
 0x3f2   : > { %v1712_v14 = vpop.xlane.xlu0 %1711 }
 0x3f3   : > { %v1734_v46 = vsub.f32 %v6302_v30, %v1712_v14  ;;  %v2139_v38 = vpop.f32.mrf.mxu1 }
 0x3f4   : > { %v6459_v42 = vadd.f32 %v2139_v38, %v6288_v1 }
 0x3f5   : > { %v1742_v40 = vmul.f32 1.442695, %v1734_v46 }
 0x3f6   : > { %2161 = vmax.xlane.f32.xlu0 %v2160_v43  ;;  %v2163_v20 = vsel %vm1499_vm10, %v6459_v42, -inf }
 0x3f7   : > { %5266 = vpow2.f32 %v1742_v40  ;;  %2164 = vmax.xlane.f32.xlu2 %v2163_v20 }
 0x3fd   : > { %v6465_v61 = vpop.eup %5266 }
 0x3fe   : > { %v1758_v59 = vsel %vm1499_vm10, %v6465_v61, 0.0 }
 0x3ff   : > { %1759 = vadd.xlane.f32.xlu2 %v1758_v59 }
 0x402   : > { %v1718_v30 = vpop.xlane.xlu0 %1717 }
 0x403   : > { %v1736_v49 = vsub.f32 %v6308_v10, %v1718_v30 }
 0x405   : > { %v1746_v60 = vmul.f32 1.442695, %v1736_v49 }
 0x410   : > { %v1930_v21 = vpop.xlane.xlu1 %1929 }
 0x411   : > { %v1952_v1 = vsub.f32 %v6317_v18, %v1930_v21  ;;  %v1550_v18 = vpop.xlane.xlu0 %1549 }
 0x413   : > { %v1960_v57 = vmul.f32 1.442695, %v1952_v1 }
 0x415   : > { %5268 = vpow2.f32 %v1960_v57 }
 0x416   : > { %5270 = vpow2.f32 %v1746_v60 }
 0x417   : > { %2026 = vrot.lane.b32.xlu2 %v6161_v53, %s5627_s7 }
 0x418   : > { %v1715_v62 = vpop.xlane.xlu1 %1714 }
 0x419   : > { %v1735_v63 = vsub.f32 %v6322_v25, %v1715_v62 }
 0x41b   : > { %v6474_v56 = vpop.eup %5268  ;;  %v1744_v8 = vmul.f32 1.442695, %v1735_v63 }
 0x41c   : > { %v1976_v7 = vsel %vm1499_vm10, %v6474_v56, 0.0  ;;  %v6480_v11 = vpop.eup %5270 }
 0x41d   : > { %5272 = vpow2.f32 %v1744_v8  ;;  %1977 = vadd.xlane.f32.xlu1 %v1976_v7  ;;  %v1764_v53 = vsel %vm1499_vm10, %v6480_v11, 0.0 }
 0x420   : > { %v6478_v10 = vpop.xlane.xlu1 %1932  ;;  %v6488_v23 = vpop.xlane.xlu0 %1935 }
 0x423   : > { %v6482_v15 = vpop.eup %5272 }
 0x424   : > { %v1761_v25 = vsel %vm1499_vm10, %v6482_v15, 0.0 }
 0x425   : > { %1765 = vadd.xlane.f32.xlu1 %v1764_v53  ;;  %1762 = vadd.xlane.f32.xlu0 %v1761_v25 }
 0x428   : > { %v1721_v29 = vpop.xlane.xlu1 %1720  ;;  %v6490_v24 = vpop.xlane.xlu2 %1938 }
 0x429   : > { %v1737_v41 = vsub.f32 %v6339_v44, %v1721_v29  ;;  %v1556_v36 = vpop.xlane.xlu0 %1555 }
 0x42b   : > { %v1748_v4 = vmul.f32 1.442695, %v1737_v41 }
 0x42d   : > { %5274 = vpow2.f32 %v1748_v4 }
 0x42e   : > { %5276 = vrcp.f32 %v1550_v18 }
 0x430   : > { %v1553_v13 = vpop.xlane.xlu1 %1552  ;;  %v1727_v32 = vpop.xlane.xlu2 %1726 }
 0x431   : > { %5278 = vrcp.f32 %v1553_v13  ;;  %v1739_v14 = vsub.f32 %v6354_v0, %v1727_v32 }
 0x433   : > { %v6494_v46 = vpop.eup %5274  ;;  %v1752_v38 = vmul.f32 1.442695, %v1739_v14 }
 0x434   : > { %v1767_v40 = vsel %vm1499_vm10, %v6494_v46, 0.0  ;;  %v5277_v43 = vpop.eup %5276 }
 0x435   : > { %5280 = vpow2.f32 %v1752_v38  ;;  %1768 = vadd.xlane.f32.xlu1 %v1767_v40  ;;  %v1580_v44 = vmul.f32 %v5277_v43, %v6312_v12 }
 0x437   : > { %v5279_v20 = vpop.eup %5278 }
 0x438   : > { %v1581_v59 = vmul.f32 %v5279_v20, %v6356_v3  ;;  %v1724_v30 = vpop.xlane.xlu1 %1723  ;;  %v1559_v21 = vpop.xlane.xlu2 %1558 }
 0x439   : > { %v1738_v1 = vsub.f32 %v6365_v6, %v1724_v30  ;;  %v6501_v49 = vpop.xlane.xlu0 %1944  ;;  %2238 = vrot.lane.b32.xlu0 %v6140_v39, %s5628_s2  ;;  %5282 = vrcp.f32 %v1559_v21 }
 0x43a   : > { %v1588_v0 = vpack.c.bf16 %v1581_v59, %v1580_v44 }
 0x43b   : > { %v6505_v57 = vpop.eup %5280  ;;  %v1750_v60 = vmul.f32 1.442695, %v1738_v1 }
 0x43c   : > { %4538 = vmatmul.msk.bf16.vlgmr.msrb.gmra.mxu0 %vm1499_vm10, %v1588_v0  ;;  %v1773_v12 = vsel %vm1499_vm10, %v6505_v57, 0.0 }
 0x43d   : > { %5284 = vpow2.f32 %v1750_v60  ;;  %1774 = vadd.xlane.f32.xlu1 %v1773_v12 }
 0x43e   : > { %5286 = vrcp.f32 %v1556_v36 }
 0x43f   : > { %v5283_v62 = vpop.eup %5282 }
 0x440   : > { %v1730_v3 = vpop.xlane.xlu2 %1729  ;;  %v6514_v8 = vpop.xlane.xlu1 %1941  ;;  %v1583_v53 = vmul.f32 %v5283_v62, %v6367_v9 }
 0x441   : > { %v6510_v6 = vpop.xlane.xlu0 %1947  ;;  %v1740_v36 = vsub.f32 %v6380_v26, %v1730_v3 }
 0x443   : > { %v6512_v63 = vpop.eup %5284  ;;  %v1754_v38 = vmul.f32 1.442695, %v1740_v36 }
 0x444   : > { %v1770_v7 = vsel %vm1499_vm10, %v6512_v63, 0.0  ;;  %v5287_v18 = vpop.eup %5286 }
 0x445   : > { %1771 = vadd.xlane.f32.xlu2 %v1770_v7  ;;  %v1582_v29 = vmul.f32 %v5287_v18, %v6341_v51  ;;  %v1953_v51 = vsub.f32 %v6328_v37, %v6478_v10 }
 0x447   : > { %v1589_v4 = vpack.c.bf16 %v1583_v53, %v1582_v29  ;;  %v1962_v30 = vmul.f32 1.442695, %v1953_v51 }
 0x448   : > { %v6519_v25 = vpop.xlane.xlu2 %1950  ;;  %v1562_v13 = vpop.xlane.xlu1 %1561 }
 0x449   : > { %v6522_v41 = vpop.xlane.xlu0 %1732  ;;  %5288 = vrcp.f32 %v1562_v13  ;;  %v1959_v36 = vsub.f32 %v6403_v58, %v6519_v25 }
 0x44c   : > { %4539 = vmatmul.msk.bf16.gmra.mxu0 %vm1499_vm10, %v1589_v4 }
 0x44f   : > { %v5289_v40 = vpop.eup %5288 }
 0x450   : > { %v1568_v32 = vpop.xlane.xlu2 %1567  ;;  %v1584_v20 = vmul.f32 %v5289_v40, %v6397_v54  ;;  %v1571_v59 = vpop.xlane.xlu1 %1570 }
 0x451   : > { %v1565_v14 = vpop.xlane.xlu0 %1564 }
 0x452   : > { %5290 = vrcp.f32 %v1565_v14  ;;  %v1974_v14 = vmul.f32 1.442695, %v1959_v36 }
 0x453   : > { %5292 = vpow2.f32 %v1754_v38 }
 0x454   : > { %5294 = vrcp.f32 %v1571_v59  ;;  %v1741_v59 = vsub.f32 %v6400_v2, %v6522_v41 }
 0x455   : > { %5296 = vrcp.f32 %v1568_v32 }
 0x456   : > { %2022 = vrot.lane.b32.xlu1 %v6168_v55, %s5627_s7  ;;  %5298 = vpow2.f32 %v1962_v30 }
 0x458   : > { %v5291_v9 = vpop.eup %5290  ;;  %v6528_v43 = vpop.xlane.xlu2 %2146 }
 0x459   : > { %v1585_v44 = vmul.f32 %v5291_v9, %v6415_v31  ;;  %v2144_v21 = vpop.xlane.xlu0 %2143  ;;  %v6537_v1 = vpop.eup %5292  ;;  %v2167_v2 = vsub.f32 %v6424_v16, %v6528_v43 }
 0x45a   : > { %v2166_v37 = vsub.f32 %v6431_v22, %v2144_v21  ;;  %v1776_v54 = vsel %vm1499_vm10, %v6537_v1, 0.0  ;;  %v5295_v31 = vpop.eup %5294  ;;  %v1954_v22 = vsub.f32 %v6331_v45, %v6488_v23  ;;  %v6564_v13 = vpop.xlane.xlu1 %2149 }
 0x45b   : > { %v1590_v26 = vpack.c.bf16 %v1585_v44, %v1584_v20  ;;  %v5297_v0 = vpop.eup %5296  ;;  %v1587_v3 = vmul.f32 %v5295_v31, %v6413_v5 }
 0x45c   : > { %v2174_v60 = vmul.f32 1.442695, %v2166_v37  ;;  %v6544_v12 = vpop.eup %5298  ;;  %v1964_v53 = vmul.f32 1.442695, %v1954_v22  ;;  %v1756_v37 = vmul.f32 1.442695, %v1741_v59 }
 0x45d   : > { %4540 = vmatmul.msk.bf16.gmra.mxu0 %vm1499_vm10, %v1590_v26  ;;  %2236 = vrot.lane.b32.xlu2 %v6168_v55, %s5628_s2  ;;  %v1586_v55 = vmul.f32 %v5297_v0, %v6411_v48  ;;  %v1979_v7 = vsel %vm1499_vm10, %v6544_v12, 0.0  ;;  %v2176_v0 = vmul.f32 1.442695, %v2167_v2 }
 0x45e   : > { %5300 = vpow2.f32 %v2174_v60 }
 0x45f   : > { %v1591_v18 = vpack.c.bf16 %v1587_v3, %v1586_v55  ;;  %5302 = vpow2.f32 %v1964_v53 }
 0x460   : > { %v2156_v10 = vpop.xlane.xlu2 %2155 }
 0x461   : > { %v2153_v48 = vpop.xlane.xlu0 %2152 }
 0x462   : > { %v2169_v45 = vsub.f32 %v6446_v27, %v2153_v48  ;;  %v2159_v51 = vpop.xlane.xlu1 %2158 }
 0x463   : > { %1777 = vadd.xlane.f32.xlu0 %v1776_v54 }
 0x464   : > { %v6559_v5 = vpop.eup %5300  ;;  %v2180_v32 = vmul.f32 1.442695, %v2169_v45 }
 0x465   : > { %2024 = vrot.lane.b32.xlu2 %v6140_v39, %s5627_s7  ;;  %v1955_v39 = vsub.f32 %v6344_v19, %v6490_v24  ;;  %v2190_v4 = vsel %vm1499_vm10, %v6559_v5, 0.0  ;;  %v6568_v19 = vpop.eup %5302  ;;  %v2170_v24 = vsub.f32 %v6440_v35, %v2156_v10  ;;  %v2171_v35 = vsub.f32 %v6443_v28, %v2159_v51 }
 0x466   : > { %v1982_v38 = vsel %vm1499_vm10, %v6568_v19, 0.0  ;;  %v1956_v28 = vsub.f32 %v6383_v52, %v6514_v8 }
 0x467   : > { %v1966_v23 = vmul.f32 1.442695, %v1955_v39  ;;  %v2182_v9 = vmul.f32 1.442695, %v2170_v24  ;;  %v2184_v26 = vmul.f32 1.442695, %v2171_v35 }
 0x468   : > { %v1968_v41 = vmul.f32 1.442695, %v1956_v28 }
 0x469   : > { %5304 = vpow2.f32 %v1966_v23  ;;  %v2162_v54 = vpop.xlane.xlu0 %2161 }
 0x46a   : > { %v6550_v62 = vpop.xlane.xlu2 %2164  ;;  %5306 = vpow2.f32 %v2180_v32  ;;  %v2172_v60 = vsub.f32 %v6455_v50, %v2162_v54  ;;  %v1958_v50 = vsub.f32 %v6387_v34, %v6510_v6 }
 0x46b   : > { %1980 = vadd.xlane.f32.xlu0 %v1979_v7  ;;  %5308 = vpow2.f32 %v1974_v14  ;;  %v2173_v54 = vsub.f32 %v6459_v42, %v6550_v62 }
 0x46c   : > { %5310 = vpow2.f32 %v2182_v9  ;;  %v2186_v8 = vmul.f32 1.442695, %v2172_v60  ;;  %v1972_v53 = vmul.f32 1.442695, %v1958_v50 }
 0x46d   : > { %4541 = vmatmul.msk.bf16.gmra.mxu0 %vm1499_vm10, %v1591_v18  ;;  %2234 = vrot.lane.b32.xlu2 %v6150_v47, %s5628_s2  ;;  %5312 = vpow2.f32 %v2184_v26 }
 0x46e   : > { %5314 = vpow2.f32 %v1756_v37 }
 0x46f   : > { %v6573_v40 = vpop.eup %5304  ;;  %5316 = vpow2.f32 %v1968_v41  ;;  %v1957_v41 = vsub.f32 %v6370_v33, %v6501_v49 }
 0x470   : > { %v6575_v20 = vpop.eup %5306  ;;  %v1985_v58 = vsel %vm1499_vm10, %v6573_v40, 0.0  ;;  %5318 = vpow2.f32 %v2176_v0 }
 0x471   : > { %v2199_v25 = vsel %vm1499_vm10, %v6575_v20, 0.0  ;;  %v6582_v44 = vpop.eup %5308 }
 0x472   : > { %v1760_v29 = vpop.xlane.xlu2 %1759  ;;  %v6586_v30 = vpop.eup %5310  ;;  %v1997_v21 = vsel %vm1499_vm10, %v6582_v44, 0.0 }
 0x473   : > { %2191 = vadd.xlane.f32.xlu0 %v2190_v4  ;;  %v2202_v10 = vsel %vm1499_vm10, %v6586_v30, 0.0  ;;  %v6596_v31 = vpop.eup %5312  ;;  %5320 = vrcp.f32 %v1760_v29 }
 0x474   : > { %v6599_v55 = vpop.eup %5314  ;;  %v2205_v52 = vsel %vm1499_vm10, %v6596_v31, 0.0  ;;  %5322 = vpow2.f32 %v2186_v8 }
 0x475   : > { %v1779_v3 = vsel %vm1499_vm10, %v6599_v55, 0.0  ;;  %v6607_v43 = vpop.eup %5316 }
 0x476   : > { %v6611_v7 = vpop.eup %5318  ;;  %v1988_v18 = vsel %vm1499_vm10, %v6607_v43, 0.0 }
 0x477   : > { %v2193_v39 = vsel %vm1499_vm10, %v6611_v7, 0.0 }
 0x479   : > { %v5321_v48 = vpop.eup %5320 }
 0x47a   : > { %v2027_v27 = vpop.permute.xlu2 %2026  ;;  %v6617_v45 = vpop.eup %5322  ;;  %v1790_v34 = vmul.f32 %v5321_v48, %v6465_v61 }
 0x47b   : > { %1983 = vadd.xlane.f32.xlu0 %v1982_v38  ;;  %2048 = vmatpush.bf16.msra.mxu0 %v2027_v27  ;;  %v2208_v4 = vsel %vm1499_vm10, %v6617_v45, 0.0 }
 0x480   : > { %1986 = vadd.xlane.f32.xlu1 %v1985_v58 }
 0x483   : > { %2200 = vadd.xlane.f32.xlu0 %v2199_v25 }
 0x488   : > { %1998 = vadd.xlane.f32.xlu1 %v1997_v21 }
 0x48b   : > { %2203 = vadd.xlane.f32.xlu0 %v2202_v10 }
 0x490   : > { %v6605_v16 = vpop.xlane.xlu1 %1977 }
 0x493   : > { %2206 = vadd.xlane.f32.xlu0 %v2205_v52 }
 0x496   : > { %1780 = vadd.xlane.f32.xlu2 %v1779_v3 }
 0x498   : > { %v1763_v22 = vpop.xlane.xlu0 %1762  ;;  %v1766_v29 = vpop.xlane.xlu1 %1765 }
 0x499   : > { %5324 = vrcp.f32 %v1763_v22 }
 0x49a   : > { %5326 = vpow2.f32 %v1972_v53 }
 0x49b   : > { %1989 = vadd.xlane.f32.xlu0 %v1988_v18  ;;  %5328 = vrcp.f32 %v1766_v29 }
 0x49e   : > { %2194 = vadd.xlane.f32.xlu2 %v2193_v39 }
 0x49f   : > { %v5325_v23 = vpop.eup %5324 }
 0x4a0   : > { %v1791_v6 = vmul.f32 %v5325_v23, %v6482_v15  ;;  %v6624_v36 = vpop.eup %5326 }
 0x4a1   : > { %v1994_v14 = vsel %vm1499_vm10, %v6624_v36, 0.0  ;;  %v5329_v61 = vpop.eup %5328 }
 0x4a2   : > { %v1798_v32 = vpack.c.bf16 %v1791_v6, %v1790_v34  ;;  %v1792_v38 = vmul.f32 %v5329_v61, %v6480_v11 }
 0x4a3   : > { %2209 = vadd.xlane.f32.xlu0 %v2208_v4 }
 0x4a4   : > { %4546 = vmatmul.msk.bf16.vlgmr.msrb.gmra.mxu2 %vm1499_vm10, %v1798_v32 }
 0x4a8   : > { %v1769_v24 = vpop.xlane.xlu1 %1768 }
 0x4a9   : > { %5330 = vrcp.f32 %v1769_v24 }
 0x4ab   : > { %v2239_v27 = vpop.permute.xlu0 %2238  ;;  %1995 = vadd.xlane.f32.xlu0 %v1994_v14 }
 0x4ac   : > { %2263 = vmatpush.bf16.msra.mxu2 %v2239_v27 }
 0x4af   : > { %v5331_v15 = vpop.eup %5330 }
 0x4b0   : > { %v1793_v9 = vmul.f32 %v5331_v15, %v6494_v46  ;;  %v1775_v58 = vpop.xlane.xlu1 %1774 }
 0x4b1   : > { %5332 = vrcp.f32 %v1775_v58 }
 0x4b2   : > { %v1799_v51 = vpack.c.bf16 %v1793_v9, %v1792_v38 }
 0x4b4   : > { %4547 = vmatmul.msk.bf16.gmra.mxu2 %vm1499_vm10, %v1799_v51 }
 0x4b6   : > { %2020 = vrot.lane.b32.xlu2 %v6150_v47, %s5627_s7  ;;  %v2168_v47 = vsub.f32 %v6427_v17, %v6564_v13  ;;  %v2188_v17 = vmul.f32 1.442695, %v2173_v54 }
 0x4b7   : > { %v5333_v25 = vpop.eup %5332 }
 0x4b8   : > { %v1772_v35 = vpop.xlane.xlu2 %1771  ;;  %v1795_v37 = vmul.f32 %v5333_v25, %v6505_v57  ;;  %v2178_v2 = vmul.f32 1.442695, %v2168_v47 }
 0x4b9   : > { %5334 = vrcp.f32 %v1772_v35  ;;  %v6668_v25 = vpop.f32.mrf.mxu0 }
 0x4ba   : > { %5336 = vpow2.f32 %v2178_v2 }
 0x4bf   : > { %v5335_v59 = vpop.eup %5334 }
 0x4c0   : > { %v2237_v26 = vpop.permute.xlu2 %2236  ;;  %v1794_v21 = vmul.f32 %v5335_v59, %v6512_v63  ;;  %v1970_v63 = vmul.f32 1.442695, %v1957_v41  ;;  %v6640_v57 = vpop.eup %5336 }
 0x4c1   : > { %2264 = vmatpush.bf16.msra.mxu2 %v2237_v26  ;;  %v2196_v0 = vsel %vm1499_vm10, %v6640_v57, 0.0 }
 0x4c2   : > { %v1800_v11 = vpack.c.bf16 %v1795_v37, %v1794_v21  ;;  %5338 = vpow2.f32 %v1970_v63 }
 0x4c3   : > { %5340 = vpow2.f32 %v2188_v17 }
 0x4c4   : > { %4548 = vmatmul.msk.bf16.gmra.mxu2 %vm1499_vm10, %v1800_v11 }
 0x4c8   : > { %v2025_v46 = vpop.permute.xlu2 %2024  ;;  %v2023_v28 = vpop.permute.xlu1 %2022 }
 0x4c9   : > { %2049 = vmatpush.bf16.msra.mxu0 %v2025_v46  ;;  %v6646_v13 = vpop.eup %5338 }
 0x4ca   : > { %v1991_v60 = vsel %vm1499_vm10, %v6646_v13, 0.0  ;;  %v6650_v33 = vpop.eup %5340 }
 0x4cb   : > { %v2211_v49 = vsel %vm1499_vm10, %v6650_v33, 0.0 }
 0x4cd   : > { %2050 = vmatpush.bf16.msra.mxu0 %v2023_v28 }
 0x4d0   : > { %v2235_v10 = vpop.permute.xlu2 %2234 }
 0x4d1   : > { %2265 = vmatpush.bf16.msra.mxu2 %v2235_v10 }
 0x4d6   : > { %v1778_v52 = vpop.xlane.xlu0 %1777 }
 0x4d7   : > { %5342 = vrcp.f32 %v1778_v52 }
 0x4dd   : > { %v5343_v8 = vpop.eup %5342 }
 0x4de   : > { %v1981_v42 = vpop.xlane.xlu0 %1980  ;;  %v1796_v50 = vmul.f32 %v5343_v8, %v6537_v1 }
 0x4df   : > { %2197 = vadd.xlane.f32.xlu2 %v2196_v0 }
 0x4e6   : > { %v2192_v53 = vpop.xlane.xlu0 %2191 }
 0x4e7   : > { %1992 = vadd.xlane.f32.xlu2 %v1991_v60 }
 0x4ee   : > { %v1984_v1 = vpop.xlane.xlu0 %1983 }
 0x4ef   : > { %2212 = vadd.xlane.f32.xlu2 %v2211_v49 }
 0x4f3   : > { %v1987_v4 = vpop.xlane.xlu1 %1986 }
 0x4f6   : > { %v2201_v35 = vpop.xlane.xlu0 %2200 }
 0x509   : > { %v1781_v62 = vpop.xlane.xlu2 %1780 }
 0x50a   : > { %5344 = vrcp.f32 %v1781_v62 }
 0x50b   : > { %5346 = vrcp.f32 %v1981_v42 }
 0x50c   : > { %5348 = vrcp.f32 %v6605_v16 }
 0x510   : > { %v5345_v3 = vpop.eup %5344 }
 0x511   : > { %v2195_v22 = vpop.xlane.xlu2 %2194  ;;  %v1797_v18 = vmul.f32 %v5345_v3, %v6599_v55  ;;  %v5347_v48 = vpop.eup %5346 }
 0x512   : > { %v5349_v23 = vpop.eup %5348  ;;  %5350 = vrcp.f32 %v2195_v22  ;;  %v2009_v29 = vmul.f32 %v5347_v48, %v6544_v12 }
 0x513   : > { %v1801_v39 = vpack.c.bf16 %v1797_v18, %v1796_v50  ;;  %5352 = vrcp.f32 %v2192_v53  ;;  %v2008_v34 = vmul.f32 %v5349_v23, %v6474_v56 }
 0x514   : > { %5354 = vrcp.f32 %v1987_v4 }
 0x515   : > { %4549 = vmatmul.msk.bf16.gmra.mxu2 %vm1499_vm10, %v1801_v39  ;;  %v2016_v16 = vpack.c.bf16 %v2009_v29, %v2008_v34  ;;  %5356 = vrcp.f32 %v1984_v1 }
 0x516   : > { %5358 = vrcp.f32 %v2201_v35 }
 0x518   : > { %v5351_v32 = vpop.eup %5350 }
 0x519   : > { %v2021_v6 = vpop.permute.xlu2 %2020  ;;  %v5353_v55 = vpop.eup %5352  ;;  %v2223_v24 = vmul.f32 %v5351_v32, %v6611_v7 }
 0x51a   : > { %2051 = vmatpush.bf16.msra.mxu0 %v2021_v6  ;;  %v2222_v14 = vmul.f32 %v5353_v55, %v6559_v5  ;;  %v5355_v12 = vpop.eup %5354  ;;  %v2204_v7 = vpop.xlane.xlu0 %2203 }
 0x51b   : > { %v5357_v56 = vpop.eup %5356  ;;  %v2011_v61 = vmul.f32 %v5355_v12, %v6573_v40  ;;  %v6670_v40 = vpop.f32.mrf.mxu0 }
 0x51c   : > { %v2230_v27 = vpack.c.bf16 %v2223_v24, %v2222_v14  ;;  %v2010_v38 = vmul.f32 %v5357_v56, %v6568_v19  ;;  %v5359_v21 = vpop.eup %5358 }
 0x51d   : > { %4554 = vmatmul.msk.bf16.vlgmr.msra.gmra.mxu0 %vm1499_vm10, %v2016_v16  ;;  %v2225_v28 = vmul.f32 %v5359_v21, %v6575_v20 }
 0x51e   : > { %v2017_v9 = vpack.c.bf16 %v2011_v61, %v2010_v38 }
 0x522   : > { %v2207_v5 = vpop.xlane.xlu0 %2206 }
 0x523   : > { %v6675_v2 = vpop.f32.mrf.mxu0 }
 0x525   : > { %4562 = vmatmul.msk.bf16.vlgmr.msra.gmra.mxu2 %vm1499_vm10, %v2230_v27 }
 0x527   : > { %v1839_v15 = vpop.f32.mrf.mxu2 }
 0x52a   : > { %v1990_v59 = vpop.xlane.xlu0 %1989 }
 0x52b   : > { %v6681_v52 = vpop.f32.mrf.mxu0 }
 0x52d   : > { %4555 = vmatmul.msk.bf16.gmra.mxu0 %vm1499_vm10, %v2017_v9 }
 0x52f   : > { %v1841_v51 = vpop.f32.mrf.mxu2 }
 0x530   : > { %v5184_v58 = vpack.i.bf16 %v1841_v51, %v1839_v15 }
 0x532   : > { %5185 = vrot.lane.b32.xlu2 %v5184_v58, %s5628_s2  ;;  %v2210_v37 = vpop.xlane.xlu0 %2209 }
 0x533   : > { %v6687_v18 = vpop.f32.mrf.mxu0 }
 0x537   : > { %v1844_v22 = vpop.f32.mrf.mxu2 }
 0x53a   : > { %v1996_v0 = vpop.xlane.xlu0 %1995 }
 0x53b   : > { %v6692_v34 = vpop.f32.mrf.mxu0 }
 0x53f   : > { %v1846_v23 = vpop.f32.mrf.mxu2 }
 0x540   : > { %v5199_v14 = vpack.i.bf16 %v1846_v23, %v1844_v22 }
 0x543   : > { %v6695_v6 = vpop.f32.mrf.mxu0 }
 0x54b   : > { %v6697_v16 = vpop.f32.mrf.mxu0 }
 0x552   : > { %v2198_v26 = vpop.xlane.xlu2 %2197 }
 0x553   : > { %5360 = vrcp.f32 %v2198_v26  ;;  %v5006_v26 = vld [vmem:[%s5871_s28 + $0x30] sm:$0xff] }
 0x554   : > { %5362 = vrcp.f32 %v1990_v59 }
 0x559   : > { %v5361_v19 = vpop.eup %5360 }
 0x55a   : > { %v1993_v11 = vpop.xlane.xlu2 %1992  ;;  %v2224_v46 = vmul.f32 %v5361_v19, %v6640_v57  ;;  %v5363_v10 = vpop.eup %5362  ;;  %v5005_v19 = vld [vmem:[%s5871_s28 + $0x28] sm:$0xff] }
 0x55b   : > { %5364 = vrcp.f32 %v1993_v11  ;;  %v2012_v63 = vmul.f32 %v5363_v10, %v6607_v43  ;;  %v1999_v57 = vpop.xlane.xlu1 %1998  ;;  %v5004_v11 = vld [vmem:[%s5871_s28 + $0x20] sm:$0xff] }
 0x55c   : > { %v2231_v47 = vpack.c.bf16 %v2225_v28, %v2224_v46  ;;  %5366 = vrcp.f32 %v2207_v5 }
 0x55d   : > { %5368 = vrcp.f32 %v2204_v7  ;;  %v5007_v7 = vld [vmem:[%s5871_s28 + $0x38] sm:$0xff] }
 0x55e   : > { %4563 = vmatmul.msk.bf16.gmra.mxu2 %vm1499_vm10, %v2231_v47  ;;  %5370 = vrcp.f32 %v1996_v0  ;;  %2480 = vmatpush.bf16.msra.mxu3 %v5007_v7  ;;  %v5003_v47 = vld [vmem:[%s5871_s28 + $0x18] sm:$0xff]  ;;  %v5001_v0 = vld [vmem:[%s5871_s28 + $0x8] sm:$0xff] }
 0x55f   : > { %5372 = vrcp.f32 %v1999_v57 }
 0x561   : > { %v5365_v41 = vpop.eup %5364 }
 0x562   : > { %v2013_v54 = vmul.f32 %v5365_v41, %v6646_v13  ;;  %v5367_v60 = vpop.eup %5366  ;;  %v2213_v62 = vpop.xlane.xlu2 %2212  ;;  %2481 = vmatpush.bf16.msra.mxu3 %v5006_v26 }
 0x563   : > { %v5369_v20 = vpop.eup %5368  ;;  %v2227_v49 = vmul.f32 %v5367_v60, %v6596_v31  ;;  %5374 = vrcp.f32 %v2213_v62 }
 0x564   : > { %v2018_v17 = vpack.c.bf16 %v2013_v54, %v2012_v63  ;;  %v2226_v42 = vmul.f32 %v5369_v20, %v6586_v30  ;;  %v5371_v43 = vpop.eup %5370  ;;  %5376 = vrcp.f32 %v2210_v37  ;;  %v5002_v63 = vld [vmem:[%s5871_s28 + $0x10] sm:$0xff] }
 0x565   : > { %v5373_v13 = vpop.eup %5372  ;;  %v2014_v3 = vmul.f32 %v5371_v43, %v6624_v36  ;;  %v1849_v36 = vpop.f32.mrf.mxu2 }
 0x566   : > { %4556 = vmatmul.msk.bf16.gmra.mxu0 %vm1499_vm10, %v2018_v17  ;;  %v2232_v8 = vpack.c.bf16 %v2227_v49, %v2226_v42  ;;  %v2015_v50 = vmul.f32 %v5373_v13, %v6582_v44  ;;  %2482 = vmatpush.bf16.msra.mxu3 %v5005_v19  ;;  %v5000_v17 = vld [vmem:[%s5871_s28] sm:$0xff] }
 0x568   : > { %v2019_v31 = vpack.c.bf16 %v2015_v50, %v2014_v3 }
 0x569   : > { %v5375_v53 = vpop.eup %5374 }
 0x56a   : > { %v5377_v30 = vpop.eup %5376  ;;  %v2229_v39 = vmul.f32 %v5375_v53, %v6650_v33  ;;  %2483 = vmatpush.bf16.msra.mxu3 %v5004_v11 }
 0x56b   : > { %v2228_v48 = vmul.f32 %v5377_v30, %v6617_v45 }
 0x56d   : > { %v2233_v29 = vpack.c.bf16 %v2229_v39, %v2228_v48  ;;  %v1851_v44 = vpop.f32.mrf.mxu2 }
 0x56e   : > { %4564 = vmatmul.msk.bf16.gmra.mxu2 %vm1499_vm10, %v2232_v8  ;;  %v5214_v15 = vpack.i.bf16 %v1851_v44, %v1849_v36  ;;  %2484 = vmatpush.bf16.msra.mxu3 %v5003_v47 }
 0x572   : > { %2485 = vmatpush.bf16.msra.mxu3 %v5002_v63 }
 0x576   : > { %4557 = vmatmul.msk.bf16.gmra.mxu0 %vm1499_vm10, %v2019_v31  ;;  %2486 = vmatpush.bf16.msra.mxu3 %v5001_v0 }
 0x57a   : > { %2487 = vmatpush.bf16.msra.mxu3 %v5000_v17 }
 0x57e   : > { %4565 = vmatmul.msk.bf16.gmra.mxu2 %vm1499_vm10, %v2233_v29 }
 0x58c   : > { %v5186_v20 = vpop.permute.xlu2 %5185 }
 0x58d   : > { %v5188_v42 = vunpack.i.h.bf16 %v5186_v20  ;;  %v5187_v62 = vunpack.i.l.bf16 %v5186_v20 }
 0x58f   : > { %v2384_v3 = vsel %vm1445_vm9, %v6670_v40, %v5188_v42  ;;  %v2383_v22 = vsel %vm1445_vm9, %v6668_v25, %v5187_v62 }
 0x598   : > { %v1854_v4 = vpop.f32.mrf.mxu2 }
 0x59a   : > { %v2053_v32 = vpop.f32.mrf.mxu0 }
 0x5a0   : > { %v1856_v1 = vpop.f32.mrf.mxu2 }
 0x5a1   : > { %v5229_v38 = vpack.i.bf16 %v1856_v1, %v1854_v4 }
 0x5a2   : > { %v2055_v55 = vpop.f32.mrf.mxu0 }
 0x5a3   : > { %v5189_v24 = vpack.i.bf16 %v2055_v55, %v2053_v32 }
 0x5a5   : > { %5190 = vrot.lane.b32.xlu0 %v5189_v24, %s5627_s7 }
 0x5a8   : > { %v2267_v45 = vpop.f32.mrf.mxu2 }
 0x5aa   : > { %v2058_v33 = vpop.f32.mrf.mxu0 }
 0x5ad   : > { %5200 = vrot.lane.b32.xlu0 %v5199_v14, %s5628_s2 }
 0x5b0   : > { %v2269_v27 = vpop.f32.mrf.mxu2 }
 0x5b1   : > { %v5194_v12 = vpack.i.bf16 %v2269_v27, %v2267_v45 }
 0x5b2   : > { %v2060_v56 = vpop.f32.mrf.mxu0 }
 0x5b3   : > { %v5204_v61 = vpack.i.bf16 %v2060_v56, %v2058_v33  ;;  %5195 = vrot.lane.b32.xlu1 %v5194_v12, %s5626_s8 }
 0x5b5   : > { %5205 = vrot.lane.b32.xlu2 %v5204_v61, %s5627_s7 }
 0x5bd   : > { %5215 = vrot.lane.b32.xlu2 %v5214_v15, %s5628_s2 }
 0x5c5   : > { %5230 = vrot.lane.b32.xlu2 %v5229_v38, %s5628_s2  ;;  %s7455_s2 = sld [smem:[#allocation29_spill]] (!%p4854_p11) }
 0x5e1   : > { %v2272_v9 = vpop.f32.mrf.mxu2 }
 0x5e3   : > { %v2063_v51 = vpop.f32.mrf.mxu0 }
 0x5e9   : > { %v2274_v58 = vpop.f32.mrf.mxu2 }
 0x5ea   : > { %v5209_v35 = vpack.i.bf16 %v2274_v58, %v2272_v9 }
 0x5eb   : > { %v2065_v5 = vpop.f32.mrf.mxu0 }
 0x5ec   : > { %v5219_v59 = vpack.i.bf16 %v2065_v5, %v2063_v51  ;;  %5210 = vrot.lane.b32.xlu0 %v5209_v35, %s5626_s8 }
 0x5ee   : > { %5220 = vrot.lane.b32.xlu1 %v5219_v59, %s5627_s7 }
 0x5f1   : > { %v2277_v21 = vpop.f32.mrf.mxu2 }
 0x5f3   : > { %v2068_v37 = vpop.f32.mrf.mxu0 }
 0x5f9   : > { %v2279_v46 = vpop.f32.mrf.mxu2 }
 0x5fa   : > { %v5224_v28 = vpack.i.bf16 %v2279_v46, %v2277_v21 }
 0x5fb   : > { %v2070_v10 = vpop.f32.mrf.mxu0 }
 0x5fc   : > { %v5234_v41 = vpack.i.bf16 %v2070_v10, %v2068_v37  ;;  %5225 = vrot.lane.b32.xlu0 %v5224_v28, %s5626_s8 }
 0x5fe   : > { %5235 = vrot.lane.b32.xlu1 %v5234_v41, %s5627_s7 }
 0x601   : > { %v2282_v54 = vpop.f32.mrf.mxu2 }
 0x609   : > { %v2284_v60 = vpop.f32.mrf.mxu2 }
 0x60a   : > { %v5239_v57 = vpack.i.bf16 %v2284_v60, %v2282_v54 }
 0x60c   : > { %5240 = vrot.lane.b32.xlu0 %v5239_v57, %s5626_s8 }
 0x60f   : > { %v5206_v4 = vpop.permute.xlu2 %5205 }
 0x610   : > { %v5208_v32 = vunpack.i.h.bf16 %v5206_v4  ;;  %v5207_v1 = vunpack.i.l.bf16 %v5206_v4  ;;  %v5480_v4 = vld [vmem:[#allocation2 + $0x8] sm:$0xff] }
 0x617   : > { %v5191_v49 = vpop.permute.xlu0 %5190  ;;  %v5216_v61 = vpop.permute.xlu2 %5215 }
 0x618   : > { %v5193_v8 = vunpack.i.h.bf16 %v5191_v49  ;;  %v5192_v43 = vunpack.i.l.bf16 %v5191_v49  ;;  %v5218_v15 = vunpack.i.h.bf16 %v5216_v61  ;;  %v5217_v38 = vunpack.i.l.bf16 %v5216_v61 }
 0x61a   : > { %v2391_v53 = vsel %vm1499_vm10, %v2383_v22, %v5192_v43  ;;  %v2392_v30 = vsel %vm1499_vm10, %v2384_v3, %v5193_v8  ;;  %v2388_v58 = vsel %vm1445_vm9, %v6692_v34, %v5218_v15  ;;  %v2387_v35 = vsel %vm1445_vm9, %v6687_v18, %v5217_v38  ;;  %v5477_v3 = vld [vmem:[#allocation2] sm:$0xff] }
 0x61f   : > { %v5201_v29 = vpop.permute.xlu0 %5200  ;;  %v5231_v11 = vpop.permute.xlu2 %5230 }
 0x620   : > { %v5203_v36 = vunpack.i.h.bf16 %v5201_v29  ;;  %v5202_v44 = vunpack.i.l.bf16 %v5201_v29  ;;  %v5233_v28 = vunpack.i.h.bf16 %v5231_v11  ;;  %v5232_v34 = vunpack.i.l.bf16 %v5231_v11 }
 0x622   : > { %v2386_v40 = vsel %vm1445_vm9, %v6681_v52, %v5203_v36  ;;  %v2385_v25 = vsel %vm1445_vm9, %v6675_v2, %v5202_v44  ;;  %v2390_v41 = vsel %vm1445_vm9, %v6697_v16, %v5233_v28  ;;  %v2389_v63 = vsel %vm1445_vm9, %v6695_v6, %v5232_v34  ;;  %v5244_v16 = vld [vmem:[%s921_s3] ss:$0 sm:$0xff]  ;;  %v5476_v6 = vld [vmem:[#allocation2 + $0x30] sm:$0xff] }
 0x623   : > { %v2393_v33 = vsel %vm1499_vm10, %v2385_v25, %v5207_v1  ;;  %v2394_v14 = vsel %vm1499_vm10, %v2386_v40, %v5208_v32  ;;  %v5481_v1 = vld [vmem:[#allocation2 + $0x20] sm:$0xff] }
 0x625   : > { %v5196_v13 = vpop.permute.xlu1 %5195 }
 0x626   : > { %v5198_v50 = vunpack.i.h.bf16 %v5196_v13  ;;  %v5197_v31 = vunpack.i.l.bf16 %v5196_v13 }
 0x628   : > { %v2400_v39 = vsel %vm2399_vm11, %v2391_v53, %v5197_v31  ;;  %v2401_v48 = vsel %vm2399_vm11, %v2392_v30, %v5198_v50  ;;  %v5478_v53 = vld [vmem:[#allocation2 + $0x18] sm:$0xff] }
 0x629   : > { %v2408_v23 = vpack.c.bf16 %v2401_v48, %v2400_v39 }
 0x62b   : > { %2488 = vmatmul.bf16.vlgmr.msra.gmra.mxu3 %v2408_v23  ;;  %v5479_v23 = vld [vmem:[#allocation2 + $0x10] sm:$0xff] }
 0x65e   : > { %v5211_v55 = vpop.permute.xlu0 %5210 }
 0x65f   : > { %v5213_v24 = vunpack.i.h.bf16 %v5211_v55  ;;  %v5212_v45 = vunpack.i.l.bf16 %v5211_v55 }
 0x660   : > { %v5221_v52 = vpop.permute.xlu1 %5220 }
 0x661   : > { %v2402_v27 = vsel %vm2399_vm11, %v2393_v33, %v5212_v45  ;;  %v2403_v12 = vsel %vm2399_vm11, %v2394_v14, %v5213_v24  ;;  %v5223_v2 = vunpack.i.h.bf16 %v5221_v52  ;;  %v5222_v9 = vunpack.i.l.bf16 %v5221_v52  ;;  %v5482_v33 = vld [vmem:[#allocation2 + $0x28] sm:$0xff] }
 0x662   : > { %v2409_v56 = vpack.c.bf16 %v2403_v12, %v2402_v27  ;;  %v5629_v27 = vmov 128.0  }
 0x663   : > { %v2395_v59 = vsel %vm1499_vm10, %v2387_v35, %v5222_v9  ;;  %v2396_v26 = vsel %vm1499_vm10, %v2388_v58, %v5223_v2  ;;  %5378 = vrcp.f32 %v5629_v27  ;;  %v5030_v27 = vld [vmem:[%s5894_s27 + $0xac] sm:$0xf0] }
 0x664   : > { %2493 = vmatmul.bf16.gmra.mxu3 %v2409_v56 }
 0x669   : > { %v5379_v12 = vpop.eup %5378 }
 0x66a   : > { %v2536_v56 = vmul.f32 128.0, %v5379_v12  ;;  %vm2540_vm12 = vweird.f32 %v5379_v12 }
 0x66c   : > { %v2537_v61 = vsub.f32 1.0, %v2536_v56 }
 0x66e   : > { %v5226_v51 = vpop.permute.xlu0 %5225  ;;  %v2538_v52 = vmul.f32 %v5379_v12, %v2537_v61  ;;  %v4682_v61 = vld [vmem:[%s5894_s27 + $0xb0] sm:$0xf0] }
 0x66f   : > { %v5228_v7 = vunpack.i.h.bf16 %v5226_v51  ;;  %v5227_v5 = vunpack.i.l.bf16 %v5226_v51 }
 0x670   : > { %v5236_v46 = vpop.permute.xlu1 %5235  ;;  %v2539_v15 = vadd.f32 %v5379_v12, %v2538_v52  ;;  %v4688_v52 = vld [vmem:[%s5894_s27 + $0xa8] sm:$0xf] }
 0x671   : > { %v2404_v21 = vsel %vm2399_vm11, %v2395_v59, %v5227_v5  ;;  %v2405_v19 = vsel %vm2399_vm11, %v2396_v26, %v5228_v7  ;;  %v5238_v47 = vunpack.i.h.bf16 %v5236_v46  ;;  %v5237_v10 = vunpack.i.l.bf16 %v5236_v46 }
 0x672   : > { %v2410_v37 = vpack.c.bf16 %v2405_v19, %v2404_v21  ;;  %v6755_v38 = vsel %vm2540_vm12, %v5379_v12, %v2539_v15  ;;  %v5483_v19 = vld [vmem:[#allocation2 + $0x38] sm:$0xff]  ;;  %v5028_v12 = vld [vmem:[%s5894_s27 + $0xa4] sm:$0xf] }
 0x673   : > { %v2397_v17 = vsel %vm1499_vm10, %v2389_v63, %v5237_v10  ;;  %v2398_v60 = vsel %vm1499_vm10, %v2390_v41, %v5238_v47  ;;  %v5031_v15 = vld [vmem:[%s5894_s27 + $0xb4] sm:$0xf0] }
 0x674   : > { %2498 = vmatmul.bf16.gmra.mxu3 %v2410_v37 }
 0x67e   : > { %v5241_v18 = vpop.permute.xlu0 %5240 }
 0x67f   : > { %v5243_v54 = vunpack.i.h.bf16 %v5241_v18  ;;  %v5242_v0 = vunpack.i.l.bf16 %v5241_v18 }
 0x681   : > { %v2406_v57 = vsel %vm2399_vm11, %v2397_v17, %v5242_v0  ;;  %v2407_v20 = vsel %vm2399_vm11, %v2398_v60, %v5243_v54 }
 0x682   : > { %v2411_v49 = vpack.c.bf16 %v2407_v20, %v2406_v57 }
 0x684   : > { %2503 = vmatmul.bf16.gmra.mxu3 %v2411_v49 }
 0x6ae   : > { %v2489_v42 = vpop.f32.mrf.mxu3 }
 0x6af   : > { %v2490_v62 = vadd.f32 %v5244_v16, %v2489_v42 }
 0x6b1   : > { %v2509_v8 = vadd.f32 %v5476_v6, %v2490_v62 }
 0x6b3   : > { %2519 = vadd.xlane.f32.xlu2 %v2509_v8 }
 0x6b6   : > { %v2491_v43 = vpop.f32.mrf.mxu3 }
 0x6b7   : > { %v2492_v13 = vadd.f32 %v5244_v16, %v2491_v43  ;;  %v5038_v43 = vld [vmem:[%s5894_s27 + $0xec] sm:$0xf0] }
 0x6b9   : > { %v2510_v22 = vadd.f32 %v5477_v3, %v2492_v13  ;;  %v5036_v13 = vld [vmem:[%s5894_s27 + $0xe4] sm:$0xf] }
 0x6bb   : > { %2521 = vadd.xlane.f32.xlu1 %v2510_v22 }
 0x6e7   : > { %v2494_v50 = vpop.f32.mrf.mxu3 }
 0x6e8   : > { %v2495_v31 = vadd.f32 %v5244_v16, %v2494_v50  ;;  %v4720_v50 = vld [vmem:[%s5894_s27 + $0xe8] sm:$0xf] }
 0x6ea   : > { %v2511_v30 = vadd.f32 %v5478_v53, %v2495_v31  ;;  %v5039_v31 = vld [vmem:[%s5894_s27 + $0xf4] sm:$0xf0] }
 0x6ec   : > { %2523 = vadd.xlane.f32.xlu0 %v2511_v30 }
 0x6ef   : > { %v2496_v39 = vpop.f32.mrf.mxu3 }
 0x6f0   : > { %v2497_v48 = vadd.f32 %v5244_v16, %v2496_v39  ;;  %v5037_v39 = vld [vmem:[%s5894_s27 + $0xec] sm:$0xf] }
 0x6f2   : > { %v2512_v29 = vadd.f32 %v5479_v23, %v2497_v48  ;;  %v4722_v48 = vld [vmem:[%s5894_s27 + $0xf8] sm:$0xf0] }
 0x6f3   : > { %v4725_v23 = vor.u32 %v5037_v39, %v4722_v48  ;;  %v4634_v39 = vld [vmem:[%s5894_s27 + $0x50] sm:$0xf0]  ;;  %v4640_v48 = vld [vmem:[%s5894_s27 + $0x48] sm:$0xf] }
 0x6f4   : > { %2525 = vadd.xlane.f32.xlu2 %v2512_v29 }
 0x6f5   : > { %3001 = vmatpush.bf16.msrb.mxu3 %v4725_v23  ;;  %v5019_v23 = vld [vmem:[%s5894_s27 + $0x54] sm:$0xf0] }
 0x6f7   : > { %v2499_v36 = vpop.f32.mrf.mxu3 }
 0x6f8   : > { %v2500_v44 = vadd.f32 %v5244_v16, %v2499_v36  ;;  %v5034_v36 = vld [vmem:[%s5894_s27 + $0xcc] sm:$0xf0] }
 0x6fa   : > { %v2513_v40 = vadd.f32 %v5480_v4, %v2500_v44  ;;  %v5032_v44 = vld [vmem:[%s5894_s27 + $0xc4] sm:$0xf] }
 0x6fc   : > { %2527 = vadd.xlane.f32.xlu1 %v2513_v40 }
 0x6ff   : > { %v2501_v25 = vpop.f32.mrf.mxu3 }
 0x700   : > { %v2502_v32 = vadd.f32 %v5244_v16, %v2501_v25  ;;  %v4704_v25 = vld [vmem:[%s5894_s27 + $0xc8] sm:$0xf] }
 0x702   : > { %v2514_v55 = vadd.f32 %v5481_v1, %v2502_v32  ;;  %v5035_v32 = vld [vmem:[%s5894_s27 + $0xd4] sm:$0xf0] }
 0x704   : > { %2529 = vadd.xlane.f32.xlu0 %v2514_v55 }
 0x707   : > { %v2504_v24 = vpop.f32.mrf.mxu3 }
 0x708   : > { %v2505_v45 = vadd.f32 %v5244_v16, %v2504_v24  ;;  %v5033_v24 = vld [vmem:[%s5894_s27 + $0xcc] sm:$0xf] }
 0x70a   : > { %v2515_v14 = vadd.f32 %v5482_v33, %v2505_v45  ;;  %v4706_v45 = vld [vmem:[%s5894_s27 + $0xd8] sm:$0xf0] }
 0x70b   : > { %v4709_v33 = vor.u32 %v5033_v24, %v4706_v45  ;;  %v4618_v45 = vld [vmem:[%s5894_s27 + $0x30] sm:$0xf0] }
 0x70c   : > { %2531 = vadd.xlane.f32.xlu0 %v2515_v14 }
 0x70d   : > { %3002 = vmatpush.bf16.msrb.mxu3 %v4709_v33  ;;  %v4624_v33 = vld [vmem:[%s5894_s27 + $0x28] sm:$0xf] }
 0x70f   : > { %v2506_v35 = vpop.f32.mrf.mxu3 }
 0x710   : > { %v2507_v5 = vadd.f32 %v5244_v16, %v2506_v35  ;;  %v4690_v35 = vld [vmem:[%s5894_s27 + $0xb8] sm:$0xf0] }
 0x712   : > { %v6767_v37 = vadd.f32 %v5483_v19, %v2507_v5  ;;  %v4664_v5 = vld [vmem:[%s5894_s27 + $0x80] sm:$0xf] }
 0x726   : > { %v2520_v2 = vpop.xlane.xlu2 %2519 }
 0x727   : > { %v2542_v9 = vmul.f32 %v6755_v38, %v2520_v2  ;;  %v4685_v2 = vor.u32 %v5028_v12, %v4682_v61  ;;  %v5013_v61 = vld [vmem:[%s5894_s27 + $0x2c] sm:$0xf] }
 0x729   : > { %v6758_v51 = vsub.f32 %v2509_v8, %v2542_v9  ;;  %v4712_v8 = vld [vmem:[%s5894_s27 + $0xe0] sm:$0xf]  ;;  %v4689_v9 = vor.u32 %v5031_v15, %v4688_v52  ;;  %v4626_v52 = vld [vmem:[%s5894_s27 + $0x38] sm:$0xf0] }
 0x72a   : > { %v4713_v3 = vor.u32 %v5038_v43, %v4712_v8  ;;  %v4629_v15 = vor.u32 %v5013_v61, %v4626_v52 }
 0x72b   : > { %v2558_v58 = vmul.f32 %v6758_v51, %v6758_v51 }
 0x72c   : > { %2914 = vmatpush.bf16.msrb.mxu0 %v4713_v3  ;;  %v4658_v3 = vld [vmem:[%s5894_s27 + $0x78] sm:$0xf0] }
 0x72d   : > { %2566 = vadd.xlane.f32.xlu2 %v2558_v58  ;;  %v5029_v58 = vld [vmem:[%s5894_s27 + $0xac] sm:$0xf] }
 0x72e   : > { %v2522_v7 = vpop.xlane.xlu1 %2521 }
 0x72f   : > { %v2543_v59 = vmul.f32 %v6755_v38, %v2522_v7  ;;  %v4693_v7 = vor.u32 %v5029_v58, %v4690_v35  ;;  %v5010_v58 = vld [vmem:[%s5894_s27 + $0xc] sm:$0xf0] }
 0x731   : > { %v6763_v26 = vsub.f32 %v2510_v22, %v2543_v59  ;;  %v4714_v22 = vld [vmem:[%s5894_s27 + $0xf0] sm:$0xf0]  ;;  %v5026_v59 = vld [vmem:[%s5894_s27 + $0x8c] sm:$0xf0]  ;;  %3003 = vmatpush.bf16.msrb.mxu3 %v4693_v7  ;;  %v5008_v7 = vld [vmem:[%s5894_s27 + $0x4] sm:$0xf] }
 0x732   : > { %v4717_v53 = vor.u32 %v5036_v13, %v4714_v22  ;;  %v4665_v19 = vor.u32 %v5026_v59, %v4664_v5  ;;  %v5021_v13 = vld [vmem:[%s5894_s27 + $0x6c] sm:$0xf]  ;;  %v4602_v5 = vld [vmem:[%s5894_s27 + $0x10] sm:$0xf0]  ;;  %v4608_v59 = vld [vmem:[%s5894_s27 + $0x8] sm:$0xf] }
 0x733   : > { %v2559_v21 = vmul.f32 %v6763_v26, %v6763_v26  ;;  %v4661_v22 = vor.u32 %v5021_v13, %v4658_v3 }
 0x734   : > { %2943 = vmatpush.bf16.msrb.mxu1 %v4717_v53  ;;  %v5016_v53 = vld [vmem:[%s5894_s27 + $0x44] sm:$0xf] }
 0x735   : > { %2568 = vadd.xlane.f32.xlu1 %v2559_v21  ;;  %2533 = vadd.xlane.f32.xlu2 %v6767_v37  ;;  %v5024_v21 = vld [vmem:[%s5894_s27 + $0x84] sm:$0xf] }
 0x75f   : > { %v2524_v11 = vpop.xlane.xlu0 %2523 }
 0x760   : > { %v2544_v46 = vmul.f32 %v6755_v38, %v2524_v11  ;;  %v4666_v11 = vld [vmem:[%s5894_s27 + $0x90] sm:$0xf0] }
 0x762   : > { %v6771_v28 = vsub.f32 %v2511_v30, %v2544_v46  ;;  %v4721_v30 = vor.u32 %v5039_v31, %v4720_v50  ;;  %v4672_v46 = vld [vmem:[%s5894_s27 + $0x88] sm:$0xf]  ;;  %v4632_v50 = vld [vmem:[%s5894_s27 + $0x40] sm:$0xf]  ;;  %v5018_v31 = vld [vmem:[%s5894_s27 + $0x4c] sm:$0xf0] }
 0x764   : > { %v2560_v34 = vmul.f32 %v6771_v28, %v6771_v28  ;;  %2972 = vmatpush.bf16.msrb.mxu2 %v4721_v30  ;;  %v4633_v30 = vor.u32 %v5018_v31, %v4632_v50 }
 0x766   : > { %2570 = vadd.xlane.f32.xlu1 %v2560_v34  ;;  %v5027_v34 = vld [vmem:[%s5894_s27 + $0x94] sm:$0xf0] }
 0x767   : > { %v2526_v47 = vpop.xlane.xlu2 %2525 }
 0x768   : > { %v2545_v10 = vmul.f32 %v6755_v38, %v2526_v47  ;;  %v4669_v47 = vor.u32 %v5024_v21, %v4666_v11  ;;  %v4605_v21 = vor.u32 %v5008_v7, %v4602_v5  ;;  %v5009_v11 = vld [vmem:[%s5894_s27 + $0xc] sm:$0xf] }
 0x76a   : > { %v6776_v18 = vsub.f32 %v2512_v29, %v2545_v10  ;;  %v4696_v29 = vld [vmem:[%s5894_s27 + $0xc0] sm:$0xf]  ;;  %v4673_v10 = vor.u32 %v5027_v34, %v4672_v46  ;;  %v4610_v46 = vld [vmem:[%s5894_s27 + $0x18] sm:$0xf0] }
 0x76b   : > { %v4697_v4 = vor.u32 %v5034_v36, %v4696_v29  ;;  %v4637_v29 = vor.u32 %v5016_v53, %v4634_v39  ;;  %v4641_v36 = vor.u32 %v5019_v23, %v4640_v48  ;;  %v6872_v53 = vld [vmem:[%s924_s13] ss:$0 sm:$0xff]  ;;  %s7456_s13 = sld [smem:[#allocation32_spill]] (!%p4854_p11) }
 0x76c   : > { %v2561_v41 = vmul.f32 %v6776_v18, %v6776_v18  ;;  %v6880_v23 = vld [vmem:[%s7448_s1] ss:$0 sm:$0xff] }
 0x76d   : > { %2915 = vmatpush.bf16.msrb.mxu0 %v4697_v4  ;;  %v4642_v4 = vld [vmem:[%s5894_s27 + $0x58] sm:$0xf0] }
 0x76e   : > { %2572 = vadd.xlane.f32.xlu0 %v2561_v41  ;;  %v5025_v41 = vld [vmem:[%s5894_s27 + $0x8c] sm:$0xf] }
 0x76f   : > { %v2528_v63 = vpop.xlane.xlu1 %2527 }
 0x770   : > { %v2546_v54 = vmul.f32 %v6755_v38, %v2528_v63  ;;  %v4674_v63 = vld [vmem:[%s5894_s27 + $0x98] sm:$0xf0] }
 0x772   : > { %v6781_v0 = vsub.f32 %v2513_v40, %v2546_v54  ;;  %v4698_v40 = vld [vmem:[%s5894_s27 + $0xd0] sm:$0xf0]  ;;  %v4677_v54 = vor.u32 %v5025_v41, %v4674_v63 }
 0x773   : > { %v4701_v1 = vor.u32 %v5032_v44, %v4698_v40  ;;  %v5017_v44 = vld [vmem:[%s5894_s27 + $0x4c] sm:$0xf] }
 0x774   : > { %v2562_v17 = vmul.f32 %v6781_v0, %v6781_v0  ;;  %3004 = vmatpush.bf16.msrb.mxu3 %v4677_v54  ;;  %v4645_v40 = vor.u32 %v5017_v44, %v4642_v4 }
 0x775   : > { %2944 = vmatpush.bf16.msrb.mxu1 %v4701_v1  ;;  %v5012_v1 = vld [vmem:[%s5894_s27 + $0x24] sm:$0xf] }
 0x776   : > { %2574 = vadd.xlane.f32.xlu2 %v2562_v17  ;;  %v4648_v17 = vld [vmem:[%s5894_s27 + $0x60] sm:$0xf]  ;;  %v4621_v12 = vor.u32 %v5012_v1, %v4618_v45 }
 0x777   : > { %v2530_v60 = vpop.xlane.xlu0 %2529 }
 0x778   : > { %v2547_v57 = vmul.f32 %v6755_v38, %v2530_v60  ;;  %v5022_v60 = vld [vmem:[%s5894_s27 + $0x6c] sm:$0xf0]  ;;  %3005 = vmatpush.bf16.msrb.mxu3 %v4661_v22 }
 0x779   : > { %2945 = vmatpush.bf16.msrb.mxu1 %v4685_v2 }
 0x77a   : > { %v6786_v20 = vsub.f32 %v2514_v55, %v2547_v57  ;;  %v4705_v55 = vor.u32 %v5035_v32, %v4704_v25  ;;  %v5020_v57 = vld [vmem:[%s5894_s27 + $0x64] sm:$0xf]  ;;  %v4616_v25 = vld [vmem:[%s5894_s27 + $0x20] sm:$0xf]  ;;  %v5014_v32 = vld [vmem:[%s5894_s27 + $0x2c] sm:$0xf0] }
 0x77b   : > { %v4617_v24 = vor.u32 %v5014_v32, %v4616_v25 }
 0x77c   : > { %v2563_v49 = vmul.f32 %v6786_v20, %v6786_v20  ;;  %2973 = vmatpush.bf16.msrb.mxu2 %v4705_v55  ;;  %3006 = vmatpush.bf16.msrb.mxu3 %v4645_v40 }
 0x77d   : > { %2946 = vmatpush.bf16.msrb.mxu1 %v4669_v47  ;;  %v4613_v47 = vor.u32 %v5009_v11, %v4610_v46 }
 0x77e   : > { %2576 = vadd.xlane.f32.xlu1 %v2563_v49  ;;  %v4649_v49 = vor.u32 %v5022_v60, %v4648_v17 }
 0x77f   : > { %v2532_v16 = vpop.xlane.xlu0 %2531 }
 0x780   : > { %v2548_v42 = vmul.f32 %v6755_v38, %v2532_v16  ;;  %2974 = vmatpush.bf16.msrb.mxu2 %v4689_v9  ;;  %v4650_v16 = vld [vmem:[%s5894_s27 + $0x70] sm:$0xf0]  ;;  %v4600_v9 = vld [vmem:[%s5894_s27] sm:$0xf]  ;;  %3007 = vmatpush.bf16.msrb.mxu3 %v4629_v15 }
 0x781   : > { %v4653_v8 = vor.u32 %v5020_v57, %v4650_v16  ;;  %v4601_v35 = vor.u32 %v5010_v58, %v4600_v9 }
 0x782   : > { %v6791_v62 = vsub.f32 %v2515_v14, %v2548_v42  ;;  %v4680_v14 = vld [vmem:[%s5894_s27 + $0xa0] sm:$0xf]  ;;  %v4656_v42 = vld [vmem:[%s5894_s27 + $0x68] sm:$0xf] }
 0x783   : > { %v4681_v56 = vor.u32 %v5030_v27, %v4680_v14  ;;  %2947 = vmatpush.bf16.msrb.mxu1 %v4653_v8  ;;  %v5015_v14 = vld [vmem:[%s5894_s27 + $0x34] sm:$0xf0] }
 0x784   : > { %v2564_v6 = vmul.f32 %v6791_v62, %v6791_v62  ;;  %2975 = vmatpush.bf16.msrb.mxu2 %v4673_v10  ;;  %3008 = vmatpush.bf16.msrb.mxu3 %v4613_v47 }
 0x785   : > { %2916 = vmatpush.bf16.msrb.mxu0 %v4681_v56  ;;  %v4625_v56 = vor.u32 %v5015_v14, %v4624_v33 }
 0x786   : > { %2578 = vadd.xlane.f32.xlu0 %v2564_v6  ;;  %v5023_v6 = vld [vmem:[%s5894_s27 + $0x74] sm:$0xf0] }
 0x787   : > { %v4657_v43 = vor.u32 %v5023_v6, %v4656_v42  ;;  %2948 = vmatpush.bf16.msrb.mxu1 %v4637_v29 }
 0x789   : > { %2917 = vmatpush.bf16.msrb.mxu0 %v4665_v19  ;;  %2976 = vmatpush.bf16.msrb.mxu2 %v4657_v43  ;;  %v5011_v19 = vld [vmem:[%s5894_s27 + $0x14] sm:$0xf0]  ;;  %s7450_s27 = sld [smem:[#allocation18_spill]] (!%p4854_p11) }
 0x78a   : > { %v4609_v34 = vor.u32 %v5011_v19, %v4608_v59 }
 0x78b   : > { %2949 = vmatpush.bf16.msrb.mxu1 %v4621_v12 }
 0x78d   : > { %2918 = vmatpush.bf16.msrb.mxu0 %v4649_v49  ;;  %2977 = vmatpush.bf16.msrb.mxu2 %v4641_v36 }
 0x78f   : > { %2950 = vmatpush.bf16.msrb.mxu1 %v4605_v21 }
 0x791   : > { %2919 = vmatpush.bf16.msrb.mxu0 %v4633_v30  ;;  %2978 = vmatpush.bf16.msrb.mxu2 %v4625_v56 }
 0x795   : > { %2920 = vmatpush.bf16.msrb.mxu0 %v4617_v24  ;;  %2979 = vmatpush.bf16.msrb.mxu2 %v4609_v34 }
 0x799   : > { %2921 = vmatpush.bf16.msrb.mxu0 %v4601_v35 }
 0x7a0   : > { %v2567_v55 = vpop.xlane.xlu2 %2566 }
 0x7a1   : > { %v2582_v27 = vmul.f32 %v2567_v55, %v6755_v38 }
 0x7a3   : > { %v2590_v2 = vadd.f32 1e-12, %v2582_v27 }
 0x7a5   : > { %5380 = vrsqrt.f32 %v2590_v2  ;;  %vm2604_vm14 = vweird.f32 %v2590_v2 }
 0x7a8   : > { %v2569_v10 = vpop.xlane.xlu1 %2568  ;;  %v2534_v41 = vpop.xlane.xlu2 %2533 }
 0x7a9   : > { %v2583_v63 = vmul.f32 %v2569_v10, %v6755_v38  ;;  %v2549_v54 = vmul.f32 %v6755_v38, %v2534_v41 }
 0x7ab   : > { %v5381_v17 = vpop.eup %5380  ;;  %v2591_v60 = vadd.f32 1e-12, %v2583_v63  ;;  %v6863_v57 = vsub.f32 %v6767_v37, %v2549_v54 }
 0x7ac   : > { %v2599_v49 = vmul.f32 %v5381_v17, %v2590_v2  ;;  %vm2605_vm13 = vweird.f32 %v5381_v17 }
 0x7ad   : > { %5382 = vrsqrt.f32 %v2591_v60  ;;  %v2565_v16 = vmul.f32 %v6863_v57, %v6863_v57  ;;  %vm2606_vm15 = vmor %vm2604_vm14, %vm2605_vm13  ;;  %vm2614_vm1 = vweird.f32 %v2591_v60 }
 0x7ae   : > { %v2600_v42 = vmul.f32 %v5381_v17, %v2599_v49 }
 0x7af   : > { %2580 = vadd.xlane.f32.xlu2 %v2565_v16 }
 0x7b0   : > { %v2601_v6 = vmul.f32 0.5, %v2600_v42 }
 0x7b2   : > { %v2602_v8 = vsub.f32 1.5, %v2601_v6 }
 0x7b3   : > { %v5383_v43 = vpop.eup %5382 }
 0x7b4   : > { %v2603_v13 = vmul.f32 %v5381_v17, %v2602_v8  ;;  %v2609_v3 = vmul.f32 %v5383_v43, %v2591_v60  ;;  %vm2615_vm0 = vweird.f32 %v5383_v43 }
 0x7b5   : > { %vm2616_vm2 = vmor %vm2614_vm1, %vm2615_vm0 }
 0x7b6   : > { %v2610_v22 = vmul.f32 %v5383_v43, %v2609_v3  ;;  %v2607_v37 = vsel %vm2606_vm15, %v5381_v17, %v2603_v13 }
 0x7b7   : > { %v2678_v30 = vmul.f32 %v2607_v37, %v6758_v51 }
 0x7b8   : > { %v2611_v50 = vmul.f32 0.5, %v2610_v22 }
 0x7b9   : > { %v2689_v29 = vmul.f32 %v6872_v53, %v2678_v30 }
 0x7ba   : > { %v2612_v31 = vsub.f32 1.5, %v2611_v50 }
 0x7bb   : > { %v6886_v4 = vadd.f32 %v6880_v23, %v2689_v29 }
 0x7bc   : > { %v2613_v39 = vmul.f32 %v5383_v43, %v2612_v31 }
 0x7be   : > { %v2617_v48 = vsel %vm2616_vm2, %v5383_v43, %v2613_v39 }
 0x7bf   : > { %v2679_v36 = vmul.f32 %v2617_v48, %v6763_v26 }
 0x7c1   : > { %v2690_v44 = vmul.f32 %v6872_v53, %v2679_v36 }
 0x7c3   : > { %v6889_v51 = vadd.f32 %v6880_v23, %v2690_v44 }
 0x7c5   : > { %v2708_v40 = vpack.c.bf16 %v6889_v51, %v6886_v4 }
 0x7c7   : > { %2922 = vmatmul.bf16.vlgmr.msrb.gmra.mxu0 %v2708_v40  ;;  %2951 = vmatmul.bf16.vlgmr.msrb.gmra.mxu1 %v2708_v40 }
 0x7c8   : > { %2980 = vmatmul.bf16.vlgmr.msrb.gmra.mxu2 %v2708_v40  ;;  %3009 = vmatmul.bf16.vlgmr.msrb.gmra.mxu3 %v2708_v40 }
 0x7d9   : > { %v2571_v25 = vpop.xlane.xlu1 %2570 }
 0x7da   : > { %v2584_v32 = vmul.f32 %v2571_v25, %v6755_v38 }
 0x7dc   : > { %v2592_v1 = vadd.f32 1e-12, %v2584_v32 }
 0x7de   : > { %5384 = vrsqrt.f32 %v2592_v1  ;;  %vm2624_vm4 = vweird.f32 %v2592_v1 }
 0x7e1   : > { %v2573_v26 = vpop.xlane.xlu0 %2572 }
 0x7e2   : > { %v2585_v55 = vmul.f32 %v2573_v26, %v6755_v38 }
 0x7e4   : > { %v5385_v24 = vpop.eup %5384  ;;  %v2593_v45 = vadd.f32 1e-12, %v2585_v55 }
 0x7e5   : > { %v2619_v33 = vmul.f32 %v5385_v24, %v2592_v1  ;;  %vm2625_vm3 = vweird.f32 %v5385_v24 }
 0x7e6   : > { %5386 = vrsqrt.f32 %v2593_v45  ;;  %vm2626_vm5 = vmor %vm2624_vm4, %vm2625_vm3  ;;  %vm2634_vm7 = vweird.f32 %v2593_v45 }
 0x7e7   : > { %v2620_v14 = vmul.f32 %v5385_v24, %v2619_v33  ;;  %v5047_v33 = vld [vmem:[%s5856_s4 + $0x38] sm:$0xff] }
 0x7e8   : > { %3594 = vmatpush.bf16.msra.mxu0 %v5047_v33 }
 0x7e9   : > { %v2621_v27 = vmul.f32 0.5, %v2620_v14  ;;  %v2575_v12 = vpop.xlane.xlu2 %2574  ;;  %v5055_v14 = vld [vmem:[%s5856_s4 + $0x78] sm:$0xff] }
 0x7ea   : > { %v2586_v56 = vmul.f32 %v2575_v12, %v6755_v38  ;;  %3623 = vmatpush.bf16.msra.mxu1 %v5055_v14  ;;  %v5046_v12 = vld [vmem:[%s5856_s4 + $0x30] sm:$0xff] }
 0x7eb   : > { %v2622_v61 = vsub.f32 1.5, %v2621_v27 }
 0x7ec   : > { %v5387_v52 = vpop.eup %5386  ;;  %v2594_v15 = vadd.f32 1e-12, %v2586_v56  ;;  %v5054_v56 = vld [vmem:[%s5856_s4 + $0x70] sm:$0xff]  ;;  %3595 = vmatpush.bf16.msra.mxu0 %v5046_v12  ;;  %v5056_v12 = vld [vmem:[%s5856_s4 + $0x80] sm:$0xff] }
 0x7ed   : > { %v2623_v2 = vmul.f32 %v5385_v24, %v2622_v61  ;;  %v2629_v9 = vmul.f32 %v5387_v52, %v2593_v45  ;;  %vm2635_vm6 = vweird.f32 %v5387_v52 }
 0x7ee   : > { %5388 = vrsqrt.f32 %v2594_v15  ;;  %vm2636_vm8 = vmor %vm2634_vm7, %vm2635_vm6  ;;  %vm2644_vm11 = vweird.f32 %v2594_v15  ;;  %3624 = vmatpush.bf16.msra.mxu1 %v5054_v56  ;;  %v5064_v56 = vld [vmem:[%s5856_s4 + $0xc0] sm:$0xff] }
 0x7ef   : > { %v2630_v58 = vmul.f32 %v5387_v52, %v2629_v9  ;;  %v2627_v35 = vsel %vm2626_vm5, %v5385_v24, %v2623_v2 }
 0x7f0   : > { %v2680_v11 = vmul.f32 %v2627_v35, %v6771_v28  ;;  %v5053_v35 = vld [vmem:[%s5856_s4 + $0x68] sm:$0xff] }
 0x7f1   : > { %v2631_v7 = vmul.f32 0.5, %v2630_v58  ;;  %v2577_v5 = vpop.xlane.xlu1 %2576  ;;  %v5045_v58 = vld [vmem:[%s5856_s4 + $0x28] sm:$0xff] }
 0x7f2   : > { %v2587_v59 = vmul.f32 %v2577_v5, %v6755_v38  ;;  %v2691_v54 = vmul.f32 %v6872_v53, %v2680_v11  ;;  %3596 = vmatpush.bf16.msra.mxu0 %v5045_v58  ;;  %3625 = vmatpush.bf16.msra.mxu1 %v5053_v35  ;;  %v5062_v5 = vld [vmem:[%s5856_s4 + $0xb0] sm:$0xff] }
 0x7f3   : > { %v2632_v21 = vsub.f32 1.5, %v2631_v7 }
 0x7f4   : > { %v5389_v19 = vpop.eup %5388  ;;  %v2595_v46 = vadd.f32 1e-12, %v2587_v59  ;;  %v6902_v42 = vadd.f32 %v6880_v23, %v2691_v54  ;;  %v5070_v59 = vld [vmem:[%s5856_s4 + $0xf0] sm:$0xff] }
 0x7f5   : > { %v2633_v34 = vmul.f32 %v5387_v52, %v2632_v21  ;;  %v2639_v47 = vmul.f32 %v5389_v19, %v2594_v15  ;;  %vm2645_vm9 = vweird.f32 %v5389_v19  ;;  %v5071_v15 = vld [vmem:[%s5856_s4 + $0xf8] sm:$0xff] }
 0x7f6   : > { %5390 = vrsqrt.f32 %v2595_v46  ;;  %vm2646_vm12 = vmor %vm2644_vm11, %vm2645_vm9  ;;  %vm2654_vm14 = vweird.f32 %v2595_v46  ;;  %3681 = vmatpush.bf16.msra.mxu3 %v5071_v15 }
 0x7f7   : > { %v2637_v10 = vsel %vm2636_vm8, %v5387_v52, %v2633_v34  ;;  %v2640_v41 = vmul.f32 %v5389_v19, %v2639_v47  ;;  %v5063_v52 = vld [vmem:[%s5856_s4 + $0xb8] sm:$0xff]  ;;  %v5052_v34 = vld [vmem:[%s5856_s4 + $0x60] sm:$0xff] }
 0x7f8   : > { %v2681_v63 = vmul.f32 %v2637_v10, %v6776_v18  ;;  %3652 = vmatpush.bf16.msra.mxu2 %v5063_v52  ;;  %3626 = vmatpush.bf16.msra.mxu1 %v5052_v34 }
 0x7f9   : > { %v2641_v17 = vmul.f32 0.5, %v2640_v41  ;;  %v2579_v48 = vpop.xlane.xlu0 %2578  ;;  %v5061_v41 = vld [vmem:[%s5856_s4 + $0xa8] sm:$0xff] }
 0x7fa   : > { %v2692_v60 = vmul.f32 %v6872_v53, %v2681_v63  ;;  %v2588_v40 = vmul.f32 %v2579_v48, %v6755_v38  ;;  %3682 = vmatpush.bf16.msra.mxu3 %v5070_v59  ;;  %v5069_v63 = vld [vmem:[%s5856_s4 + $0xe8] sm:$0xff]  ;;  %v5066_v48 = vld [vmem:[%s5856_s4 + $0xd0] sm:$0xff] }
 0x7fb   : > { %v2642_v49 = vsub.f32 1.5, %v2641_v17  ;;  %v5043_v17 = vld [vmem:[%s5856_s4 + $0x18] sm:$0xff] }
 0x7fc   : > { %v5391_v16 = vpop.eup %5390  ;;  %v6905_v28 = vadd.f32 %v6880_v23, %v2692_v60  ;;  %3653 = vmatpush.bf16.msra.mxu2 %v5062_v5  ;;  %v5051_v60 = vld [vmem:[%s5856_s4 + $0x58] sm:$0xff] }
 0x7fd   : > { %v2643_v6 = vmul.f32 %v5389_v19, %v2642_v49  ;;  %v2649_v8 = vmul.f32 %v5391_v16, %v2595_v46  ;;  %vm2655_vm13 = vweird.f32 %v5391_v16  ;;  %v5044_v46 = vld [vmem:[%s5856_s4 + $0x20] sm:$0xff]  ;;  %3627 = vmatpush.bf16.msra.mxu1 %v5051_v60 }
 0x7fe   : > { %v2709_v43 = vpack.c.bf16 %v6905_v28, %v6902_v42  ;;  %vm2656_vm15 = vmor %vm2654_vm14, %vm2655_vm13  ;;  %3597 = vmatpush.bf16.msra.mxu0 %v5044_v46  ;;  %3683 = vmatpush.bf16.msra.mxu3 %v5069_v63 }
 0x7ff   : > { %v2650_v18 = vmul.f32 %v5391_v16, %v2649_v8  ;;  %v2647_v13 = vsel %vm2646_vm12, %v5389_v19, %v2643_v6  ;;  %v5068_v6 = vld [vmem:[%s5856_s4 + $0xe0] sm:$0xff] }
 0x800   : > { %2927 = vmatmul.bf16.gmra.mxu0 %v2709_v43  ;;  %2956 = vmatmul.bf16.gmra.mxu1 %v2709_v43  ;;  %v2682_v37 = vmul.f32 %v2647_v13, %v6781_v0 }
 0x801   : > { %v2651_v3 = vmul.f32 0.5, %v2650_v18  ;;  %2985 = vmatmul.bf16.gmra.mxu2 %v2709_v43  ;;  %3014 = vmatmul.bf16.gmra.mxu3 %v2709_v43  ;;  %v5042_v43 = vld [vmem:[%s5856_s4 + $0x10] sm:$0xff] }
 0x802   : > { %v2693_v39 = vmul.f32 %v6872_v53, %v2682_v37  ;;  %3654 = vmatpush.bf16.msra.mxu2 %v5061_v41  ;;  %3598 = vmatpush.bf16.msra.mxu0 %v5043_v17  ;;  %v5050_v18 = vld [vmem:[%s5856_s4 + $0x50] sm:$0xff]  ;;  %v5067_v37 = vld [vmem:[%s5856_s4 + $0xd8] sm:$0xff] }
 0x803   : > { %v2652_v22 = vsub.f32 1.5, %v2651_v3  ;;  %3684 = vmatpush.bf16.msra.mxu3 %v5068_v6  ;;  %v2744_v3 = vld [vmem:[%s5900_s22] sm:$0xf]  ;;  %3628 = vmatpush.bf16.msra.mxu1 %v5050_v18 }
 0x804   : > { %v6914_v36 = vadd.f32 %v6880_v23, %v2693_v39  ;;  %v5058_v39 = vld [vmem:[%s5856_s4 + $0x90] sm:$0xff]  ;;  %v6980_v33 = vperm.slane %v2744_v3, 3 }
 0x805   : > { %v2653_v50 = vmul.f32 %v5391_v16, %v2652_v22  ;;  %v5059_v22 = vld [vmem:[%s5856_s4 + $0x98] sm:$0xff] }
 0x806   : > { %3599 = vmatpush.bf16.msra.mxu0 %v5042_v43 }
 0x807   : > { %v2657_v31 = vsel %vm2656_vm15, %v5391_v16, %v2653_v50  ;;  %v5060_v16 = vld [vmem:[%s5856_s4 + $0xa0] sm:$0xff]  ;;  %3685 = vmatpush.bf16.msra.mxu3 %v5067_v37  ;;  %v5041_v50 = vld [vmem:[%s5856_s4 + $0x8] sm:$0xff] }
 0x808   : > { %v2683_v30 = vmul.f32 %v2657_v31, %v6786_v20  ;;  %v2596_v20 = vadd.f32 1e-12, %v2588_v40  ;;  %3655 = vmatpush.bf16.msra.mxu2 %v5060_v16  ;;  %v5049_v31 = vld [vmem:[%s5856_s4 + $0x48] sm:$0xff] }
 0x809   : > { %3629 = vmatpush.bf16.msra.mxu1 %v5049_v31 }
 0x80a   : > { %v2694_v29 = vmul.f32 %v6872_v53, %v2683_v30  ;;  %5392 = vrsqrt.f32 %v2596_v20  ;;  %vm2664_vm1 = vweird.f32 %v2596_v20  ;;  %v6962_v30 = vperm.slane %v2744_v3, 1  ;;  %3600 = vmatpush.bf16.msra.mxu0 %v5041_v50 }
 0x80b   : > { %3686 = vmatpush.bf16.msra.mxu3 %v5066_v48 }
 0x80c   : > { %v6917_v44 = vadd.f32 %v6880_v23, %v2694_v29  ;;  %3656 = vmatpush.bf16.msra.mxu2 %v5059_v22 }
 0x80e   : > { %v2710_v0 = vpack.c.bf16 %v6917_v44, %v6914_v36 }
 0x810   : > { %2932 = vmatmul.bf16.gmra.mxu0 %v2710_v0  ;;  %2961 = vmatmul.bf16.gmra.mxu1 %v2710_v0  ;;  %v5393_v25 = vpop.eup %5392 }
 0x811   : > { %2990 = vmatmul.bf16.gmra.mxu2 %v2710_v0  ;;  %3019 = vmatmul.bf16.gmra.mxu3 %v2710_v0  ;;  %v2659_v32 = vmul.f32 %v5393_v25, %v2596_v20  ;;  %vm2665_vm0 = vweird.f32 %v5393_v25  ;;  %v5040_v0 = vld [vmem:[%s5856_s4] sm:$0xff] }
 0x812   : > { %vm2666_vm2 = vmor %vm2664_vm1, %vm2665_vm0  ;;  %3657 = vmatpush.bf16.msra.mxu2 %v5058_v39  ;;  %v5048_v20 = vld [vmem:[%s5856_s4 + $0x40] sm:$0xff]  ;;  %3601 = vmatpush.bf16.msra.mxu0 %v5040_v0 }
 0x813   : > { %v2660_v1 = vmul.f32 %v5393_v25, %v2659_v32  ;;  %3630 = vmatpush.bf16.msra.mxu1 %v5048_v20 }
 0x815   : > { %v2661_v45 = vmul.f32 0.5, %v2660_v1  ;;  %v5057_v1 = vld [vmem:[%s5856_s4 + $0x88] sm:$0xff] }
 0x816   : > { %3658 = vmatpush.bf16.msra.mxu2 %v5057_v1 }
 0x817   : > { %v2662_v27 = vsub.f32 1.5, %v2661_v45  ;;  %v6978_v45 = vperm.slane %v2744_v3, 2 }
 0x819   : > { %v2663_v2 = vmul.f32 %v5393_v25, %v2662_v27 }
 0x81a   : > { %3659 = vmatpush.bf16.msra.mxu2 %v5056_v12 }
 0x81b   : > { %v2667_v21 = vsel %vm2666_vm2, %v5393_v25, %v2663_v2 }
 0x81c   : > { %v2684_v47 = vmul.f32 %v2667_v21, %v6791_v62 }
 0x81e   : > { %v2695_v62 = vmul.f32 %v6872_v53, %v2684_v47 }
 0x820   : > { %v6948_v13 = vadd.f32 %v6880_v23, %v2695_v62 }
 0x822   : > { %v2581_v26 = vpop.xlane.xlu2 %2580 }
 0x823   : > { %v2589_v55 = vmul.f32 %v2581_v26, %v6755_v38  ;;  %v5065_v26 = vld [vmem:[%s5856_s4 + $0xc8] sm:$0xff] }
 0x824   : > { %3687 = vmatpush.bf16.msra.mxu3 %v5065_v26 }
 0x825   : > { %v2597_v24 = vadd.f32 1e-12, %v2589_v55 }
 0x827   : > { %5394 = vrsqrt.f32 %v2597_v24  ;;  %vm2674_vm4 = vweird.f32 %v2597_v24 }
 0x828   : > { %3688 = vmatpush.bf16.msra.mxu3 %v5064_v56 }
 0x82d   : > { %v5395_v61 = vpop.eup %5394 }
 0x82e   : > { %v2669_v9 = vmul.f32 %v5395_v61, %v2597_v24  ;;  %vm2675_vm3 = vweird.f32 %v5395_v61 }
 0x82f   : > { %vm2676_vm5 = vmor %vm2674_vm4, %vm2675_vm3 }
 0x830   : > { %v2670_v7 = vmul.f32 %v5395_v61, %v2669_v9 }
 0x832   : > { %v2671_v19 = vmul.f32 0.5, %v2670_v7 }
 0x834   : > { %v2672_v11 = vsub.f32 1.5, %v2671_v19 }
 0x836   : > { %v2673_v10 = vmul.f32 %v5395_v61, %v2672_v11 }
 0x838   : > { %v2677_v54 = vsel %vm2676_vm5, %v5395_v61, %v2673_v10 }
 0x839   : > { %v2685_v49 = vmul.f32 %v2677_v54, %v6863_v57 }
 0x83b   : > { %v2696_v8 = vmul.f32 %v6872_v53, %v2685_v49 }
 0x83d   : > { %v6951_v57 = vadd.f32 %v6880_v23, %v2696_v8  ;;  %v6960_v23 = vperm.slane %v2744_v3, 0 }
 0x83f   : > { %v2711_v53 = vpack.c.bf16 %v6951_v57, %v6948_v13 }
 0x841   : > { %2937 = vmatmul.bf16.gmra.mxu0 %v2711_v53  ;;  %2966 = vmatmul.bf16.gmra.mxu1 %v2711_v53 }
 0x842   : > { %2995 = vmatmul.bf16.gmra.mxu2 %v2711_v53  ;;  %3024 = vmatmul.bf16.gmra.mxu3 %v2711_v53 }
 0x844   : > { %v2923_v29 = vpop.f32.mrf.mxu0  ;;  %v2952_v40 = vpop.f32.mrf.mxu1 }
 0x845   : > { %v6969_v25 = vadd.f32 %v2923_v29, %v6960_v23  ;;  %v6972_v32 = vadd.f32 %v2952_v40, %v6962_v30 }
 0x847   : > { %v3062_v55 = vmul.f32 0.044715, %v6969_v25  ;;  %v3063_v24 = vmul.f32 0.044715, %v6972_v32 }
 0x849   : > { %v3094_v14 = vmul.f32 %v3062_v55, %v6969_v25  ;;  %v3095_v27 = vmul.f32 %v3063_v24, %v6972_v32 }
 0x84b   : > { %v3126_v61 = vmul.f32 %v3094_v14, %v6969_v25  ;;  %v3127_v52 = vmul.f32 %v3095_v27, %v6972_v32  ;;  %v2981_v15 = vpop.f32.mrf.mxu2  ;;  %v3010_v2 = vpop.f32.mrf.mxu3 }
 0x84c   : > { %v6989_v9 = vadd.f32 %v2981_v15, %v6978_v45  ;;  %v6992_v58 = vadd.f32 %v3010_v2, %v6980_v33  ;;  %v2925_v35 = vpop.f32.mrf.mxu0  ;;  %v2954_v7 = vpop.f32.mrf.mxu1 }
 0x84d   : > { %v2926_v5 = vadd.f32 %v2925_v35, %v6960_v23  ;;  %v2955_v59 = vadd.f32 %v2954_v7, %v6962_v30  ;;  %v3158_v21 = vadd.f32 %v3126_v61, %v6969_v25  ;;  %v3159_v46 = vadd.f32 %v3127_v52, %v6972_v32 }
 0x84e   : > { %v3064_v19 = vmul.f32 0.044715, %v6989_v9  ;;  %v3065_v11 = vmul.f32 0.044715, %v6992_v58  ;;  %v3030_v7 = vmul.f32 0.5, %v6969_v25 }
 0x84f   : > { %v3066_v10 = vmul.f32 0.044715, %v2926_v5  ;;  %v3067_v41 = vmul.f32 0.044715, %v2955_v59  ;;  %v3190_v63 = vmul.f32 0.7978846, %v3158_v21 }
 0x850   : > { %v3096_v34 = vmul.f32 %v3064_v19, %v6989_v9  ;;  %v3097_v47 = vmul.f32 %v3065_v11, %v6992_v58  ;;  %v3191_v49 = vmul.f32 0.7978846, %v3159_v46  ;;  %v3034_v21 = vmul.f32 0.5, %v2926_v5 }
 0x851   : > { %v3098_v60 = vmul.f32 %v3066_v10, %v2926_v5  ;;  %v3099_v62 = vmul.f32 %v3067_v41, %v2955_v59  ;;  %5396 = vtanh.f32 %v3190_v63  ;;  %v3031_v11 = vmul.f32 0.5, %v6972_v32 }
 0x852   : > { %v3128_v54 = vmul.f32 %v3096_v34, %v6989_v9  ;;  %v3129_v17 = vmul.f32 %v3097_v47, %v6992_v58  ;;  %5398 = vtanh.f32 %v3191_v49  ;;  %v3035_v46 = vmul.f32 0.5, %v2955_v59 }
 0x853   : > { %v2983_v16 = vpop.f32.mrf.mxu2  ;;  %v3012_v6 = vpop.f32.mrf.mxu3  ;;  %v3130_v8 = vmul.f32 %v3098_v60, %v2926_v5  ;;  %v3131_v3 = vmul.f32 %v3099_v62, %v2955_v59 }
 0x854   : > { %v2984_v43 = vadd.f32 %v2983_v16, %v6978_v45  ;;  %v3160_v18 = vadd.f32 %v3128_v54, %v6989_v9  ;;  %v3013_v22 = vadd.f32 %v3012_v6, %v6980_v33  ;;  %v3161_v37 = vadd.f32 %v3129_v17, %v6992_v58 }
 0x855   : > { %v3162_v53 = vadd.f32 %v3130_v8, %v2926_v5  ;;  %v3163_v50 = vadd.f32 %v3131_v3, %v2955_v59  ;;  %v3032_v5 = vmul.f32 0.5, %v6989_v9  ;;  %v3033_v59 = vmul.f32 0.5, %v6992_v58 }
 0x856   : > { %v3068_v31 = vmul.f32 0.044715, %v2984_v43  ;;  %v3069_v39 = vmul.f32 0.044715, %v3013_v22  ;;  %v3192_v29 = vmul.f32 0.7978846, %v3160_v18 }
 0x857   : > { %v3194_v48 = vmul.f32 0.7978846, %v3162_v53  ;;  %v3195_v40 = vmul.f32 0.7978846, %v3163_v50  ;;  %v3193_v20 = vmul.f32 0.7978846, %v3161_v37  ;;  %v5397_v55 = vpop.eup %5396 }
 0x858   : > { %v3100_v0 = vmul.f32 %v3068_v31, %v2984_v43  ;;  %v3101_v1 = vmul.f32 %v3069_v39, %v3013_v22  ;;  %v5399_v14 = vpop.eup %5398  ;;  %v3254_v56 = vadd.f32 1.0, %v5397_v55  ;;  %v3036_v8 = vmul.f32 0.5, %v2984_v43 }
 0x859   : > { %5400 = vtanh.f32 %v3194_v48  ;;  %v3255_v15 = vadd.f32 1.0, %v5399_v14  ;;  %v3037_v18 = vmul.f32 0.5, %v3013_v22 }
 0x85a   : > { %5402 = vtanh.f32 %v3195_v40  ;;  %v3132_v26 = vmul.f32 %v3100_v0, %v2984_v43  ;;  %v3133_v24 = vmul.f32 %v3101_v1, %v3013_v22  ;;  %v3286_v10 = vmul.f32 %v3254_v56, %v3030_v7 }
 0x85b   : > { %5404 = vtanh.f32 %v3192_v29  ;;  %v3287_v54 = vmul.f32 %v3255_v15, %v3031_v11 }
 0x85c   : > { %v3164_v27 = vadd.f32 %v3132_v26, %v2984_v43  ;;  %5406 = vtanh.f32 %v3193_v20  ;;  %v3165_v12 = vadd.f32 %v3133_v24, %v3013_v22 }
 0x85e   : > { %v3196_v61 = vmul.f32 0.7978846, %v3164_v27  ;;  %v3197_v2 = vmul.f32 0.7978846, %v3165_v12 }
 0x85f   : > { %v5401_v52 = vpop.eup %5400 }
 0x860   : > { %v5403_v35 = vpop.eup %5402  ;;  %v3258_v19 = vadd.f32 1.0, %v5401_v52  ;;  %5408 = vtanh.f32 %v3196_v61 }
 0x861   : > { %v3259_v34 = vadd.f32 1.0, %v5403_v35  ;;  %5410 = vtanh.f32 %v3197_v2  ;;  %v5405_v47 = vpop.eup %5404 }
 0x862   : > { %v3290_v41 = vmul.f32 %v3258_v19, %v3034_v21  ;;  %v5407_v63 = vpop.eup %5406  ;;  %v3256_v49 = vadd.f32 1.0, %v5405_v47 }
 0x863   : > { %v3291_v17 = vmul.f32 %v3259_v34, %v3035_v46  ;;  %v3257_v6 = vadd.f32 1.0, %v5407_v63 }
 0x864   : > { %v3318_v60 = vpack.c.bf16 %v3290_v41, %v3286_v10  ;;  %v3288_v37 = vmul.f32 %v3256_v49, %v3032_v5 }
 0x865   : > { %v3319_v62 = vpack.c.bf16 %v3291_v17, %v3287_v54  ;;  %v3289_v50 = vmul.f32 %v3257_v6, %v3033_v59 }
 0x866   : > { %v5409_v16 = vpop.eup %5408  ;;  %3602 = vmatmul.bf16.vlgmr.msra.gmra.mxu0 %v3318_v60 }
 0x867   : > { %v5411_v25 = vpop.eup %5410  ;;  %v3260_v32 = vadd.f32 1.0, %v5409_v16  ;;  %3631 = vmatmul.bf16.vlgmr.msra.gmra.mxu1 %v3319_v62 }
 0x868   : > { %v3261_v3 = vadd.f32 1.0, %v5411_v25 }
 0x869   : > { %v3292_v53 = vmul.f32 %v3260_v32, %v3036_v8 }
 0x86a   : > { %v3293_v31 = vmul.f32 %v3261_v3, %v3037_v18 }
 0x86b   : > { %v3320_v39 = vpack.c.bf16 %v3292_v53, %v3288_v37 }
 0x86c   : > { %v3321_v48 = vpack.c.bf16 %v3293_v31, %v3289_v50 }
 0x86d   : > { %3660 = vmatmul.bf16.vlgmr.msra.gmra.mxu2 %v3320_v39 }
 0x86e   : > { %3689 = vmatmul.bf16.vlgmr.msra.gmra.mxu3 %v3321_v48 }
 0x87d   : > { %v2928_v29 = vpop.f32.mrf.mxu0  ;;  %v2957_v40 = vpop.f32.mrf.mxu1 }
 0x87e   : > { %v2929_v0 = vadd.f32 %v2928_v29, %v6960_v23  ;;  %v2958_v9 = vadd.f32 %v2957_v40, %v6962_v30 }
 0x880   : > { %v3070_v43 = vmul.f32 0.044715, %v2929_v0  ;;  %v3071_v20 = vmul.f32 0.044715, %v2958_v9  ;;  %v3038_v50 = vmul.f32 0.5, %v2929_v0  ;;  %v3039_v31 = vmul.f32 0.5, %v2958_v9 }
 0x882   : > { %v3102_v1 = vmul.f32 %v3070_v43, %v2929_v0  ;;  %v3103_v58 = vmul.f32 %v3071_v20, %v2958_v9 }
 0x884   : > { %v2986_v22 = vpop.f32.mrf.mxu2  ;;  %v3015_v26 = vpop.f32.mrf.mxu3  ;;  %v3134_v55 = vmul.f32 %v3102_v1, %v2929_v0  ;;  %v3135_v24 = vmul.f32 %v3103_v58, %v2958_v9 }
 0x885   : > { %v2987_v14 = vadd.f32 %v2986_v22, %v6978_v45  ;;  %v3016_v27 = vadd.f32 %v3015_v26, %v6980_v33  ;;  %v2930_v12 = vpop.f32.mrf.mxu0  ;;  %v2959_v56 = vpop.f32.mrf.mxu1 }
 0x886   : > { %v2931_v61 = vadd.f32 %v2930_v12, %v6960_v23  ;;  %v2960_v52 = vadd.f32 %v2959_v56, %v6962_v30  ;;  %v3166_v15 = vadd.f32 %v3134_v55, %v2929_v0  ;;  %v3167_v2 = vadd.f32 %v3135_v24, %v2958_v9 }
 0x887   : > { %v3072_v35 = vmul.f32 0.044715, %v2987_v14  ;;  %v3073_v7 = vmul.f32 0.044715, %v3016_v27  ;;  %v7027_v29 = vmul.f32 0.5, %v2987_v14  ;;  %v7030_v12 = vmul.f32 0.5, %v3016_v27 }
 0x888   : > { %v3074_v21 = vmul.f32 0.044715, %v2931_v61  ;;  %v3075_v19 = vmul.f32 0.044715, %v2960_v52  ;;  %v3198_v34 = vmul.f32 0.7978846, %v3166_v15 }
 0x889   : > { %v3104_v11 = vmul.f32 %v3072_v35, %v2987_v14  ;;  %v3105_v46 = vmul.f32 %v3073_v7, %v3016_v27  ;;  %v3199_v47 = vmul.f32 0.7978846, %v3167_v2  ;;  %v3042_v24 = vmul.f32 0.5, %v2931_v61 }
 0x88a   : > { %v3106_v10 = vmul.f32 %v3074_v21, %v2931_v61  ;;  %v3107_v41 = vmul.f32 %v3075_v19, %v2960_v52  ;;  %5412 = vtanh.f32 %v3198_v34  ;;  %v3043_v2 = vmul.f32 0.5, %v2960_v52 }
 0x88b   : > { %v3136_v63 = vmul.f32 %v3104_v11, %v2987_v14  ;;  %5414 = vtanh.f32 %v3199_v47  ;;  %v3137_v62 = vmul.f32 %v3105_v46, %v3016_v27 }
 0x88c   : > { %v2988_v54 = vpop.f32.mrf.mxu2  ;;  %v3017_v17 = vpop.f32.mrf.mxu3  ;;  %v3138_v60 = vmul.f32 %v3106_v10, %v2931_v61  ;;  %v3139_v49 = vmul.f32 %v3107_v41, %v2960_v52 }
 0x88d   : > { %v2989_v16 = vadd.f32 %v2988_v54, %v6978_v45  ;;  %v3018_v6 = vadd.f32 %v3017_v17, %v6980_v33  ;;  %v2933_v25 = vpop.f32.mrf.mxu0  ;;  %v2962_v5 = vpop.f32.mrf.mxu1  ;;  %v3168_v8 = vadd.f32 %v3136_v63, %v2987_v14  ;;  %v3169_v40 = vadd.f32 %v3137_v62, %v3016_v27 }
 0x88e   : > { %v7021_v32 = vadd.f32 %v2933_v25, %v6960_v23  ;;  %v7024_v59 = vadd.f32 %v2962_v5, %v6962_v30  ;;  %v3170_v18 = vadd.f32 %v3138_v60, %v2931_v61  ;;  %v3171_v3 = vadd.f32 %v3139_v49, %v2960_v52 }
 0x88f   : > { %v3076_v37 = vmul.f32 0.044715, %v2989_v16  ;;  %v3077_v53 = vmul.f32 0.044715, %v3018_v6  ;;  %v3200_v22 = vmul.f32 0.7978846, %v3168_v8 }
 0x890   : > { %v3078_v39 = vmul.f32 0.044715, %v7021_v32  ;;  %v3202_v48 = vmul.f32 0.7978846, %v3170_v18  ;;  %v5413_v43 = vpop.eup %5412  ;;  %v3203_v58 = vmul.f32 0.7978846, %v3171_v3 }
 0x891   : > { %v3108_v20 = vmul.f32 %v3076_v37, %v2989_v16  ;;  %v3109_v1 = vmul.f32 %v3077_v53, %v3018_v6  ;;  %v5415_v26 = vpop.eup %5414  ;;  %v3079_v55 = vmul.f32 0.044715, %v7024_v59  ;;  %v7033_v35 = vmul.f32 0.5, %v2989_v16 }
 0x892   : > { %5416 = vtanh.f32 %v3202_v48  ;;  %v3110_v0 = vmul.f32 %v3078_v39, %v7021_v32  ;;  %v3201_v7 = vmul.f32 0.7978846, %v3169_v40  ;;  %v3262_v11 = vadd.f32 1.0, %v5413_v43 }
 0x893   : > { %5418 = vtanh.f32 %v3203_v58  ;;  %v3140_v9 = vmul.f32 %v3108_v20, %v2989_v16  ;;  %v3141_v56 = vmul.f32 %v3109_v1, %v3018_v6  ;;  %v3263_v27 = vadd.f32 1.0, %v5415_v26 }
 0x894   : > { %v2991_v14 = vpop.f32.mrf.mxu2  ;;  %v3020_v15 = vpop.f32.mrf.mxu3  ;;  %5420 = vtanh.f32 %v3200_v22  ;;  %v3111_v52 = vmul.f32 %v3079_v55, %v7024_v59  ;;  %v3142_v54 = vmul.f32 %v3110_v0, %v7021_v32  ;;  %v3294_v8 = vmul.f32 %v3262_v11, %v3038_v50 }
 0x895   : > { %v7036_v21 = vadd.f32 %v2991_v14, %v6978_v45  ;;  %v2935_v19 = vpop.f32.mrf.mxu0  ;;  %v2964_v61 = vpop.f32.mrf.mxu1  ;;  %v3172_v46 = vadd.f32 %v3140_v9, %v2989_v16  ;;  %v3173_v10 = vadd.f32 %v3141_v56, %v3018_v6  ;;  %5422 = vtanh.f32 %v3201_v7 }
 0x896   : > { %v7039_v34 = vadd.f32 %v2935_v19, %v6960_v23  ;;  %v7042_v47 = vadd.f32 %v2964_v61, %v6962_v30  ;;  %v7048_v60 = vadd.f32 %v3020_v15, %v6980_v33  ;;  %v3045_v18 = vmul.f32 0.5, %v3018_v6 }
 0x897   : > { %v3080_v41 = vmul.f32 0.044715, %v7036_v21  ;;  %v3204_v63 = vmul.f32 0.7978846, %v3172_v46  ;;  %v3205_v16 = vmul.f32 0.7978846, %v3173_v10  ;;  %v3295_v39 = vmul.f32 %v3263_v27, %v3039_v31 }
 0x898   : > { %v5417_v17 = vpop.eup %5416  ;;  %v3082_v49 = vmul.f32 0.044715, %v7039_v34  ;;  %v3083_v62 = vmul.f32 0.044715, %v7042_v47  ;;  %v3174_v43 = vadd.f32 %v3142_v54, %v7021_v32  ;;  %v3143_v20 = vmul.f32 %v3111_v52, %v7024_v59 }
 0x899   : > { %v5419_v25 = vpop.eup %5418  ;;  %v3266_v5 = vadd.f32 1.0, %v5417_v17  ;;  %5424 = vtanh.f32 %v3204_v63  ;;  %v3112_v58 = vmul.f32 %v3080_v41, %v7036_v21  ;;  %v3081_v50 = vmul.f32 0.044715, %v7048_v60 }
 0x89a   : > { %v5421_v3 = vpop.eup %5420  ;;  %v3114_v37 = vmul.f32 %v3082_v49, %v7039_v34  ;;  %v3267_v53 = vadd.f32 1.0, %v5419_v25  ;;  %5426 = vtanh.f32 %v3205_v16  ;;  %v3115_v48 = vmul.f32 %v3083_v62, %v7042_v47 }
 0x89b   : > { %v3298_v40 = vmul.f32 %v3266_v5, %v3042_v24  ;;  %v5423_v1 = vpop.eup %5422  ;;  %v3264_v9 = vadd.f32 1.0, %v5421_v3  ;;  %v3206_v7 = vmul.f32 0.7978846, %v3174_v43  ;;  %v3175_v27 = vadd.f32 %v3143_v20, %v7024_v59 }
 0x89c   : > { %v2993_v22 = vpop.f32.mrf.mxu2  ;;  %v3022_v6 = vpop.f32.mrf.mxu3  ;;  %v3299_v26 = vmul.f32 %v3267_v53, %v3043_v2  ;;  %v3146_v55 = vmul.f32 %v3114_v37, %v7039_v34  ;;  %v3265_v14 = vadd.f32 1.0, %v5423_v1  ;;  %v3147_v11 = vmul.f32 %v3115_v48, %v7042_v47 }
 0x89d   : > { %v7060_v31 = vadd.f32 %v2993_v22, %v6978_v45  ;;  %v7063_v0 = vadd.f32 %v3022_v6, %v6980_v33  ;;  %v3322_v24 = vpack.c.bf16 %v3298_v40, %v3294_v8  ;;  %v3113_v10 = vmul.f32 %v3081_v50, %v7048_v60 }
 0x89e   : > { %v3323_v56 = vpack.c.bf16 %v3299_v26, %v3295_v39  ;;  %v3178_v15 = vadd.f32 %v3146_v55, %v7039_v34  ;;  %5428 = vtanh.f32 %v3206_v7  ;;  %v3296_v54 = vmul.f32 %v3264_v9, %v7027_v29 }
 0x89f   : > { %v5425_v19 = vpop.eup %5424  ;;  %v3084_v61 = vmul.f32 0.044715, %v7060_v31  ;;  %v3085_v2 = vmul.f32 0.044715, %v7063_v0  ;;  %3607 = vmatmul.bf16.gmra.mxu0 %v3322_v24  ;;  %v3179_v49 = vadd.f32 %v3147_v11, %v7042_v47  ;;  %v3207_v25 = vmul.f32 0.7978846, %v3175_v27 }
 0x8a0   : > { %v5427_v46 = vpop.eup %5426  ;;  %3636 = vmatmul.bf16.gmra.mxu1 %v3323_v56  ;;  %v3268_v52 = vadd.f32 1.0, %v5425_v19  ;;  %v3210_v41 = vmul.f32 0.7978846, %v3178_v15  ;;  %v3297_v5 = vmul.f32 %v3265_v14, %v7030_v12  ;;  %v3144_v37 = vmul.f32 %v3112_v58, %v7036_v21 }
 0x8a1   : > { %v3116_v63 = vmul.f32 %v3084_v61, %v7060_v31  ;;  %v3269_v17 = vadd.f32 1.0, %v5427_v46  ;;  %v3117_v62 = vmul.f32 %v3085_v2, %v7063_v0  ;;  %v3211_v3 = vmul.f32 0.7978846, %v3179_v49 }
 0x8a2   : > { %v3300_v16 = vmul.f32 %v3268_v52, %v7033_v35  ;;  %5430 = vtanh.f32 %v3210_v41  ;;  %v3176_v48 = vadd.f32 %v3144_v37, %v7036_v21  ;;  %v3145_v43 = vmul.f32 %v3113_v10, %v7048_v60 }
 0x8a3   : > { %v3301_v8 = vmul.f32 %v3269_v17, %v3045_v18  ;;  %5432 = vtanh.f32 %v3207_v25  ;;  %v3148_v39 = vmul.f32 %v3116_v63, %v7060_v31  ;;  %v3149_v12 = vmul.f32 %v3117_v62, %v7063_v0 }
 0x8a4   : > { %v3324_v53 = vpack.c.bf16 %v3300_v16, %v3296_v54  ;;  %5434 = vtanh.f32 %v3211_v3  ;;  %v5429_v40 = vpop.eup %5428  ;;  %v3208_v20 = vmul.f32 0.7978846, %v3176_v48  ;;  %v3177_v50 = vadd.f32 %v3145_v43, %v7048_v60 }
 0x8a5   : > { %v3325_v29 = vpack.c.bf16 %v3301_v8, %v3297_v5  ;;  %v3180_v35 = vadd.f32 %v3148_v39, %v7060_v31  ;;  %v3270_v18 = vadd.f32 1.0, %v5429_v40  ;;  %v3181_v22 = vadd.f32 %v3149_v12, %v7063_v0 }
 0x8a6   : > { %3665 = vmatmul.bf16.gmra.mxu2 %v3324_v53  ;;  %v3046_v6 = vmul.f32 0.5, %v7021_v32  ;;  %v3050_v26 = vmul.f32 0.5, %v7039_v34  ;;  %5436 = vtanh.f32 %v3208_v20  ;;  %v3209_v9 = vmul.f32 0.7978846, %v3177_v50 }
 0x8a7   : > { %3694 = vmatmul.bf16.gmra.mxu3 %v3325_v29  ;;  %v3212_v58 = vmul.f32 0.7978846, %v3180_v35  ;;  %v3213_v56 = vmul.f32 0.7978846, %v3181_v22  ;;  %v3047_v61 = vmul.f32 0.5, %v7024_v59  ;;  %v3051_v2 = vmul.f32 0.5, %v7042_v47 }
 0x8a8   : > { %v5431_v1 = vpop.eup %5430  ;;  %v3302_v15 = vmul.f32 %v3270_v18, %v3046_v6  ;;  %v3048_v63 = vmul.f32 0.5, %v7036_v21  ;;  %v3052_v54 = vmul.f32 0.5, %v7060_v31  ;;  %v3049_v25 = vmul.f32 0.5, %v7048_v60 }
 0x8a9   : > { %v3274_v55 = vadd.f32 1.0, %v5431_v1  ;;  %v5433_v24 = vpop.eup %5432  ;;  %5438 = vtanh.f32 %v3212_v58  ;;  %v3053_v5 = vmul.f32 0.5, %v7063_v0 }
 0x8aa   : > { %v5435_v14 = vpop.eup %5434  ;;  %v3271_v19 = vadd.f32 1.0, %v5433_v24  ;;  %5440 = vtanh.f32 %v3209_v9 }
 0x8ab   : > { %v3306_v7 = vmul.f32 %v3274_v55, %v3050_v26  ;;  %v3275_v11 = vadd.f32 1.0, %v5435_v14  ;;  %5442 = vtanh.f32 %v3213_v56 }
 0x8ac   : > { %v3303_v32 = vmul.f32 %v3271_v19, %v3047_v61  ;;  %v5437_v46 = vpop.eup %5436 }
 0x8ad   : > { %v3326_v27 = vpack.c.bf16 %v3306_v7, %v3302_v15  ;;  %v3307_v34 = vmul.f32 %v3275_v11, %v3051_v2  ;;  %v3272_v41 = vadd.f32 1.0, %v5437_v46 }
 0x8af   : > { %3612 = vmatmul.bf16.gmra.mxu0 %v3326_v27  ;;  %v5439_v10 = vpop.eup %5438  ;;  %v3327_v52 = vpack.c.bf16 %v3307_v34, %v3303_v32  ;;  %v3304_v47 = vmul.f32 %v3272_v41, %v3048_v63 }
 0x8b0   : > { %v3276_v17 = vadd.f32 1.0, %v5439_v10  ;;  %v5441_v49 = vpop.eup %5440 }
 0x8b1   : > { %3641 = vmatmul.bf16.gmra.mxu1 %v3327_v52  ;;  %v5443_v59 = vpop.eup %5442  ;;  %v3273_v16 = vadd.f32 1.0, %v5441_v49 }
 0x8b2   : > { %v3308_v62 = vmul.f32 %v3276_v17, %v3052_v54  ;;  %v3277_v8 = vadd.f32 1.0, %v5443_v59 }
 0x8b3   : > { %v3305_v37 = vmul.f32 %v3273_v16, %v3049_v25 }
 0x8b4   : > { %v3328_v3 = vpack.c.bf16 %v3308_v62, %v3304_v47  ;;  %v3309_v53 = vmul.f32 %v3277_v8, %v3053_v5 }
 0x8b6   : > { %3670 = vmatmul.bf16.gmra.mxu2 %v3328_v3  ;;  %v3329_v39 = vpack.c.bf16 %v3309_v53, %v3305_v37 }
 0x8b8   : > { %3699 = vmatmul.bf16.gmra.mxu3 %v3329_v39 }
 0x8be   : > { %v2938_v21 = vpop.f32.mrf.mxu0  ;;  %v2967_v31 = vpop.f32.mrf.mxu1 }
 0x8bf   : > { %v7094_v29 = vadd.f32 %v2938_v21, %v6960_v23  ;;  %v7097_v48 = vadd.f32 %v2967_v31, %v6962_v30 }
 0x8c1   : > { %v3086_v40 = vmul.f32 0.044715, %v7094_v29  ;;  %v3087_v60 = vmul.f32 0.044715, %v7097_v48 }
 0x8c3   : > { %v3118_v0 = vmul.f32 %v3086_v40, %v7094_v29  ;;  %v3119_v35 = vmul.f32 %v3087_v60, %v7097_v48 }
 0x8c5   : > { %v2996_v43 = vpop.f32.mrf.mxu2  ;;  %v3025_v12 = vpop.f32.mrf.mxu3  ;;  %v3150_v18 = vmul.f32 %v3118_v0, %v7094_v29  ;;  %v3151_v20 = vmul.f32 %v3119_v35, %v7097_v48 }
 0x8c6   : > { %v7106_v1 = vadd.f32 %v2996_v43, %v6978_v45  ;;  %v7109_v58 = vadd.f32 %v3025_v12, %v6980_v33  ;;  %v2940_v50 = vpop.f32.mrf.mxu0  ;;  %v2969_v22 = vpop.f32.mrf.mxu1  ;;  %v3054_v12 = vmul.f32 0.5, %v7094_v29 }
 0x8c7   : > { %v2941_v6 = vadd.f32 %v2940_v50, %v6960_v23  ;;  %v2970_v26 = vadd.f32 %v2969_v22, %v6962_v30  ;;  %v3182_v55 = vadd.f32 %v3150_v18, %v7094_v29  ;;  %v3183_v56 = vadd.f32 %v3151_v20, %v7097_v48 }
 0x8c8   : > { %v3088_v24 = vmul.f32 0.044715, %v7106_v1  ;;  %v3089_v9 = vmul.f32 0.044715, %v7109_v58  ;;  %v3055_v50 = vmul.f32 0.5, %v7097_v48  ;;  %v3056_v48 = vmul.f32 0.5, %v7106_v1 }
 0x8c9   : > { %v3090_v14 = vmul.f32 0.044715, %v2941_v6  ;;  %v3091_v15 = vmul.f32 0.044715, %v2970_v26  ;;  %v3214_v11 = vmul.f32 0.7978846, %v3182_v55 }
 0x8ca   : > { %v3120_v7 = vmul.f32 %v3088_v24, %v7106_v1  ;;  %v3121_v19 = vmul.f32 %v3089_v9, %v7109_v58  ;;  %v3215_v23 = vmul.f32 0.7978846, %v3183_v56  ;;  %v3058_v18 = vmul.f32 0.5, %v2941_v6 }
 0x8cb   : > { %v3122_v61 = vmul.f32 %v3090_v14, %v2941_v6  ;;  %v3123_v2 = vmul.f32 %v3091_v15, %v2970_v26  ;;  %5444 = vtanh.f32 %v3214_v11  ;;  %v3059_v22 = vmul.f32 0.5, %v2970_v26 }
 0x8cc   : > { %v3152_v30 = vmul.f32 %v3120_v7, %v7106_v1  ;;  %v3153_v27 = vmul.f32 %v3121_v19, %v7109_v58  ;;  %5446 = vtanh.f32 %v3215_v23 }
 0x8cd   : > { %v2998_v32 = vpop.f32.mrf.mxu2  ;;  %v3027_v34 = vpop.f32.mrf.mxu3  ;;  %v3154_v46 = vmul.f32 %v3122_v61, %v2941_v6  ;;  %v3155_v10 = vmul.f32 %v3123_v2, %v2970_v26 }
 0x8ce   : > { %v2999_v52 = vadd.f32 %v2998_v32, %v6978_v45  ;;  %v3028_v41 = vadd.f32 %v3027_v34, %v6980_v33  ;;  %v3184_v63 = vadd.f32 %v3152_v30, %v7106_v1  ;;  %v3185_v49 = vadd.f32 %v3153_v27, %v7109_v58 }
 0x8cf   : > { %v3186_v54 = vadd.f32 %v3154_v46, %v2941_v6  ;;  %v3187_v17 = vadd.f32 %v3155_v10, %v2970_v26  ;;  %v3057_v30 = vmul.f32 0.5, %v7109_v58 }
 0x8d0   : > { %v3092_v59 = vmul.f32 0.044715, %v2999_v52  ;;  %v3093_v47 = vmul.f32 0.044715, %v3028_v41  ;;  %v3216_v8 = vmul.f32 0.7978846, %v3184_v63 }
 0x8d1   : > { %v3218_v62 = vmul.f32 0.7978846, %v3186_v54  ;;  %v3219_v16 = vmul.f32 0.7978846, %v3187_v17  ;;  %v3217_v3 = vmul.f32 0.7978846, %v3185_v49  ;;  %v5445_v37 = vpop.eup %5444 }
 0x8d2   : > { %v3124_v25 = vmul.f32 %v3092_v59, %v2999_v52  ;;  %v3125_v5 = vmul.f32 %v3093_v47, %v3028_v41  ;;  %v5447_v53 = vpop.eup %5446  ;;  %v3278_v31 = vadd.f32 1.0, %v5445_v37  ;;  %v3060_v26 = vmul.f32 0.5, %v2999_v52  ;;  %v7134_v59 = vld [vmem:[%s939_s25] ss:$0 sm:$0xff]  ;;  %s7453_s25 = sld [smem:[#allocation31_spill]] (!%p4854_p11) }
 0x8d3   : > { %5448 = vtanh.f32 %v3218_v62  ;;  %v3279_v35 = vadd.f32 1.0, %v5447_v53  ;;  %v3061_v27 = vmul.f32 0.5, %v3028_v41 }
 0x8d4   : > { %5450 = vtanh.f32 %v3219_v16  ;;  %v3156_v45 = vmul.f32 %v3124_v25, %v2999_v52  ;;  %v3157_v33 = vmul.f32 %v3125_v5, %v3028_v41  ;;  %v3310_v9 = vmul.f32 %v3278_v31, %v3054_v12 }
 0x8d5   : > { %5452 = vtanh.f32 %v3216_v8  ;;  %v3311_v15 = vmul.f32 %v3279_v35, %v3055_v50 }
 0x8d6   : > { %v3188_v39 = vadd.f32 %v3156_v45, %v2999_v52  ;;  %v3189_v21 = vadd.f32 %v3157_v33, %v3028_v41  ;;  %5454 = vtanh.f32 %v3217_v3 }
 0x8d8   : > { %v3220_v40 = vmul.f32 0.7978846, %v3188_v39  ;;  %v3221_v60 = vmul.f32 0.7978846, %v3189_v21 }
 0x8d9   : > { %v5449_v0 = vpop.eup %5448 }
 0x8da   : > { %v5451_v43 = vpop.eup %5450  ;;  %v3282_v20 = vadd.f32 1.0, %v5449_v0  ;;  %5456 = vtanh.f32 %v3220_v40 }
 0x8db   : > { %v3283_v55 = vadd.f32 1.0, %v5451_v43  ;;  %5458 = vtanh.f32 %v3221_v60  ;;  %v5453_v24 = vpop.eup %5452 }
 0x8dc   : > { %v3314_v56 = vmul.f32 %v3282_v20, %v3058_v18  ;;  %v5455_v14 = vpop.eup %5454  ;;  %v3280_v2 = vadd.f32 1.0, %v5453_v24 }
 0x8dd   : > { %v3315_v7 = vmul.f32 %v3283_v55, %v3059_v22  ;;  %v3281_v29 = vadd.f32 1.0, %v5455_v14 }
 0x8de   : > { %v3330_v19 = vpack.c.bf16 %v3314_v56, %v3310_v9  ;;  %v3312_v34 = vmul.f32 %v3280_v2, %v3056_v48 }
 0x8df   : > { %v3331_v61 = vpack.c.bf16 %v3315_v7, %v3311_v15  ;;  %v3313_v10 = vmul.f32 %v3281_v29, %v3057_v30 }
 0x8e0   : > { %v5457_v11 = vpop.eup %5456  ;;  %3617 = vmatmul.bf16.gmra.mxu0 %v3330_v19 }
 0x8e1   : > { %v5459_v6 = vpop.eup %5458  ;;  %3646 = vmatmul.bf16.gmra.mxu1 %v3331_v61  ;;  %v3284_v23 = vadd.f32 1.0, %v5457_v11 }
 0x8e2   : > { %v3285_v32 = vadd.f32 1.0, %v5459_v6 }
 0x8e3   : > { %v3316_v46 = vmul.f32 %v3284_v23, %v3060_v26  ;;  %v3603_v49 = vpop.f32.mrf.mxu0 }
 0x8e4   : > { %v3317_v63 = vmul.f32 %v3285_v32, %v3061_v27  ;;  %v3604_v1 = vadd.f32 %v7134_v59, %v3603_v49  ;;  %v3632_v58 = vpop.f32.mrf.mxu1 }
 0x8e5   : > { %v3332_v54 = vpack.c.bf16 %v3316_v46, %v3312_v34 }
 0x8e6   : > { %v3333_v17 = vpack.c.bf16 %v3317_v63, %v3313_v10  ;;  %v3633_v52 = vadd.f32 %v3632_v58, %v3604_v1 }
 0x8e7   : > { %3675 = vmatmul.bf16.gmra.mxu2 %v3332_v54 }
 0x8e8   : > { %3704 = vmatmul.bf16.gmra.mxu3 %v3333_v17 }
 0x8eb   : > { %v3605_v41 = vpop.f32.mrf.mxu0 }
 0x8ec   : > { %v3606_v25 = vadd.f32 %v7134_v59, %v3605_v41  ;;  %v3634_v3 = vpop.f32.mrf.mxu1 }
 0x8ee   : > { %v3635_v45 = vadd.f32 %v3634_v3, %v3606_v25 }
 0x8f0   : > { %v3661_v47 = vpop.f32.mrf.mxu2 }
 0x8f1   : > { %v3662_v62 = vadd.f32 %v3661_v47, %v3633_v52  ;;  %v3690_v16 = vpop.f32.mrf.mxu3 }
 0x8f3   : > { %v3691_v5 = vadd.f32 %v3690_v16, %v3662_v62 }
 0x8f5   : > { %v3710_v8 = vadd.f32 %v3691_v5, %v6886_v4 }
 0x8f7   : > { %3720 = vadd.xlane.f32.xlu1 %v3710_v8 }
 0x8f8   : > { %v3663_v33 = vpop.f32.mrf.mxu2 }
 0x8f9   : > { %v3664_v37 = vadd.f32 %v3663_v33, %v3635_v45  ;;  %v3692_v53 = vpop.f32.mrf.mxu3 }
 0x8fb   : > { %v3693_v39 = vadd.f32 %v3692_v53, %v3664_v37 }
 0x8fd   : > { %v7140_v21 = vadd.f32 %v3693_v39, %v6889_v51 }
 0x8ff   : > { %3722 = vadd.xlane.f32.xlu0 %v7140_v21 }
 0x91c   : > { %v3608_v31 = vpop.f32.mrf.mxu0 }
 0x91d   : > { %v3637_v40 = vpop.f32.mrf.mxu1  ;;  %v3609_v60 = vadd.f32 %v7134_v59, %v3608_v31 }
 0x91f   : > { %v3638_v35 = vadd.f32 %v3637_v40, %v3609_v60 }
 0x924   : > { %v3610_v0 = vpop.f32.mrf.mxu0 }
 0x925   : > { %v3611_v18 = vadd.f32 %v7134_v59, %v3610_v0  ;;  %v3639_v20 = vpop.f32.mrf.mxu1 }
 0x927   : > { %v3640_v55 = vadd.f32 %v3639_v20, %v3611_v18 }
 0x929   : > { %v3666_v43 = vpop.f32.mrf.mxu2 }
 0x92a   : > { %v3667_v4 = vadd.f32 %v3666_v43, %v3638_v35  ;;  %v3695_v12 = vpop.f32.mrf.mxu3 }
 0x92c   : > { %v3696_v50 = vadd.f32 %v3695_v12, %v3667_v4  ;;  %v3613_v51 = vpop.f32.mrf.mxu0 }
 0x92d   : > { %v3614_v15 = vadd.f32 %v7134_v59, %v3613_v51 }
 0x92e   : > { %v3712_v22 = vadd.f32 %v3696_v50, %v6902_v42  ;;  %v3642_v7 = vpop.f32.mrf.mxu1 }
 0x92f   : > { %v3643_v61 = vadd.f32 %v3642_v7, %v3614_v15 }
 0x930   : > { %3724 = vadd.xlane.f32.xlu2 %v3712_v22 }
 0x931   : > { %v3668_v24 = vpop.f32.mrf.mxu2 }
 0x932   : > { %v3669_v9 = vadd.f32 %v3668_v24, %v3640_v55  ;;  %v3697_v56 = vpop.f32.mrf.mxu3 }
 0x934   : > { %v3698_v14 = vadd.f32 %v3697_v56, %v3669_v9  ;;  %v3615_v2 = vpop.f32.mrf.mxu0 }
 0x935   : > { %v3616_v6 = vadd.f32 %v7134_v59, %v3615_v2 }
 0x936   : > { %v3713_v19 = vadd.f32 %v3698_v14, %v6905_v28  ;;  %v3644_v26 = vpop.f32.mrf.mxu1 }
 0x937   : > { %v3645_v30 = vadd.f32 %v3644_v26, %v3616_v6 }
 0x938   : > { %3726 = vadd.xlane.f32.xlu1 %v3713_v19 }
 0x939   : > { %v3671_v11 = vpop.f32.mrf.mxu2 }
 0x93a   : > { %v3672_v29 = vadd.f32 %v3671_v11, %v3643_v61 }
 0x93b   : > { %v3700_v42 = vpop.f32.mrf.mxu3 }
 0x93c   : > { %v3701_v48 = vadd.f32 %v3700_v42, %v3672_v29 }
 0x93e   : > { %v3714_v23 = vadd.f32 %v3701_v48, %v6914_v36 }
 0x940   : > { %3728 = vadd.xlane.f32.xlu0 %v3714_v23 }
 0x941   : > { %v3673_v27 = vpop.f32.mrf.mxu2 }
 0x942   : > { %v3674_v32 = vadd.f32 %v3673_v27, %v3645_v30 }
 0x943   : > { %v3702_v34 = vpop.f32.mrf.mxu3 }
 0x944   : > { %v3703_v46 = vadd.f32 %v3702_v34, %v3674_v32 }
 0x946   : > { %v3715_v28 = vadd.f32 %v3703_v46, %v6917_v44 }
 0x948   : > { %3730 = vadd.xlane.f32.xlu2 %v3715_v28 }
 0x95d   : > { %v3618_v10 = vpop.f32.mrf.mxu0 }
 0x95e   : > { %v3619_v63 = vadd.f32 %v7134_v59, %v3618_v10  ;;  %v3647_v54 = vpop.f32.mrf.mxu1 }
 0x960   : > { %v3648_v17 = vadd.f32 %v3647_v54, %v3619_v63  ;;  %v7203_v63 = vld [vmem:[%s942_s21] ss:$0 sm:$0xff]  ;;  %s7451_s21 = sld [smem:[#allocation30_spill]] (!%p4854_p11) }
 0x965   : > { %v3620_v49 = vpop.f32.mrf.mxu0 }
 0x966   : > { %v3621_v47 = vadd.f32 %v7134_v59, %v3620_v49  ;;  %v3649_v25 = vpop.f32.mrf.mxu1  ;;  %v7210_v49 = vld [vmem:[%s945_s29] ss:$0 sm:$0xff]  ;;  %s7449_s29 = sld [smem:[#allocation26_spill]] (!%p4854_p11) }
 0x968   : > { %v3650_v3 = vadd.f32 %v3649_v25, %v3621_v47 }
 0x96a   : > { %v3676_v1 = vpop.f32.mrf.mxu2  ;;  %v3721_v41 = vpop.xlane.xlu1 %3720 }
 0x96b   : > { %v3677_v58 = vadd.f32 %v3676_v1, %v3648_v17  ;;  %v3705_v52 = vpop.f32.mrf.mxu3  ;;  %v3736_v36 = vmul.f32 %v3721_v41, %v6755_v38 }
 0x96d   : > { %v3706_v62 = vadd.f32 %v3705_v52, %v3677_v58  ;;  %v7154_v16 = vsub.f32 %v3710_v8, %v3736_v36 }
 0x96f   : > { %v3716_v44 = vadd.f32 %v3706_v62, %v6948_v13  ;;  %v3752_v5 = vmul.f32 %v7154_v16, %v7154_v16 }
 0x971   : > { %3732 = vadd.xlane.f32.xlu1 %v3716_v44  ;;  %3760 = vadd.xlane.f32.xlu2 %v3752_v5 }
 0x972   : > { %v3678_v45 = vpop.f32.mrf.mxu2  ;;  %v3723_v37 = vpop.xlane.xlu0 %3722 }
 0x973   : > { %v3679_v33 = vadd.f32 %v3678_v45, %v3650_v3  ;;  %v3707_v53 = vpop.f32.mrf.mxu3  ;;  %v3737_v39 = vmul.f32 %v3723_v37, %v6755_v38 }
 0x975   : > { %v3708_v31 = vadd.f32 %v3707_v53, %v3679_v33  ;;  %v7161_v59 = vsub.f32 %v7140_v21, %v3737_v39 }
 0x977   : > { %v3717_v8 = vadd.f32 %v3708_v31, %v6951_v57  ;;  %v3753_v13 = vmul.f32 %v7161_v59, %v7161_v59 }
 0x979   : > { %3734 = vadd.xlane.f32.xlu0 %v3717_v8  ;;  %3762 = vadd.xlane.f32.xlu1 %v3753_v13 }
 0x9a3   : > { %v3725_v40 = vpop.xlane.xlu2 %3724 }
 0x9a4   : > { %v3738_v60 = vmul.f32 %v3725_v40, %v6755_v38 }
 0x9a6   : > { %v7167_v0 = vsub.f32 %v3712_v22, %v3738_v60 }
 0x9a8   : > { %v3754_v35 = vmul.f32 %v7167_v0, %v7167_v0 }
 0x9aa   : > { %3764 = vadd.xlane.f32.xlu0 %v3754_v35 }
 0x9ab   : > { %v3727_v43 = vpop.xlane.xlu1 %3726 }
 0x9ac   : > { %v3739_v21 = vmul.f32 %v3727_v43, %v6755_v38 }
 0x9ae   : > { %v7172_v4 = vsub.f32 %v3713_v19, %v3739_v21 }
 0x9b0   : > { %v3755_v57 = vmul.f32 %v7172_v4, %v7172_v4 }
 0x9b2   : > { %3766 = vadd.xlane.f32.xlu2 %v3755_v57 }
 0x9b3   : > { %v3729_v12 = vpop.xlane.xlu0 %3728 }
 0x9b4   : > { %v3740_v18 = vmul.f32 %v3729_v12, %v6755_v38 }
 0x9b6   : > { %v7177_v20 = vsub.f32 %v3714_v23, %v3740_v18 }
 0x9b8   : > { %v3756_v50 = vmul.f32 %v7177_v20, %v7177_v20 }
 0x9ba   : > { %3768 = vadd.xlane.f32.xlu1 %v3756_v50 }
 0x9bb   : > { %v3731_v22 = vpop.xlane.xlu2 %3730 }
 0x9bc   : > { %v3741_v55 = vmul.f32 %v3731_v22, %v6755_v38 }
 0x9be   : > { %v7182_v51 = vsub.f32 %v3715_v28, %v3741_v55 }
 0x9c0   : > { %v3757_v24 = vmul.f32 %v7182_v51, %v7182_v51 }
 0x9c2   : > { %3770 = vadd.xlane.f32.xlu0 %v3757_v24 }
 0x9e4   : > { %v3733_v9 = vpop.xlane.xlu1 %3732  ;;  %v3761_v56 = vpop.xlane.xlu2 %3760 }
 0x9e5   : > { %v3742_v14 = vmul.f32 %v3733_v9, %v6755_v38  ;;  %v3776_v15 = vmul.f32 %v3761_v56, %v6755_v38 }
 0x9e7   : > { %v7188_v7 = vsub.f32 %v3716_v44, %v3742_v14  ;;  %v3784_v19 = vadd.f32 1e-12, %v3776_v15 }
 0x9e9   : > { %v3758_v61 = vmul.f32 %v7188_v7, %v7188_v7  ;;  %5460 = vrsqrt.f32 %v3784_v19  ;;  %vm3798_vm7 = vweird.f32 %v3784_v19 }
 0x9eb   : > { %3772 = vadd.xlane.f32.xlu2 %v3758_v61 }
 0x9ec   : > { %v3735_v2 = vpop.xlane.xlu0 %3734  ;;  %v3763_v29 = vpop.xlane.xlu1 %3762 }
 0x9ed   : > { %v3743_v11 = vmul.f32 %v3735_v2, %v6755_v38  ;;  %v3777_v6 = vmul.f32 %v3763_v29, %v6755_v38 }
 0x9ef   : > { %v7194_v42 = vsub.f32 %v3717_v8, %v3743_v11  ;;  %v5461_v48 = vpop.eup %5460  ;;  %v3785_v26 = vadd.f32 1e-12, %v3777_v6 }
 0x9f0   : > { %v3793_v23 = vmul.f32 %v5461_v48, %v3784_v19  ;;  %vm3799_vm6 = vweird.f32 %v5461_v48 }
 0x9f1   : > { %v3759_v30 = vmul.f32 %v7194_v42, %v7194_v42  ;;  %5462 = vrsqrt.f32 %v3785_v26  ;;  %vm3800_vm8 = vmor %vm3798_vm7, %vm3799_vm6  ;;  %vm3808_vm11 = vweird.f32 %v3785_v26 }
 0x9f2   : > { %v3794_v27 = vmul.f32 %v5461_v48, %v3793_v23 }
 0x9f3   : > { %3774 = vadd.xlane.f32.xlu1 %v3759_v30 }
 0x9f4   : > { %v3795_v32 = vmul.f32 0.5, %v3794_v27 }
 0x9f6   : > { %v3796_v34 = vsub.f32 1.5, %v3795_v32 }
 0x9f7   : > { %v5463_v46 = vpop.eup %5462 }
 0x9f8   : > { %v3797_v28 = vmul.f32 %v5461_v48, %v3796_v34  ;;  %v3803_v10 = vmul.f32 %v5463_v46, %v3785_v26  ;;  %vm3809_vm9 = vweird.f32 %v5463_v46 }
 0x9f9   : > { %vm3810_vm12 = vmor %vm3808_vm11, %vm3809_vm9 }
 0x9fa   : > { %v3801_v54 = vsel %vm3800_vm8, %v5461_v48, %v3797_v28  ;;  %v3804_v17 = vmul.f32 %v5463_v46, %v3803_v10 }
 0x9fb   : > { %v3872_v1 = vmul.f32 %v3801_v54, %v7154_v16 }
 0x9fc   : > { %v3805_v58 = vmul.f32 0.5, %v3804_v17 }
 0x9fd   : > { %v3883_v52 = vmul.f32 %v7203_v63, %v3872_v1 }
 0x9fe   : > { %v3806_v41 = vsub.f32 1.5, %v3805_v58 }
 0x9ff   : > { %v7215_v36 = vadd.f32 %v7210_v49, %v3883_v52 }
 0xa00   : > { %v3807_v47 = vmul.f32 %v5463_v46, %v3806_v41 }
 0xa01   : > { %3902 = vst [vmem:[#allocation2 + $0x30] sm:$0xff] %v7215_v36 }
 0xa02   : > { %v3811_v62 = vsel %vm3810_vm12, %v5463_v46, %v3807_v47 }
 0xa03   : > { %v3873_v44 = vmul.f32 %v3811_v62, %v7161_v59 }
 0xa05   : > { %v3884_v25 = vmul.f32 %v7203_v63, %v3873_v44 }
 0xa07   : > { %v7221_v16 = vadd.f32 %v7210_v49, %v3884_v25 }
 0xa09   : > { %3903 = vst [vmem:[#allocation2] sm:$0xff] %v7221_v16 }
 0xa1d   : > { %v3765_v5 = vpop.xlane.xlu0 %3764 }
 0xa1e   : > { %v3778_v3 = vmul.f32 %v3765_v5, %v6755_v38 }
 0xa20   : > { %v3786_v45 = vadd.f32 1e-12, %v3778_v3 }
 0xa22   : > { %5464 = vrsqrt.f32 %v3786_v45  ;;  %vm3818_vm14 = vweird.f32 %v3786_v45 }
 0xa25   : > { %v3767_v33 = vpop.xlane.xlu2 %3766 }
 0xa26   : > { %v3779_v37 = vmul.f32 %v3767_v33, %v6755_v38 }
 0xa28   : > { %v5465_v53 = vpop.eup %5464  ;;  %v3787_v39 = vadd.f32 1e-12, %v3779_v37 }
 0xa29   : > { %v3813_v31 = vmul.f32 %v5465_v53, %v3786_v45  ;;  %vm3819_vm13 = vweird.f32 %v5465_v53 }
 0xa2a   : > { %5466 = vrsqrt.f32 %v3787_v39  ;;  %vm3820_vm15 = vmor %vm3818_vm14, %vm3819_vm13  ;;  %vm3828_vm1 = vweird.f32 %v3787_v39 }
 0xa2b   : > { %v3814_v59 = vmul.f32 %v5465_v53, %v3813_v31 }
 0xa2d   : > { %v3815_v8 = vmul.f32 0.5, %v3814_v59  ;;  %v3769_v40 = vpop.xlane.xlu1 %3768 }
 0xa2e   : > { %v3780_v35 = vmul.f32 %v3769_v40, %v6755_v38 }
 0xa2f   : > { %v3816_v13 = vsub.f32 1.5, %v3815_v8 }
 0xa30   : > { %v5467_v60 = vpop.eup %5466  ;;  %v3788_v57 = vadd.f32 1e-12, %v3780_v35 }
 0xa31   : > { %v3817_v43 = vmul.f32 %v5465_v53, %v3816_v13  ;;  %v3823_v21 = vmul.f32 %v5467_v60, %v3787_v39  ;;  %vm3829_vm0 = vweird.f32 %v5467_v60 }
 0xa32   : > { %5468 = vrsqrt.f32 %v3788_v57  ;;  %vm3830_vm2 = vmor %vm3828_vm1, %vm3829_vm0  ;;  %vm3838_vm4 = vweird.f32 %v3788_v57 }
 0xa33   : > { %v3821_v12 = vsel %vm3820_vm15, %v5465_v53, %v3817_v43  ;;  %v3824_v18 = vmul.f32 %v5467_v60, %v3823_v21 }
 0xa34   : > { %v3874_v50 = vmul.f32 %v3821_v12, %v7167_v0 }
 0xa35   : > { %v3825_v22 = vmul.f32 0.5, %v3824_v18  ;;  %v3771_v9 = vpop.xlane.xlu0 %3770 }
 0xa36   : > { %v3885_v55 = vmul.f32 %v7203_v63, %v3874_v50  ;;  %v3781_v14 = vmul.f32 %v3771_v9, %v6755_v38 }
 0xa37   : > { %v3826_v24 = vsub.f32 1.5, %v3825_v22 }
 0xa38   : > { %v7230_v56 = vadd.f32 %v7210_v49, %v3885_v55  ;;  %v5469_v19 = vpop.eup %5468  ;;  %v3789_v61 = vadd.f32 1e-12, %v3781_v14 }
 0xa39   : > { %v3827_v15 = vmul.f32 %v5467_v60, %v3826_v24  ;;  %v3833_v2 = vmul.f32 %v5469_v19, %v3788_v57  ;;  %vm3839_vm3 = vweird.f32 %v5469_v19 }
 0xa3a   : > { %3904 = vst [vmem:[#allocation2 + $0x18] sm:$0xff] %v7230_v56  ;;  %5470 = vrsqrt.f32 %v3789_v61  ;;  %vm3840_vm5 = vmor %vm3838_vm4, %vm3839_vm3  ;;  %vm3848_vm7 = vweird.f32 %v3789_v61 }
 0xa3b   : > { %v3831_v0 = vsel %vm3830_vm2, %v5467_v60, %v3827_v15  ;;  %v3834_v29 = vmul.f32 %v5469_v19, %v3833_v2 }
 0xa3c   : > { %v3875_v11 = vmul.f32 %v3831_v0, %v7172_v4 }
 0xa3d   : > { %v3835_v48 = vmul.f32 0.5, %v3834_v29 }
 0xa3e   : > { %v3886_v6 = vmul.f32 %v7203_v63, %v3875_v11 }
 0xa3f   : > { %v3836_v23 = vsub.f32 1.5, %v3835_v48 }
 0xa40   : > { %v7237_v26 = vadd.f32 %v7210_v49, %v3886_v6  ;;  %v5471_v30 = vpop.eup %5470 }
 0xa41   : > { %v3837_v27 = vmul.f32 %v5469_v19, %v3836_v23  ;;  %v3843_v32 = vmul.f32 %v5471_v30, %v3789_v61  ;;  %vm3849_vm6 = vweird.f32 %v5471_v30 }
 0xa42   : > { %3905 = vst [vmem:[#allocation2 + $0x10] sm:$0xff] %v7237_v26  ;;  %vm3850_vm8 = vmor %vm3848_vm7, %vm3849_vm6 }
 0xa43   : > { %v3841_v34 = vsel %vm3840_vm5, %v5469_v19, %v3837_v27  ;;  %v3844_v46 = vmul.f32 %v5471_v30, %v3843_v32 }
 0xa44   : > { %v3876_v4 = vmul.f32 %v3841_v34, %v7177_v20 }
 0xa45   : > { %v3845_v28 = vmul.f32 0.5, %v3844_v46 }
 0xa46   : > { %v3887_v10 = vmul.f32 %v7203_v63, %v3876_v4 }
 0xa47   : > { %v3846_v54 = vsub.f32 1.5, %v3845_v28 }
 0xa48   : > { %v3898_v17 = vadd.f32 %v7210_v49, %v3887_v10 }
 0xa49   : > { %v3847_v1 = vmul.f32 %v5471_v30, %v3846_v54 }
 0xa4a   : > { %3906 = vst [vmem:[#allocation2 + $0x8] sm:$0xff] %v3898_v17 }
 0xa4b   : > { %v3851_v58 = vsel %vm3850_vm8, %v5471_v30, %v3847_v1 }
 0xa4c   : > { %v3877_v52 = vmul.f32 %v3851_v58, %v7182_v51 }
 0xa4e   : > { %v3888_v41 = vmul.f32 %v7203_v63, %v3877_v52 }
 0xa50   : > { %v3899_v47 = vadd.f32 %v7210_v49, %v3888_v41 }
 0xa52   : > { %3907 = vst [vmem:[#allocation2 + $0x20] sm:$0xff] %v3899_v47 }
 0xa5e   : > { %v3773_v20 = vpop.xlane.xlu2 %3772 }
 0xa5f   : > { %v3782_v62 = vmul.f32 %v3773_v20, %v6755_v38 }
 0xa61   : > { %v3790_v44 = vadd.f32 1e-12, %v3782_v62 }
 0xa63   : > { %5472 = vrsqrt.f32 %v3790_v44  ;;  %vm3858_vm11 = vweird.f32 %v3790_v44 }
 0xa66   : > { %v3775_v25 = vpop.xlane.xlu1 %3774 }
 0xa67   : > { %v3783_v5 = vmul.f32 %v3775_v25, %v6755_v38 }
 0xa69   : > { %v5473_v3 = vpop.eup %5472  ;;  %v3791_v45 = vadd.f32 1e-12, %v3783_v5 }
 0xa6a   : > { %v3853_v33 = vmul.f32 %v5473_v3, %v3790_v44  ;;  %vm3859_vm9 = vweird.f32 %v5473_v3 }
 0xa6b   : > { %5474 = vrsqrt.f32 %v3791_v45  ;;  %vm3860_vm12 = vmor %vm3858_vm11, %vm3859_vm9  ;;  %vm3868_vm14 = vweird.f32 %v3791_v45 }
 0xa6c   : > { %v3854_v37 = vmul.f32 %v5473_v3, %v3853_v33 }
 0xa6e   : > { %v3855_v53 = vmul.f32 0.5, %v3854_v37 }
 0xa70   : > { %v3856_v51 = vsub.f32 1.5, %v3855_v53 }
 0xa71   : > { %v5475_v39 = vpop.eup %5474 }
 0xa72   : > { %v3857_v31 = vmul.f32 %v5473_v3, %v3856_v51  ;;  %v3863_v59 = vmul.f32 %v5475_v39, %v3791_v45  ;;  %vm3869_vm13 = vweird.f32 %v5475_v39 }
 0xa73   : > { %vm3870_vm15 = vmor %vm3868_vm14, %vm3869_vm13 }
 0xa74   : > { %v3861_v8 = vsel %vm3860_vm12, %v5473_v3, %v3857_v31  ;;  %v3864_v13 = vmul.f32 %v5475_v39, %v3863_v59 }
 0xa75   : > { %v3878_v40 = vmul.f32 %v3861_v8, %v7188_v7 }
 0xa76   : > { %v3865_v60 = vmul.f32 0.5, %v3864_v13 }
 0xa77   : > { %v3889_v38 = vmul.f32 %v7203_v63, %v3878_v40 }
 0xa78   : > { %v3866_v35 = vsub.f32 1.5, %v3865_v60 }
 0xa79   : > { %v3900_v43 = vadd.f32 %v7210_v49, %v3889_v38 }
 0xa7a   : > { %v3867_v21 = vmul.f32 %v5475_v39, %v3866_v35 }
 0xa7b   : > { %3908 = vst [vmem:[#allocation2 + $0x28] sm:$0xff] %v3900_v43 }
 0xa7c   : > { %v3871_v57 = vsel %vm3870_vm15, %v5475_v39, %v3867_v21 }
 0xa7d   : > { %v3879_v12 = vmul.f32 %v3871_v57, %v7194_v42 }
 0xa7f   : > { %v3890_v18 = vmul.f32 %v7203_v63, %v3879_v12  ;;  %3913 = sbr.rel (%p4854_p11) target bundleno = 3256 (0xcb8), region = 132 }
 0xa81   : > { %v3901_v50 = vadd.f32 %v7210_v49, %v3890_v18 }
 0xa83   : > { %3909 = vst [vmem:[#allocation2 + $0x38] sm:$0xff] %v3901_v50 }
 0xa84   : > { %3926 = vmatpush.msra.mxu3 %v3901_v50  ;;  %v5079_v7 = vld [vmem:[%s7449_s29 + $0x38] sm:$0xff]  ;;  %v5078_v22 = vld [vmem:[%s7449_s29 + $0x30] sm:$0xff]  ;;  %v5077_v42 = vld [vmem:[%s7449_s29 + $0x28] sm:$0xff]  ;;  %vm4237_vm0 = vcmask 9216  }
 0xa85   : > { %4007 = vmatpush.bf16.msra.mxu1 %v5079_v7  ;;  %v5076_v63 = vld [vmem:[%s7449_s29 + $0x20] sm:$0xff]  ;;  %v5075_v55 = vld [vmem:[%s7449_s29 + $0x18] sm:$0xff]  ;;  %v5074_v24 = vld [vmem:[%s7449_s29 + $0x10] sm:$0xff] }
 0xa86   : > { %3927 = vmatpush.msra.mxu3 %v3900_v43  ;;  %v3914_v49 = vld [vmem:[%s7450_s27] sm:$0xf]  ;;  %v5095_v9 = vld [vmem:[%s7451_s21 + $0x38] sm:$0xff]  ;;  %v5094_v14 = vld [vmem:[%s7451_s21 + $0x30] sm:$0xff] }
 0xa87   : > { %4219 = vmatpush.bf16.msra.mxu0 %v5095_v9  ;;  %v5086_v15 = vld [vmem:[%s7452_s20 + $0x30] sm:$0xff]  ;;  %v5093_v19 = vld [vmem:[%s7451_s21 + $0x28] sm:$0xff]  ;;  %v5092_v0 = vld [vmem:[%s7451_s21 + $0x20] sm:$0xff] }
 0xa88   : > { %3928 = vmatpush.msra.mxu3 %v3899_v47  ;;  %v5085_v61 = vld [vmem:[%s7452_s20 + $0x28] sm:$0xff]  ;;  %v5084_v2 = vld [vmem:[%s7452_s20 + $0x20] sm:$0xff]  ;;  %v5091_v11 = vld [vmem:[%s7451_s21 + $0x18] sm:$0xff] }
 0xa89   : > { %4008 = vmatpush.bf16.msra.mxu1 %v5078_v22  ;;  %v5083_v29 = vld [vmem:[%s7452_s20 + $0x18] sm:$0xff]  ;;  %v5082_v23 = vld [vmem:[%s7452_s20 + $0x10] sm:$0xff]  ;;  %v5089_v30 = vld [vmem:[%s7451_s21 + $0x8] sm:$0xff] }
 0xa8a   : > { %3929 = vmatpush.msra.mxu3 %v3898_v17  ;;  %v5081_v27 = vld [vmem:[%s7452_s20 + $0x8] sm:$0xff]  ;;  %v5088_v32 = vld [vmem:[%s7451_s21] sm:$0xff]  ;;  %v5099_v46 = vld [vmem:[%s7453_s25 + $0x18] sm:$0xff] }
 0xa8b   : > { %4220 = vmatpush.bf16.msra.mxu0 %v5094_v14  ;;  %v5080_v34 = vld [vmem:[%s7452_s20] sm:$0xff]  ;;  %v5098_v52 = vld [vmem:[%s7453_s25 + $0x10] sm:$0xff]  ;;  %v5097_v41 = vld [vmem:[%s7453_s25 + $0x8] sm:$0xff] }
 0xa8c   : > { %3930 = vmatpush.msra.mxu3 %v7237_v26  ;;  %v5090_v26 = vld [vmem:[%s7451_s21 + $0x10] sm:$0xff]  ;;  %v5484_v4 = vld [vmem:[%s7454_s19] ss:$0 sm:$0xff] }
 0xa8d   : > { %4009 = vmatpush.bf16.msra.mxu1 %v5077_v42  ;;  %v5096_v47 = vld [vmem:[%s7453_s25] sm:$0xff] }
 0xa8e   : > { %3931 = vmatpush.msra.mxu3 %v7230_v56  ;;  %v5087_v56 = vld [vmem:[%s7452_s20 + $0x38] sm:$0xff]  ;;  %v5485_v62 = vld [vmem:[%s7455_s2] ss:$0 sm:$0xff] }
 0xa8f   : > { %4093 = vmatpush.bf16.msra.mxu2 %v5087_v56  ;;  %4221 = vmatpush.bf16.msra.mxu0 %v5093_v19  ;;  %v5486_v33 = vld [vmem:[%s7456_s13] ss:$0 sm:$0xff] }
 0xa90   : > { %3932 = vmatpush.msra.mxu3 %v7221_v16  ;;  %v5073_v16 = vld [vmem:[%s7449_s29 + $0x8] sm:$0xff] }
 0xa91   : > { %4010 = vmatpush.bf16.msra.mxu1 %v5076_v63 }
 0xa92   : > { %3933 = vmatpush.msra.mxu3 %v7215_v36  ;;  %v5072_v36 = vld [vmem:[%s7449_s29] sm:$0xff] }
 0xa93   : > { %4855 = vmatmul.msk.f32.vlgmr.msra.gmra.mxu3 %vm1499_vm10, %v3914_v49  ;;  %4094 = vmatpush.bf16.msra.mxu2 %v5086_v15 }
 0xa94   : > { %4222 = vmatpush.bf16.msra.mxu0 %v5092_v0  ;;  %4162 = vmatpush.bf16.msrb.mxu3 %v5099_v46 }
 0xa95   : > { %4011 = vmatpush.bf16.msra.mxu1 %v5075_v55 }
 0xa97   : > { %4095 = vmatpush.bf16.msra.mxu2 %v5085_v61 }
 0xa98   : > { %4223 = vmatpush.bf16.msra.mxu0 %v5091_v11  ;;  %4163 = vmatpush.bf16.msrb.mxu3 %v5098_v52 }
 0xa99   : > { %4012 = vmatpush.bf16.msra.mxu1 %v5074_v24 }
 0xa9b   : > { %4096 = vmatpush.bf16.msra.mxu2 %v5084_v2 }
 0xa9c   : > { %4224 = vmatpush.bf16.msra.mxu0 %v5090_v26  ;;  %4164 = vmatpush.bf16.msrb.mxu3 %v5097_v41 }
 0xa9d   : > { %4013 = vmatpush.bf16.msra.mxu1 %v5073_v16 }
 0xa9f   : > { %4097 = vmatpush.bf16.msra.mxu2 %v5083_v29 }
 0xaa0   : > { %4225 = vmatpush.bf16.msra.mxu0 %v5089_v30  ;;  %4165 = vmatpush.bf16.msrb.mxu3 %v5096_v47 }
 0xaa1   : > { %4014 = vmatpush.bf16.msra.mxu1 %v5072_v36 }
 0xaa3   : > { %4098 = vmatpush.bf16.msra.mxu2 %v5082_v23 }
 0xaa4   : > { %4226 = vmatpush.bf16.msra.mxu0 %v5088_v32 }
 0xaa7   : > { %4099 = vmatpush.bf16.msra.mxu2 %v5081_v27 }
 0xaab   : > { %4100 = vmatpush.bf16.msra.mxu2 %v5080_v34 }
 0xb16   : > { %v3935_v6 = vpop.f32.mrf.mxu3 }
 0xb17   : > { %v3938_v48 = vpack.c.bf16 %v3935_v6, %v3935_v6 }
 0xb19   : > { %4015 = vmatmul.bf16.vlgmr.msra.gmra.mxu1 %v3938_v48 }
 0xb96   : > { %v4016_v28 = vpop.f32.mrf.mxu1 }
 0xb97   : > { %v4017_v10 = vadd.f32 %v5484_v4, %v4016_v28 }
 0xb99   : > { %5487 = vtanh.f32 %v4017_v10 }
 0xb9e   : > { %v4018_v54 = vpop.f32.mrf.mxu1 }
 0xb9f   : > { %v5488_v17 = vpop.eup %5487 }
 0xba0   : > { %v4021_v1 = vpack.c.bf16 %v5488_v17, %v5488_v17 }
 0xba2   : > { %4227 = vmatmul.bf16.vlgmr.msra.gmra.mxu0 %v4021_v1  ;;  %v4043_v58 = vrot.slane %v4021_v1, 1 }
 0xba4   : > { %4101 = vmatmul.bf16.vlgmr.msra.gmra.mxu2 %v4043_v58 }
 0xc1f   : > { %v4228_v20 = vpop.f32.mrf.mxu0 }
 0xc27   : > { %v4102_v44 = vpop.f32.mrf.mxu2  ;;  %v4230_v25 = vpop.f32.mrf.mxu0 }
 0xc28   : > { %v4103_v5 = vadd.f32 %v5485_v62, %v4102_v44 }
 0xc2a   : > { %v4122_v3 = vpack.c.bf16 %v4103_v5, %v4103_v5 }
 0xc2c   : > { %4936 = vmatmul.msk.bf16.vlgmr.msrb.gmra.mxu3 %vm1499_vm10, %v4122_v3 }
 0xc2f   : > { %v4104_v45 = vpop.f32.mrf.mxu2 }
 0xcaf   : > { %v4167_v37 = vpop.f32.mrf.mxu3 }
 0xcb0   : > { %v4229_v53 = vadd.f32 %v4228_v20, %v4167_v37 }
 0xcb2   : > { %v4236_v51 = vadd.f32 %v5486_v33, %v4229_v53 }
 0xcb4   : > { %4238 = vst.msk [vmem:[#allocation8] sm:$0x3] %vm4237_vm0, %v4236_v51 }
 0xcb7   : > { %v4169_v39 = vpop.f32.mrf.mxu3 }
 0xcb8 PF: > { %p5120_p2 = scmp.eq.s32.totalorder %s5775_s6, 1  ;;  %s5630_s4 = smov [#allocation8]  }
 0xcb9   : > { %s4245_s22 = sshll.u32 %s5630_s4, 4  ;;  %s7457_s19 = sld [smem:[#allocation33_spill]]  ;;  %s4246_s22 = int_to_ptr.vmem [resolvable:$true] %s4245_s22 }
 0xcbf   : > { %s4247_s24 = sshll.u32 %s7457_s19, 4  ;;  %s4248_s24 = int_to_ptr.hbm [resolvable:$true] %s4247_s24 }
 0xcc0   : > { %5109 = dma.vmem_to_hbm [thread:$0]  (%p5120_p2), %s4246_s22, 32, %s4248_s24, [#allocation5]  }
 0xcc1   : > { %5602 = dma.done.wait (%p5120_p2), [#allocation5], 32  }
 0xcc2   : > { %5604 = vsyncadd (%p5120_p2), [#allocation5], 4294967264 }
 0xcc3 PF: > { %s7458_s28 = sld [smem:[#allocation14_spill]] }
 0xcc4   : > { %s7459_s5 = sld [smem:[#allocation12_spill]] }
 0xcc5   : > { %s7460_s26 = sld [smem:[#allocation13_spill]] }
 0xcc6   : > { %s7461_s27 = sld [smem:[#allocation15_spill]] }
 0xcc9   : > { %p38_p3 = scmp.ge.s32.totalorder %s7458_s28, 4  }
 0xccb   :  { %40 = sbr.rel (!%p38_p3) target bundleno = 25 (0x19), region = 204 }
 0xcd0   :  { %4261 = vsyncpa [#allocation4], 1 }
 0xcd1   :  { %4263 = vsyncpa [#allocation4 + $0x1], 1 }
 0xcd2   :  { %4264 = vsyncpa [#allocation7], 1 }
 0xcd3   :  { %4266 = vsyncpa [#allocation7 + $0x1], 1 }
 0xcd4   :  { %4267 = vsyncpa [#allocation5], 1 }
 0xcd5   :  { %4269 = vsyncpa [#allocation5 + $0x1], 1 }

</bundles_post_ra>
